<compile_context>
chip_gen: v5e
topology: v5e:2x2
jax: 0.10.0
libtpu: 0.0.40
codegen_flags: <defaults>
</compile_context>

<pallas_src>
import functools

import jax
import jax.numpy as jnp
from jax.experimental import pallas as pl
from jax.experimental.pallas import tpu as pltpu


# ----------------------------------------------------------------------------
# Fused SlimInvertedResidual kernel
# ----------------------------------------------------------------------------
def _block_kernel(x_ref, w1_ref, b1_ref, wdw_ref, b2_ref, w3_ref, b3_ref,
                  o_ref, hid_ref, *, h, w, wout, th, stride, hidden, use_res):
    """One fused block; one (batch, h-tile) grid step.

    x_ref:   (1, h*w, cin)       input image, flattened NHWC (resident across h-tiles)
    hid_ref: (h+2, w+2, hidden)  VMEM scratch, zero-padded expanded activation
    o_ref:   (1, th*wout, cout)  output tile, flattened NHWC
    """
    hp, wp = h + 2, w + 2
    t = pl.program_id(1)

    # ---- 1x1 expand + BN + ReLU6 for the whole image, once per batch element.
    #      (The expanded activation never leaves VMEM.)
    @pl.when(t == 0)
    def _():
        zr = jnp.zeros((1, wp, hidden), jnp.float32)
        hid_ref[0:1, :, :] = zr
        hid_ref[hp - 1:hp, :, :] = zr
        zc = jnp.zeros((hp, 1, hidden), jnp.float32)
        hid_ref[:, 0:1, :] = zc
        hid_ref[:, wp - 1:wp, :] = zc
        ex = jnp.dot(x_ref[0], w1_ref[...], preferred_element_type=jnp.float32)
        ex = jnp.clip(ex + b1_ref[...], 0.0, 6.0)
        hid_ref[1:hp - 1, 1:wp - 1, :] = ex.reshape(h, w, hidden)

    # ---- 3x3 depthwise + BN + ReLU6 for this tile of output rows.
    o0 = t * th                                     # first output row of this tile
    row0 = pl.multiple_of(o0 * stride, th * stride)
    acc = jnp.zeros((th, wout, hidden), jnp.float32)
    for kh in range(3):
        for kw in range(3):
            if stride == 1:
                win = hid_ref[pl.ds(row0 + kh, th), pl.ds(kw, wout), :]
            else:
                # Strided ref loads (not value-level strided slicing).
                win = hid_ref[pl.ds(row0 + kh, th, stride=stride),
                              pl.ds(kw, wout, stride=stride), :]
            acc = acc + win * wdw_ref[kh, kw, :][None, None, :]
    y = jnp.clip(acc + b2_ref[...], 0.0, 6.0)

    # ---- 1x1 project + BN (+ residual from the resident input block).
    out = jnp.dot(y.reshape(th * wout, hidden), w3_ref[...],
                  preferred_element_type=jnp.float32)
    out = out + b3_ref[...]
    if use_res:
        r0 = pl.multiple_of(o0 * w, th * w)
        out = out + x_ref[0, pl.ds(r0, th * w), :]
    o_ref[0] = out.astype(o_ref.dtype)


def _pick_h_tile(hout, wout):
    """Output-row tile: divides hout, keeps the stored tile sublane-aligned."""
    for t in (8, 4, 2):
        if hout % t == 0 and (t * wout) % 8 == 0:
            return t
    return hout


def fused_inverted_residual(x_flat, hw, params, stride):
    """x_flat: [N, H*W, Cin] float32 (flattened NHWC). Returns ([N, Hout*Wout, Cout], (Hout, Wout))."""
    n, m, cin = x_flat.shape
    h, w = hw
    assert m == h * w
    hidden = params["w1"].shape[1]
    cout = params["w3"].shape[1]
    hout = (h - 1) // stride + 1
    wout = (w - 1) // stride + 1
    use_res = (stride == 1) and (cin == cout)

    # Fold inference-mode BN scales into the conv weights at trace time.
    w1 = (params["w1"] * params["s1"][None, :]).astype(jnp.float32)
    wdw = (params["wdw"] * params["s2"][None, None, :]).astype(jnp.float32)
    w3 = (params["w3"] * params["s3"][None, :]).astype(jnp.float32)
    b1 = params["b1"].reshape(1, hidden).astype(jnp.float32)
    b2 = params["b2"].reshape(1, hidden).astype(jnp.float32)
    b3 = params["b3"].reshape(1, cout).astype(jnp.float32)

    th = _pick_h_tile(hout, wout)
    n_ht = hout // th

    kernel = functools.partial(_block_kernel, h=h, w=w, wout=wout, th=th,
                               stride=stride, hidden=hidden, use_res=use_res)

    out = pl.pallas_call(
        kernel,
        out_shape=jax.ShapeDtypeStruct((n, hout * wout, cout), jnp.float32),
        grid=(n, n_ht),
        in_specs=[
            pl.BlockSpec((1, h * w, cin), lambda b, t: (b, 0, 0)),   # re-fetched only when b changes
            pl.BlockSpec((cin, hidden), lambda b, t: (0, 0)),
            pl.BlockSpec((1, hidden), lambda b, t: (0, 0)),
            pl.BlockSpec((3, 3, hidden), lambda b, t: (0, 0, 0)),
            pl.BlockSpec((1, hidden), lambda b, t: (0, 0)),
            pl.BlockSpec((hidden, cout), lambda b, t: (0, 0)),
            pl.BlockSpec((1, cout), lambda b, t: (0, 0)),
        ],
        out_specs=pl.BlockSpec((1, th * wout, cout), lambda b, t: (b, t, 0)),
        scratch_shapes=[pltpu.VMEM((h + 2, w + 2, hidden), jnp.float32)],
        compiler_params=pltpu.CompilerParams(
            dimension_semantics=("parallel", "arbitrary"),
            vmem_limit_bytes=32 * 1024 * 1024),
    )(x_flat, w1, b1, wdw, b2, w3, b3)
    return out, (hout, wout)


# ----------------------------------------------------------------------------
# Parameter construction (inference-mode BN folded to scale/bias)
# ----------------------------------------------------------------------------
def _fold_bn(gamma, beta, mean, var, eps=1e-5):
    scale = gamma / jnp.sqrt(var + eps)
    bias = beta - mean * scale
    return scale.astype(jnp.float32), bias.astype(jnp.float32)


def _init_bn(key, c):
    k1, k2, k3, k4 = jax.random.split(key, 4)
    gamma = 1.0 + 0.05 * jax.random.normal(k1, (c,), jnp.float32)
    beta = 0.05 * jax.random.normal(k2, (c,), jnp.float32)
    mean = 0.05 * jax.random.normal(k3, (c,), jnp.float32)
    var = 1.0 + 0.1 * jax.random.uniform(k4, (c,), jnp.float32)
    return _fold_bn(gamma, beta, mean, var)


def init_block_params(key, cin, cout, hidden):
    ks = jax.random.split(key, 6)
    w1 = jax.random.normal(ks[0], (cin, hidden), jnp.float32) / jnp.sqrt(cin)
    s1, b1 = _init_bn(ks[1], hidden)
    wdw = jax.random.normal(ks[2], (3, 3, hidden), jnp.float32) / 3.0
    s2, b2 = _init_bn(ks[3], hidden)
    w3 = jax.random.normal(ks[4], (hidden, cout), jnp.float32) / jnp.sqrt(hidden)
    s3, b3 = _init_bn(ks[5], cout)
    return dict(w1=w1, s1=s1, b1=b1, wdw=wdw, s2=s2, b2=b2, w3=w3, s3=s3, b3=b3)


def make_slim_stage(key, num_blocks, input_channel, output_channel,
                    stride=1, expand_ratio=6):
    """Mirrors SlimStage.__init__ (head block + N-1 tail blocks)."""
    configs = [(input_channel, output_channel, stride, expand_ratio * input_channel)]
    cin = output_channel
    for _ in range(num_blocks - 1):
        configs.append((cin, output_channel, 1, expand_ratio * cin))
        cin = output_channel
    keys = jax.random.split(key, len(configs))
    params = [init_block_params(k, ci, co, hid)
              for k, (ci, co, s, hid) in zip(keys, configs)]
    return params, configs


# ----------------------------------------------------------------------------
# Stage forward
# ----------------------------------------------------------------------------
def slim_stage_forward(x_nchw, params, configs):
    """x_nchw: [N, C, H, W] float32 (PyTorch layout). Returns NCHW output."""
    n, c, h, w = x_nchw.shape
    # NCHW -> NHWC, flattened spatially (channels minor; reshape is layout-free).
    x = jnp.transpose(x_nchw, (0, 2, 3, 1)).reshape(n, h * w, c)
    hw = (h, w)
    for p, (_, _, stride, _) in zip(params, configs):
        x, hw = fused_inverted_residual(x, hw, p, stride)
    hout, wout = hw
    cout = x.shape[-1]
    out = x.reshape(n, hout, wout, cout)
    return jnp.transpose(out, (0, 3, 1, 2))  # -> NCHW


# ----------------------------------------------------------------------------
if __name__ == "__main__":
    key = jax.random.PRNGKey(0)
    k_param, k_x = jax.random.split(key)

    # SlimStage(N=2, input_channel=4, output_channel=8, stride=1, expand_ratio=6)
    num_blocks, cin, cout, stride, expand = 2, 4, 8, 1, 6
    params, configs = make_slim_stage(k_param, num_blocks, cin, cout, stride, expand)

    batch, h, w = 2, 16, 16
    x = jax.random.normal(k_x, (batch, cin, h, w), jnp.float32)  # NCHW like PyTorch

    fwd = jax.jit(lambda xx: slim_stage_forward(xx, params, configs))
    out = jax.block_until_ready(fwd(x))

    assert out.shape == (batch, cout, h // stride, w // stride), out.shape
    assert bool(jnp.all(jnp.isfinite(out)))
    print("KERNEL_OK")
</pallas_src>

<mosaic_0001>
module attributes {stable_mosaic.version = 11 : i64} {
  func.func @_block_kernel(%arg0: i32, %arg1: i32, %arg2: memref<1x256x4xf32, #tpu.memory_space<vmem>>, %arg3: memref<4x24xf32, #tpu.memory_space<vmem>>, %arg4: memref<1x24xf32, #tpu.memory_space<vmem>>, %arg5: memref<3x3x24xf32, #tpu.memory_space<vmem>>, %arg6: memref<1x24xf32, #tpu.memory_space<vmem>>, %arg7: memref<24x8xf32, #tpu.memory_space<vmem>>, %arg8: memref<1x8xf32, #tpu.memory_space<vmem>>, %arg9: memref<1x128x8xf32, #tpu.memory_space<vmem>>, %arg10: memref<18x18x24xf32, #tpu.memory_space<vmem>>) attributes {dimension_semantics = [#tpu.dimension_semantics<parallel>, #tpu.dimension_semantics<arbitrary>], iteration_bounds = array<i64: 2, 2>, scalar_prefetch = 0 : i64, scratch_operands = 1 : i64, tpu.core_type = #tpu.core_type<tc>, window_params = [{transform_indices = @transform_0, window_bounds = array<i64: 1, 256, 4>}, {pipeline_mode = #tpu.pipeline_mode<synchronous>, transform_indices = @transform_1, window_bounds = array<i64: 4, 24>}, {pipeline_mode = #tpu.pipeline_mode<synchronous>, transform_indices = @transform_2, window_bounds = array<i64: 1, 24>}, {pipeline_mode = #tpu.pipeline_mode<synchronous>, transform_indices = @transform_3, window_bounds = array<i64: 3, 3, 24>}, {pipeline_mode = #tpu.pipeline_mode<synchronous>, transform_indices = @transform_4, window_bounds = array<i64: 1, 24>}, {pipeline_mode = #tpu.pipeline_mode<synchronous>, transform_indices = @transform_5, window_bounds = array<i64: 24, 8>}, {pipeline_mode = #tpu.pipeline_mode<synchronous>, transform_indices = @transform_6, window_bounds = array<i64: 1, 8>}, {transform_indices = @transform_7, window_bounds = array<i64: 1, 128, 8>}]} {
    %c0_i32 = arith.constant 0 : i32
    %0 = arith.cmpi eq, %arg1, %c0_i32 : i32
    %1 = arith.extui %0 : i1 to i32
    %c0_i32_0 = arith.constant 0 : i32
    %2 = arith.cmpi ne, %1, %c0_i32_0 : i32
    scf.if %2 {
      %cst_63 = arith.constant 0.000000e+00 : f32
      %105 = vector.broadcast %cst_63 : f32 to vector<1x18x24xf32>
      %c0_64 = arith.constant 0 : index
      %c0_65 = arith.constant 0 : index
      %c0_66 = arith.constant 0 : index
      %106 = vector.load %arg10[%c0_64, %c0_65, %c0_66] : memref<18x18x24xf32, #tpu.memory_space<vmem>>, vector<1x18x24xf32>
      tpu.vector_store %arg10[%c0_64, %c0_65, %c0_66], %105 {strides = array<i32>} : memref<18x18x24xf32, #tpu.memory_space<vmem>>, vector<1x18x24xf32>,
      %c17 = arith.constant 17 : index
      %c0_67 = arith.constant 0 : index
      %c0_68 = arith.constant 0 : index
      %107 = vector.load %arg10[%c17, %c0_67, %c0_68] : memref<18x18x24xf32, #tpu.memory_space<vmem>>, vector<1x18x24xf32>
      tpu.vector_store %arg10[%c17, %c0_67, %c0_68], %105 {strides = array<i32>} : memref<18x18x24xf32, #tpu.memory_space<vmem>>, vector<1x18x24xf32>,
      %cst_69 = arith.constant 0.000000e+00 : f32
      %108 = vector.broadcast %cst_69 : f32 to vector<18x1x24xf32>
      %c0_70 = arith.constant 0 : index
      %c0_71 = arith.constant 0 : index
      %c0_72 = arith.constant 0 : index
      %109 = vector.load %arg10[%c0_70, %c0_71, %c0_72] : memref<18x18x24xf32, #tpu.memory_space<vmem>>, vector<18x1x24xf32>
      tpu.vector_store %arg10[%c0_70, %c0_71, %c0_72], %108 {strides = array<i32>} : memref<18x18x24xf32, #tpu.memory_space<vmem>>, vector<18x1x24xf32>,
      %c0_73 = arith.constant 0 : index
      %c17_74 = arith.constant 17 : index
      %c0_75 = arith.constant 0 : index
      %110 = vector.load %arg10[%c0_73, %c17_74, %c0_75] : memref<18x18x24xf32, #tpu.memory_space<vmem>>, vector<18x1x24xf32>
      tpu.vector_store %arg10[%c0_73, %c17_74, %c0_75], %108 {strides = array<i32>} : memref<18x18x24xf32, #tpu.memory_space<vmem>>, vector<18x1x24xf32>,
      %c0_76 = arith.constant 0 : index
      %c0_77 = arith.constant 0 : index
      %c0_78 = arith.constant 0 : index
      %111 = vector.load %arg2[%c0_76, %c0_77, %c0_78] : memref<1x256x4xf32, #tpu.memory_space<vmem>>, vector<1x256x4xf32>
      %112 = vector.shape_cast %111 : vector<1x256x4xf32> to vector<256x4xf32>
      %c0_79 = arith.constant 0 : index
      %c0_80 = arith.constant 0 : index
      %113 = vector.load %arg3[%c0_79, %c0_80] : memref<4x24xf32, #tpu.memory_space<vmem>>, vector<4x24xf32>
      %cst_81 = arith.constant dense<0.000000e+00> : vector<256x24xf32>
      %114 = tpu.matmul %112, %113, %cst_81 {dimension_numbers = #tpu.dot_dimension_numbers<[1], [0], [0], [1], [0, 0, 1, 1], [], []>} : vector<256x4xf32>, vector<4x24xf32>, vector<256x24xf32> -> vector<256x24xf32>
      %c0_82 = arith.constant 0 : index
      %c0_83 = arith.constant 0 : index
      %115 = vector.load %arg4[%c0_82, %c0_83] : memref<1x24xf32, #tpu.memory_space<vmem>>, vector<1x24xf32>
      %116 = vector.broadcast %115 : vector<1x24xf32> to vector<256x24xf32>
      %117 = arith.addf %114, %116 : vector<256x24xf32>
      %cst_84 = arith.constant 0.000000e+00 : f32
      %cst_85 = arith.constant 6.000000e+00 : f32
      %118 = vector.broadcast %cst_84 : f32 to vector<256x24xf32>
      %119 = arith.maximumf %118, %117 : vector<256x24xf32>
      %120 = vector.broadcast %cst_85 : f32 to vector<256x24xf32>
      %121 = arith.minimumf %120, %119 : vector<256x24xf32>
      %122 = vector.shape_cast %121 : vector<256x24xf32> to vector<16x16x24xf32>
      %c1_86 = arith.constant 1 : index
      %c1_87 = arith.constant 1 : index
      %c0_88 = arith.constant 0 : index
      %123 = vector.load %arg10[%c1_86, %c1_87, %c0_88] : memref<18x18x24xf32, #tpu.memory_space<vmem>>, vector<16x16x24xf32>
      tpu.vector_store %arg10[%c1_86, %c1_87, %c0_88], %122 {strides = array<i32>} : memref<18x18x24xf32, #tpu.memory_space<vmem>>, vector<16x16x24xf32>,
    } else {
    }
    %c8_i32 = arith.constant 8 : i32
    %3 = arith.muli %arg1, %c8_i32 : i32
    %c1_i32 = arith.constant 1 : i32
    %4 = arith.muli %3, %c1_i32 : i32
    %5 = tpu.assume_multiple %4, 8 : i32
    %cst = arith.constant 0.000000e+00 : f32
    %6 = vector.broadcast %cst : f32 to vector<8x16x24xf32>
    %c0_i32_1 = arith.constant 0 : i32
    %7 = arith.addi %5, %c0_i32_1 : i32
    %8 = arith.index_cast %7 : i32 to index
    %c0 = arith.constant 0 : index
    %c0_2 = arith.constant 0 : index
    %9 = vector.load %arg10[%8, %c0, %c0_2] : memref<18x18x24xf32, #tpu.memory_space<vmem>>, vector<8x16x24xf32>
    %c0_3 = arith.constant 0 : index
    %c0_4 = arith.constant 0 : index
    %c0_5 = arith.constant 0 : index
    %10 = vector.load %arg5[%c0_3, %c0_4, %c0_5] : memref<3x3x24xf32, #tpu.memory_space<vmem>>, vector<1x1x24xf32>
    %11 = vector.shape_cast %10 : vector<1x1x24xf32> to vector<24xf32>
    %12 = vector.shape_cast %11 : vector<24xf32> to vector<1x1x24xf32>
    %13 = vector.broadcast %12 : vector<1x1x24xf32> to vector<8x16x24xf32>
    %14 = arith.mulf %9, %13 : vector<8x16x24xf32>
    %15 = arith.addf %6, %14 : vector<8x16x24xf32>
    %c0_i32_6 = arith.constant 0 : i32
    %16 = arith.addi %5, %c0_i32_6 : i32
    %17 = arith.index_cast %16 : i32 to index
    %c1 = arith.constant 1 : index
    %c0_7 = arith.constant 0 : index
    %18 = vector.load %arg10[%17, %c1, %c0_7] : memref<18x18x24xf32, #tpu.memory_space<vmem>>, vector<8x16x24xf32>
    %c0_8 = arith.constant 0 : index
    %c1_9 = arith.constant 1 : index
    %c0_10 = arith.constant 0 : index
    %19 = vector.load %arg5[%c0_8, %c1_9, %c0_10] : memref<3x3x24xf32, #tpu.memory_space<vmem>>, vector<1x1x24xf32>
    %20 = vector.shape_cast %19 : vector<1x1x24xf32> to vector<24xf32>
    %21 = vector.shape_cast %20 : vector<24xf32> to vector<1x1x24xf32>
    %22 = vector.broadcast %21 : vector<1x1x24xf32> to vector<8x16x24xf32>
    %23 = arith.mulf %18, %22 : vector<8x16x24xf32>
    %24 = arith.addf %15, %23 : vector<8x16x24xf32>
    %c0_i32_11 = arith.constant 0 : i32
    %25 = arith.addi %5, %c0_i32_11 : i32
    %26 = arith.index_cast %25 : i32 to index
    %c2 = arith.constant 2 : index
    %c0_12 = arith.constant 0 : index
    %27 = vector.load %arg10[%26, %c2, %c0_12] : memref<18x18x24xf32, #tpu.memory_space<vmem>>, vector<8x16x24xf32>
    %c0_13 = arith.constant 0 : index
    %c2_14 = arith.constant 2 : index
    %c0_15 = arith.constant 0 : index
    %28 = vector.load %arg5[%c0_13, %c2_14, %c0_15] : memref<3x3x24xf32, #tpu.memory_space<vmem>>, vector<1x1x24xf32>
    %29 = vector.shape_cast %28 : vector<1x1x24xf32> to vector<24xf32>
    %30 = vector.shape_cast %29 : vector<24xf32> to vector<1x1x24xf32>
    %31 = vector.broadcast %30 : vector<1x1x24xf32> to vector<8x16x24xf32>
    %32 = arith.mulf %27, %31 : vector<8x16x24xf32>
    %33 = arith.addf %24, %32 : vector<8x16x24xf32>
    %c1_i32_16 = arith.constant 1 : i32
    %34 = arith.addi %5, %c1_i32_16 : i32
    %35 = arith.index_cast %34 : i32 to index
    %c0_17 = arith.constant 0 : index
    %c0_18 = arith.constant 0 : index
    %36 = vector.load %arg10[%35, %c0_17, %c0_18] : memref<18x18x24xf32, #tpu.memory_space<vmem>>, vector<8x16x24xf32>
    %c1_19 = arith.constant 1 : index
    %c0_20 = arith.constant 0 : index
    %c0_21 = arith.constant 0 : index
    %37 = vector.load %arg5[%c1_19, %c0_20, %c0_21] : memref<3x3x24xf32, #tpu.memory_space<vmem>>, vector<1x1x24xf32>
    %38 = vector.shape_cast %37 : vector<1x1x24xf32> to vector<24xf32>
    %39 = vector.shape_cast %38 : vector<24xf32> to vector<1x1x24xf32>
    %40 = vector.broadcast %39 : vector<1x1x24xf32> to vector<8x16x24xf32>
    %41 = arith.mulf %36, %40 : vector<8x16x24xf32>
    %42 = arith.addf %33, %41 : vector<8x16x24xf32>
    %c1_i32_22 = arith.constant 1 : i32
    %43 = arith.addi %5, %c1_i32_22 : i32
    %44 = arith.index_cast %43 : i32 to index
    %c1_23 = arith.constant 1 : index
    %c0_24 = arith.constant 0 : index
    %45 = vector.load %arg10[%44, %c1_23, %c0_24] : memref<18x18x24xf32, #tpu.memory_space<vmem>>, vector<8x16x24xf32>
    %c1_25 = arith.constant 1 : index
    %c1_26 = arith.constant 1 : index
    %c0_27 = arith.constant 0 : index
    %46 = vector.load %arg5[%c1_25, %c1_26, %c0_27] : memref<3x3x24xf32, #tpu.memory_space<vmem>>, vector<1x1x24xf32>
    %47 = vector.shape_cast %46 : vector<1x1x24xf32> to vector<24xf32>
    %48 = vector.shape_cast %47 : vector<24xf32> to vector<1x1x24xf32>
    %49 = vector.broadcast %48 : vector<1x1x24xf32> to vector<8x16x24xf32>
    %50 = arith.mulf %45, %49 : vector<8x16x24xf32>
    %51 = arith.addf %42, %50 : vector<8x16x24xf32>
    %c1_i32_28 = arith.constant 1 : i32
    %52 = arith.addi %5, %c1_i32_28 : i32
    %53 = arith.index_cast %52 : i32 to index
    %c2_29 = arith.constant 2 : index
    %c0_30 = arith.constant 0 : index
    %54 = vector.load %arg10[%53, %c2_29, %c0_30] : memref<18x18x24xf32, #tpu.memory_space<vmem>>, vector<8x16x24xf32>
    %c1_31 = arith.constant 1 : index
    %c2_32 = arith.constant 2 : index
    %c0_33 = arith.constant 0 : index
    %55 = vector.load %arg5[%c1_31, %c2_32, %c0_33] : memref<3x3x24xf32, #tpu.memory_space<vmem>>, vector<1x1x24xf32>
    %56 = vector.shape_cast %55 : vector<1x1x24xf32> to vector<24xf32>
    %57 = vector.shape_cast %56 : vector<24xf32> to vector<1x1x24xf32>
    %58 = vector.broadcast %57 : vector<1x1x24xf32> to vector<8x16x24xf32>
    %59 = arith.mulf %54, %58 : vector<8x16x24xf32>
    %60 = arith.addf %51, %59 : vector<8x16x24xf32>
    %c2_i32 = arith.constant 2 : i32
    %61 = arith.addi %5, %c2_i32 : i32
    %62 = arith.index_cast %61 : i32 to index
    %c0_34 = arith.constant 0 : index
    %c0_35 = arith.constant 0 : index
    %63 = vector.load %arg10[%62, %c0_34, %c0_35] : memref<18x18x24xf32, #tpu.memory_space<vmem>>, vector<8x16x24xf32>
    %c2_36 = arith.constant 2 : index
    %c0_37 = arith.constant 0 : index
    %c0_38 = arith.constant 0 : index
    %64 = vector.load %arg5[%c2_36, %c0_37, %c0_38] : memref<3x3x24xf32, #tpu.memory_space<vmem>>, vector<1x1x24xf32>
    %65 = vector.shape_cast %64 : vector<1x1x24xf32> to vector<24xf32>
    %66 = vector.shape_cast %65 : vector<24xf32> to vector<1x1x24xf32>
    %67 = vector.broadcast %66 : vector<1x1x24xf32> to vector<8x16x24xf32>
    %68 = arith.mulf %63, %67 : vector<8x16x24xf32>
    %69 = arith.addf %60, %68 : vector<8x16x24xf32>
    %c2_i32_39 = arith.constant 2 : i32
    %70 = arith.addi %5, %c2_i32_39 : i32
    %71 = arith.index_cast %70 : i32 to index
    %c1_40 = arith.constant 1 : index
    %c0_41 = arith.constant 0 : index
    %72 = vector.load %arg10[%71, %c1_40, %c0_41] : memref<18x18x24xf32, #tpu.memory_space<vmem>>, vector<8x16x24xf32>
    %c2_42 = arith.constant 2 : index
    %c1_43 = arith.constant 1 : index
    %c0_44 = arith.constant 0 : index
    %73 = vector.load %arg5[%c2_42, %c1_43, %c0_44] : memref<3x3x24xf32, #tpu.memory_space<vmem>>, vector<1x1x24xf32>
    %74 = vector.shape_cast %73 : vector<1x1x24xf32> to vector<24xf32>
    %75 = vector.shape_cast %74 : vector<24xf32> to vector<1x1x24xf32>
    %76 = vector.broadcast %75 : vector<1x1x24xf32> to vector<8x16x24xf32>
    %77 = arith.mulf %72, %76 : vector<8x16x24xf32>
    %78 = arith.addf %69, %77 : vector<8x16x24xf32>
    %c2_i32_45 = arith.constant 2 : i32
    %79 = arith.addi %5, %c2_i32_45 : i32
    %80 = arith.index_cast %79 : i32 to index
    %c2_46 = arith.constant 2 : index
    %c0_47 = arith.constant 0 : index
    %81 = vector.load %arg10[%80, %c2_46, %c0_47] : memref<18x18x24xf32, #tpu.memory_space<vmem>>, vector<8x16x24xf32>
    %c2_48 = arith.constant 2 : index
    %c2_49 = arith.constant 2 : index
    %c0_50 = arith.constant 0 : index
    %82 = vector.load %arg5[%c2_48, %c2_49, %c0_50] : memref<3x3x24xf32, #tpu.memory_space<vmem>>, vector<1x1x24xf32>
    %83 = vector.shape_cast %82 : vector<1x1x24xf32> to vector<24xf32>
    %84 = vector.shape_cast %83 : vector<24xf32> to vector<1x1x24xf32>
    %85 = vector.broadcast %84 : vector<1x1x24xf32> to vector<8x16x24xf32>
    %86 = arith.mulf %81, %85 : vector<8x16x24xf32>
    %87 = arith.addf %78, %86 : vector<8x16x24xf32>
    %c0_51 = arith.constant 0 : index
    %c0_52 = arith.constant 0 : index
    %88 = vector.load %arg6[%c0_51, %c0_52] : memref<1x24xf32, #tpu.memory_space<vmem>>, vector<1x24xf32>
    %89 = vector.shape_cast %88 : vector<1x24xf32> to vector<1x1x24xf32>
    %90 = vector.broadcast %89 : vector<1x1x24xf32> to vector<8x16x24xf32>
    %91 = arith.addf %87, %90 : vector<8x16x24xf32>
    %cst_53 = arith.constant 0.000000e+00 : f32
    %cst_54 = arith.constant 6.000000e+00 : f32
    %92 = vector.broadcast %cst_53 : f32 to vector<8x16x24xf32>
    %93 = arith.maximumf %92, %91 : vector<8x16x24xf32>
    %94 = vector.broadcast %cst_54 : f32 to vector<8x16x24xf32>
    %95 = arith.minimumf %94, %93 : vector<8x16x24xf32>
    %96 = vector.shape_cast %95 : vector<8x16x24xf32> to vector<128x24xf32>
    %c0_55 = arith.constant 0 : index
    %c0_56 = arith.constant 0 : index
    %97 = vector.load %arg7[%c0_55, %c0_56] : memref<24x8xf32, #tpu.memory_space<vmem>>, vector<24x8xf32>
    %cst_57 = arith.constant dense<0.000000e+00> : vector<128x8xf32>
    %98 = tpu.matmul %96, %97, %cst_57 {dimension_numbers = #tpu.dot_dimension_numbers<[1], [0], [0], [1], [0, 0, 1, 1], [], []>} : vector<128x24xf32>, vector<24x8xf32>, vector<128x8xf32> -> vector<128x8xf32>
    %c0_58 = arith.constant 0 : index
    %c0_59 = arith.constant 0 : index
    %99 = vector.load %arg8[%c0_58, %c0_59] : memref<1x8xf32, #tpu.memory_space<vmem>>, vector<1x8xf32>
    %100 = vector.broadcast %99 : vector<1x8xf32> to vector<128x8xf32>
    %101 = arith.addf %98, %100 : vector<128x8xf32>
    %c0_60 = arith.constant 0 : index
    %c0_61 = arith.constant 0 : index
    %c0_62 = arith.constant 0 : index
    %102 = vector.load %arg9[%c0_60, %c0_61, %c0_62] : memref<1x128x8xf32, #tpu.memory_space<vmem>>, vector<1x128x8xf32>
    %103 = vector.shape_cast %102 : vector<1x128x8xf32> to vector<128x8xf32>
    %104 = vector.shape_cast %101 : vector<128x8xf32> to vector<1x128x8xf32>
    tpu.vector_store %arg9[%c0_60, %c0_61, %c0_62], %104 {strides = array<i32>} : memref<1x128x8xf32, #tpu.memory_space<vmem>>, vector<1x128x8xf32>,
    return
  }
  func.func @transform_0(%arg0: i32, %arg1: i32) -> (i32, i32, i32) {
    %c0_i32 = arith.constant 0 : i32
    %c0_i32_0 = arith.constant 0 : i32
    %c0_i32_1 = arith.constant 0 : i32
    return %arg0, %c0_i32, %c0_i32_0 : i32, i32, i32
  }
  func.func @transform_1(%arg0: i32, %arg1: i32) -> (i32, i32) {
    %c0_i32 = arith.constant 0 : i32
    %c0_i32_0 = arith.constant 0 : i32
    %c0_i32_1 = arith.constant 0 : i32
    return %c0_i32, %c0_i32_0 : i32, i32
  }
  func.func @transform_2(%arg0: i32, %arg1: i32) -> (i32, i32) {
    %c0_i32 = arith.constant 0 : i32
    %c0_i32_0 = arith.constant 0 : i32
    %c0_i32_1 = arith.constant 0 : i32
    return %c0_i32, %c0_i32_0 : i32, i32
  }
  func.func @transform_3(%arg0: i32, %arg1: i32) -> (i32, i32, i32) {
    %c0_i32 = arith.constant 0 : i32
    %c0_i32_0 = arith.constant 0 : i32
    %c0_i32_1 = arith.constant 0 : i32
    %c0_i32_2 = arith.constant 0 : i32
    return %c0_i32, %c0_i32_0, %c0_i32_1 : i32, i32, i32
  }
  func.func @transform_4(%arg0: i32, %arg1: i32) -> (i32, i32) {
    %c0_i32 = arith.constant 0 : i32
    %c0_i32_0 = arith.constant 0 : i32
    %c0_i32_1 = arith.constant 0 : i32
    return %c0_i32, %c0_i32_0 : i32, i32
  }
  func.func @transform_5(%arg0: i32, %arg1: i32) -> (i32, i32) {
    %c0_i32 = arith.constant 0 : i32
    %c0_i32_0 = arith.constant 0 : i32
    %c0_i32_1 = arith.constant 0 : i32
    return %c0_i32, %c0_i32_0 : i32, i32
  }
  func.func @transform_6(%arg0: i32, %arg1: i32) -> (i32, i32) {
    %c0_i32 = arith.constant 0 : i32
    %c0_i32_0 = arith.constant 0 : i32
    %c0_i32_1 = arith.constant 0 : i32
    return %c0_i32, %c0_i32_0 : i32, i32
  }
  func.func @transform_7(%arg0: i32, %arg1: i32) -> (i32, i32, i32) {
    %c0_i32 = arith.constant 0 : i32
    %c0_i32_0 = arith.constant 0 : i32
    return %arg0, %arg1, %c0_i32 : i32, i32, i32
  }
}

module attributes {stable_mosaic.version = 11 : i64} {
  func.func @_block_kernel(%arg0: i32, %arg1: i32, %arg2: memref<1x256x8xf32, #tpu.memory_space<vmem>>, %arg3: memref<8x48xf32, #tpu.memory_space<vmem>>, %arg4: memref<1x48xf32, #tpu.memory_space<vmem>>, %arg5: memref<3x3x48xf32, #tpu.memory_space<vmem>>, %arg6: memref<1x48xf32, #tpu.memory_space<vmem>>, %arg7: memref<48x8xf32, #tpu.memory_space<vmem>>, %arg8: memref<1x8xf32, #tpu.memory_space<vmem>>, %arg9: memref<1x128x8xf32, #tpu.memory_space<vmem>>, %arg10: memref<18x18x48xf32, #tpu.memory_space<vmem>>) attributes {dimension_semantics = [#tpu.dimension_semantics<parallel>, #tpu.dimension_semantics<arbitrary>], iteration_bounds = array<i64: 2, 2>, scalar_prefetch = 0 : i64, scratch_operands = 1 : i64, tpu.core_type = #tpu.core_type<tc>, window_params = [{transform_indices = @transform_0, window_bounds = array<i64: 1, 256, 8>}, {pipeline_mode = #tpu.pipeline_mode<synchronous>, transform_indices = @transform_1, window_bounds = array<i64: 8, 48>}, {pipeline_mode = #tpu.pipeline_mode<synchronous>, transform_indices = @transform_2, window_bounds = array<i64: 1, 48>}, {pipeline_mode = #tpu.pipeline_mode<synchronous>, transform_indices = @transform_3, window_bounds = array<i64: 3, 3, 48>}, {pipeline_mode = #tpu.pipeline_mode<synchronous>, transform_indices = @transform_4, window_bounds = array<i64: 1, 48>}, {pipeline_mode = #tpu.pipeline_mode<synchronous>, transform_indices = @transform_5, window_bounds = array<i64: 48, 8>}, {pipeline_mode = #tpu.pipeline_mode<synchronous>, transform_indices = @transform_6, window_bounds = array<i64: 1, 8>}, {transform_indices = @transform_7, window_bounds = array<i64: 1, 128, 8>}]} {
    %c0_i32 = arith.constant 0 : i32
    %0 = arith.cmpi eq, %arg1, %c0_i32 : i32
    %1 = arith.extui %0 : i1 to i32
    %c0_i32_0 = arith.constant 0 : i32
    %2 = arith.cmpi ne, %1, %c0_i32_0 : i32
    scf.if %2 {
      %cst_65 = arith.constant 0.000000e+00 : f32
      %111 = vector.broadcast %cst_65 : f32 to vector<1x18x48xf32>
      %c0_66 = arith.constant 0 : index
      %c0_67 = arith.constant 0 : index
      %c0_68 = arith.constant 0 : index
      %112 = vector.load %arg10[%c0_66, %c0_67, %c0_68] : memref<18x18x48xf32, #tpu.memory_space<vmem>>, vector<1x18x48xf32>
      tpu.vector_store %arg10[%c0_66, %c0_67, %c0_68], %111 {strides = array<i32>} : memref<18x18x48xf32, #tpu.memory_space<vmem>>, vector<1x18x48xf32>,
      %c17 = arith.constant 17 : index
      %c0_69 = arith.constant 0 : index
      %c0_70 = arith.constant 0 : index
      %113 = vector.load %arg10[%c17, %c0_69, %c0_70] : memref<18x18x48xf32, #tpu.memory_space<vmem>>, vector<1x18x48xf32>
      tpu.vector_store %arg10[%c17, %c0_69, %c0_70], %111 {strides = array<i32>} : memref<18x18x48xf32, #tpu.memory_space<vmem>>, vector<1x18x48xf32>,
      %cst_71 = arith.constant 0.000000e+00 : f32
      %114 = vector.broadcast %cst_71 : f32 to vector<18x1x48xf32>
      %c0_72 = arith.constant 0 : index
      %c0_73 = arith.constant 0 : index
      %c0_74 = arith.constant 0 : index
      %115 = vector.load %arg10[%c0_72, %c0_73, %c0_74] : memref<18x18x48xf32, #tpu.memory_space<vmem>>, vector<18x1x48xf32>
      tpu.vector_store %arg10[%c0_72, %c0_73, %c0_74], %114 {strides = array<i32>} : memref<18x18x48xf32, #tpu.memory_space<vmem>>, vector<18x1x48xf32>,
      %c0_75 = arith.constant 0 : index
      %c17_76 = arith.constant 17 : index
      %c0_77 = arith.constant 0 : index
      %116 = vector.load %arg10[%c0_75, %c17_76, %c0_77] : memref<18x18x48xf32, #tpu.memory_space<vmem>>, vector<18x1x48xf32>
      tpu.vector_store %arg10[%c0_75, %c17_76, %c0_77], %114 {strides = array<i32>} : memref<18x18x48xf32, #tpu.memory_space<vmem>>, vector<18x1x48xf32>,
      %c0_78 = arith.constant 0 : index
      %c0_79 = arith.constant 0 : index
      %c0_80 = arith.constant 0 : index
      %117 = vector.load %arg2[%c0_78, %c0_79, %c0_80] : memref<1x256x8xf32, #tpu.memory_space<vmem>>, vector<1x256x8xf32>
      %118 = vector.shape_cast %117 : vector<1x256x8xf32> to vector<256x8xf32>
      %c0_81 = arith.constant 0 : index
      %c0_82 = arith.constant 0 : index
      %119 = vector.load %arg3[%c0_81, %c0_82] : memref<8x48xf32, #tpu.memory_space<vmem>>, vector<8x48xf32>
      %cst_83 = arith.constant dense<0.000000e+00> : vector<256x48xf32>
      %120 = tpu.matmul %118, %119, %cst_83 {dimension_numbers = #tpu.dot_dimension_numbers<[1], [0], [0], [1], [0, 0, 1, 1], [], []>} : vector<256x8xf32>, vector<8x48xf32>, vector<256x48xf32> -> vector<256x48xf32>
      %c0_84 = arith.constant 0 : index
      %c0_85 = arith.constant 0 : index
      %121 = vector.load %arg4[%c0_84, %c0_85] : memref<1x48xf32, #tpu.memory_space<vmem>>, vector<1x48xf32>
      %122 = vector.broadcast %121 : vector<1x48xf32> to vector<256x48xf32>
      %123 = arith.addf %120, %122 : vector<256x48xf32>
      %cst_86 = arith.constant 0.000000e+00 : f32
      %cst_87 = arith.constant 6.000000e+00 : f32
      %124 = vector.broadcast %cst_86 : f32 to vector<256x48xf32>
      %125 = arith.maximumf %124, %123 : vector<256x48xf32>
      %126 = vector.broadcast %cst_87 : f32 to vector<256x48xf32>
      %127 = arith.minimumf %126, %125 : vector<256x48xf32>
      %128 = vector.shape_cast %127 : vector<256x48xf32> to vector<16x16x48xf32>
      %c1_88 = arith.constant 1 : index
      %c1_89 = arith.constant 1 : index
      %c0_90 = arith.constant 0 : index
      %129 = vector.load %arg10[%c1_88, %c1_89, %c0_90] : memref<18x18x48xf32, #tpu.memory_space<vmem>>, vector<16x16x48xf32>
      tpu.vector_store %arg10[%c1_88, %c1_89, %c0_90], %128 {strides = array<i32>} : memref<18x18x48xf32, #tpu.memory_space<vmem>>, vector<16x16x48xf32>,
    } else {
    }
    %c8_i32 = arith.constant 8 : i32
    %3 = arith.muli %arg1, %c8_i32 : i32
    %c1_i32 = arith.constant 1 : i32
    %4 = arith.muli %3, %c1_i32 : i32
    %5 = tpu.assume_multiple %4, 8 : i32
    %cst = arith.constant 0.000000e+00 : f32
    %6 = vector.broadcast %cst : f32 to vector<8x16x48xf32>
    %c0_i32_1 = arith.constant 0 : i32
    %7 = arith.addi %5, %c0_i32_1 : i32
    %8 = arith.index_cast %7 : i32 to index
    %c0 = arith.constant 0 : index
    %c0_2 = arith.constant 0 : index
    %9 = vector.load %arg10[%8, %c0, %c0_2] : memref<18x18x48xf32, #tpu.memory_space<vmem>>, vector<8x16x48xf32>
    %c0_3 = arith.constant 0 : index
    %c0_4 = arith.constant 0 : index
    %c0_5 = arith.constant 0 : index
    %10 = vector.load %arg5[%c0_3, %c0_4, %c0_5] : memref<3x3x48xf32, #tpu.memory_space<vmem>>, vector<1x1x48xf32>
    %11 = vector.shape_cast %10 : vector<1x1x48xf32> to vector<48xf32>
    %12 = vector.shape_cast %11 : vector<48xf32> to vector<1x1x48xf32>
    %13 = vector.broadcast %12 : vector<1x1x48xf32> to vector<8x16x48xf32>
    %14 = arith.mulf %9, %13 : vector<8x16x48xf32>
    %15 = arith.addf %6, %14 : vector<8x16x48xf32>
    %c0_i32_6 = arith.constant 0 : i32
    %16 = arith.addi %5, %c0_i32_6 : i32
    %17 = arith.index_cast %16 : i32 to index
    %c1 = arith.constant 1 : index
    %c0_7 = arith.constant 0 : index
    %18 = vector.load %arg10[%17, %c1, %c0_7] : memref<18x18x48xf32, #tpu.memory_space<vmem>>, vector<8x16x48xf32>
    %c0_8 = arith.constant 0 : index
    %c1_9 = arith.constant 1 : index
    %c0_10 = arith.constant 0 : index
    %19 = vector.load %arg5[%c0_8, %c1_9, %c0_10] : memref<3x3x48xf32, #tpu.memory_space<vmem>>, vector<1x1x48xf32>
    %20 = vector.shape_cast %19 : vector<1x1x48xf32> to vector<48xf32>
    %21 = vector.shape_cast %20 : vector<48xf32> to vector<1x1x48xf32>
    %22 = vector.broadcast %21 : vector<1x1x48xf32> to vector<8x16x48xf32>
    %23 = arith.mulf %18, %22 : vector<8x16x48xf32>
    %24 = arith.addf %15, %23 : vector<8x16x48xf32>
    %c0_i32_11 = arith.constant 0 : i32
    %25 = arith.addi %5, %c0_i32_11 : i32
    %26 = arith.index_cast %25 : i32 to index
    %c2 = arith.constant 2 : index
    %c0_12 = arith.constant 0 : index
    %27 = vector.load %arg10[%26, %c2, %c0_12] : memref<18x18x48xf32, #tpu.memory_space<vmem>>, vector<8x16x48xf32>
    %c0_13 = arith.constant 0 : index
    %c2_14 = arith.constant 2 : index
    %c0_15 = arith.constant 0 : index
    %28 = vector.load %arg5[%c0_13, %c2_14, %c0_15] : memref<3x3x48xf32, #tpu.memory_space<vmem>>, vector<1x1x48xf32>
    %29 = vector.shape_cast %28 : vector<1x1x48xf32> to vector<48xf32>
    %30 = vector.shape_cast %29 : vector<48xf32> to vector<1x1x48xf32>
    %31 = vector.broadcast %30 : vector<1x1x48xf32> to vector<8x16x48xf32>
    %32 = arith.mulf %27, %31 : vector<8x16x48xf32>
    %33 = arith.addf %24, %32 : vector<8x16x48xf32>
    %c1_i32_16 = arith.constant 1 : i32
    %34 = arith.addi %5, %c1_i32_16 : i32
    %35 = arith.index_cast %34 : i32 to index
    %c0_17 = arith.constant 0 : index
    %c0_18 = arith.constant 0 : index
    %36 = vector.load %arg10[%35, %c0_17, %c0_18] : memref<18x18x48xf32, #tpu.memory_space<vmem>>, vector<8x16x48xf32>
    %c1_19 = arith.constant 1 : index
    %c0_20 = arith.constant 0 : index
    %c0_21 = arith.constant 0 : index
    %37 = vector.load %arg5[%c1_19, %c0_20, %c0_21] : memref<3x3x48xf32, #tpu.memory_space<vmem>>, vector<1x1x48xf32>
    %38 = vector.shape_cast %37 : vector<1x1x48xf32> to vector<48xf32>
    %39 = vector.shape_cast %38 : vector<48xf32> to vector<1x1x48xf32>
    %40 = vector.broadcast %39 : vector<1x1x48xf32> to vector<8x16x48xf32>
    %41 = arith.mulf %36, %40 : vector<8x16x48xf32>
    %42 = arith.addf %33, %41 : vector<8x16x48xf32>
    %c1_i32_22 = arith.constant 1 : i32
    %43 = arith.addi %5, %c1_i32_22 : i32
    %44 = arith.index_cast %43 : i32 to index
    %c1_23 = arith.constant 1 : index
    %c0_24 = arith.constant 0 : index
    %45 = vector.load %arg10[%44, %c1_23, %c0_24] : memref<18x18x48xf32, #tpu.memory_space<vmem>>, vector<8x16x48xf32>
    %c1_25 = arith.constant 1 : index
    %c1_26 = arith.constant 1 : index
    %c0_27 = arith.constant 0 : index
    %46 = vector.load %arg5[%c1_25, %c1_26, %c0_27] : memref<3x3x48xf32, #tpu.memory_space<vmem>>, vector<1x1x48xf32>
    %47 = vector.shape_cast %46 : vector<1x1x48xf32> to vector<48xf32>
    %48 = vector.shape_cast %47 : vector<48xf32> to vector<1x1x48xf32>
    %49 = vector.broadcast %48 : vector<1x1x48xf32> to vector<8x16x48xf32>
    %50 = arith.mulf %45, %49 : vector<8x16x48xf32>
    %51 = arith.addf %42, %50 : vector<8x16x48xf32>
    %c1_i32_28 = arith.constant 1 : i32
    %52 = arith.addi %5, %c1_i32_28 : i32
    %53 = arith.index_cast %52 : i32 to index
    %c2_29 = arith.constant 2 : index
    %c0_30 = arith.constant 0 : index
    %54 = vector.load %arg10[%53, %c2_29, %c0_30] : memref<18x18x48xf32, #tpu.memory_space<vmem>>, vector<8x16x48xf32>
    %c1_31 = arith.constant 1 : index
    %c2_32 = arith.constant 2 : index
    %c0_33 = arith.constant 0 : index
    %55 = vector.load %arg5[%c1_31, %c2_32, %c0_33] : memref<3x3x48xf32, #tpu.memory_space<vmem>>, vector<1x1x48xf32>
    %56 = vector.shape_cast %55 : vector<1x1x48xf32> to vector<48xf32>
    %57 = vector.shape_cast %56 : vector<48xf32> to vector<1x1x48xf32>
    %58 = vector.broadcast %57 : vector<1x1x48xf32> to vector<8x16x48xf32>
    %59 = arith.mulf %54, %58 : vector<8x16x48xf32>
    %60 = arith.addf %51, %59 : vector<8x16x48xf32>
    %c2_i32 = arith.constant 2 : i32
    %61 = arith.addi %5, %c2_i32 : i32
    %62 = arith.index_cast %61 : i32 to index
    %c0_34 = arith.constant 0 : index
    %c0_35 = arith.constant 0 : index
    %63 = vector.load %arg10[%62, %c0_34, %c0_35] : memref<18x18x48xf32, #tpu.memory_space<vmem>>, vector<8x16x48xf32>
    %c2_36 = arith.constant 2 : index
    %c0_37 = arith.constant 0 : index
    %c0_38 = arith.constant 0 : index
    %64 = vector.load %arg5[%c2_36, %c0_37, %c0_38] : memref<3x3x48xf32, #tpu.memory_space<vmem>>, vector<1x1x48xf32>
    %65 = vector.shape_cast %64 : vector<1x1x48xf32> to vector<48xf32>
    %66 = vector.shape_cast %65 : vector<48xf32> to vector<1x1x48xf32>
    %67 = vector.broadcast %66 : vector<1x1x48xf32> to vector<8x16x48xf32>
    %68 = arith.mulf %63, %67 : vector<8x16x48xf32>
    %69 = arith.addf %60, %68 : vector<8x16x48xf32>
    %c2_i32_39 = arith.constant 2 : i32
    %70 = arith.addi %5, %c2_i32_39 : i32
    %71 = arith.index_cast %70 : i32 to index
    %c1_40 = arith.constant 1 : index
    %c0_41 = arith.constant 0 : index
    %72 = vector.load %arg10[%71, %c1_40, %c0_41] : memref<18x18x48xf32, #tpu.memory_space<vmem>>, vector<8x16x48xf32>
    %c2_42 = arith.constant 2 : index
    %c1_43 = arith.constant 1 : index
    %c0_44 = arith.constant 0 : index
    %73 = vector.load %arg5[%c2_42, %c1_43, %c0_44] : memref<3x3x48xf32, #tpu.memory_space<vmem>>, vector<1x1x48xf32>
    %74 = vector.shape_cast %73 : vector<1x1x48xf32> to vector<48xf32>
    %75 = vector.shape_cast %74 : vector<48xf32> to vector<1x1x48xf32>
    %76 = vector.broadcast %75 : vector<1x1x48xf32> to vector<8x16x48xf32>
    %77 = arith.mulf %72, %76 : vector<8x16x48xf32>
    %78 = arith.addf %69, %77 : vector<8x16x48xf32>
    %c2_i32_45 = arith.constant 2 : i32
    %79 = arith.addi %5, %c2_i32_45 : i32
    %80 = arith.index_cast %79 : i32 to index
    %c2_46 = arith.constant 2 : index
    %c0_47 = arith.constant 0 : index
    %81 = vector.load %arg10[%80, %c2_46, %c0_47] : memref<18x18x48xf32, #tpu.memory_space<vmem>>, vector<8x16x48xf32>
    %c2_48 = arith.constant 2 : index
    %c2_49 = arith.constant 2 : index
    %c0_50 = arith.constant 0 : index
    %82 = vector.load %arg5[%c2_48, %c2_49, %c0_50] : memref<3x3x48xf32, #tpu.memory_space<vmem>>, vector<1x1x48xf32>
    %83 = vector.shape_cast %82 : vector<1x1x48xf32> to vector<48xf32>
    %84 = vector.shape_cast %83 : vector<48xf32> to vector<1x1x48xf32>
    %85 = vector.broadcast %84 : vector<1x1x48xf32> to vector<8x16x48xf32>
    %86 = arith.mulf %81, %85 : vector<8x16x48xf32>
    %87 = arith.addf %78, %86 : vector<8x16x48xf32>
    %c0_51 = arith.constant 0 : index
    %c0_52 = arith.constant 0 : index
    %88 = vector.load %arg6[%c0_51, %c0_52] : memref<1x48xf32, #tpu.memory_space<vmem>>, vector<1x48xf32>
    %89 = vector.shape_cast %88 : vector<1x48xf32> to vector<1x1x48xf32>
    %90 = vector.broadcast %89 : vector<1x1x48xf32> to vector<8x16x48xf32>
    %91 = arith.addf %87, %90 : vector<8x16x48xf32>
    %cst_53 = arith.constant 0.000000e+00 : f32
    %cst_54 = arith.constant 6.000000e+00 : f32
    %92 = vector.broadcast %cst_53 : f32 to vector<8x16x48xf32>
    %93 = arith.maximumf %92, %91 : vector<8x16x48xf32>
    %94 = vector.broadcast %cst_54 : f32 to vector<8x16x48xf32>
    %95 = arith.minimumf %94, %93 : vector<8x16x48xf32>
    %96 = vector.shape_cast %95 : vector<8x16x48xf32> to vector<128x48xf32>
    %c0_55 = arith.constant 0 : index
    %c0_56 = arith.constant 0 : index
    %97 = vector.load %arg7[%c0_55, %c0_56] : memref<48x8xf32, #tpu.memory_space<vmem>>, vector<48x8xf32>
    %cst_57 = arith.constant dense<0.000000e+00> : vector<128x8xf32>
    %98 = tpu.matmul %96, %97, %cst_57 {dimension_numbers = #tpu.dot_dimension_numbers<[1], [0], [0], [1], [0, 0, 1, 1], [], []>} : vector<128x48xf32>, vector<48x8xf32>, vector<128x8xf32> -> vector<128x8xf32>
    %c0_58 = arith.constant 0 : index
    %c0_59 = arith.constant 0 : index
    %99 = vector.load %arg8[%c0_58, %c0_59] : memref<1x8xf32, #tpu.memory_space<vmem>>, vector<1x8xf32>
    %100 = vector.broadcast %99 : vector<1x8xf32> to vector<128x8xf32>
    %101 = arith.addf %98, %100 : vector<128x8xf32>
    %c16_i32 = arith.constant 16 : i32
    %102 = arith.muli %3, %c16_i32 : i32
    %103 = tpu.assume_multiple %102, 128 : i32
    %c0_60 = arith.constant 0 : index
    %104 = arith.index_cast %103 : i32 to index
    %c0_61 = arith.constant 0 : index
    %105 = vector.load %arg2[%c0_60, %104, %c0_61] : memref<1x256x8xf32, #tpu.memory_space<vmem>>, vector<1x128x8xf32>
    %106 = vector.shape_cast %105 : vector<1x128x8xf32> to vector<128x8xf32>
    %107 = arith.addf %101, %106 : vector<128x8xf32>
    %c0_62 = arith.constant 0 : index
    %c0_63 = arith.constant 0 : index
    %c0_64 = arith.constant 0 : index
    %108 = vector.load %arg9[%c0_62, %c0_63, %c0_64] : memref<1x128x8xf32, #tpu.memory_space<vmem>>, vector<1x128x8xf32>
    %109 = vector.shape_cast %108 : vector<1x128x8xf32> to vector<128x8xf32>
    %110 = vector.shape_cast %107 : vector<128x8xf32> to vector<1x128x8xf32>
    tpu.vector_store %arg9[%c0_62, %c0_63, %c0_64], %110 {strides = array<i32>} : memref<1x128x8xf32, #tpu.memory_space<vmem>>, vector<1x128x8xf32>,
    return
  }
  func.func @transform_0(%arg0: i32, %arg1: i32) -> (i32, i32, i32) {
    %c0_i32 = arith.constant 0 : i32
    %c0_i32_0 = arith.constant 0 : i32
    %c0_i32_1 = arith.constant 0 : i32
    return %arg0, %c0_i32, %c0_i32_0 : i32, i32, i32
  }
  func.func @transform_1(%arg0: i32, %arg1: i32) -> (i32, i32) {
    %c0_i32 = arith.constant 0 : i32
    %c0_i32_0 = arith.constant 0 : i32
    %c0_i32_1 = arith.constant 0 : i32
    return %c0_i32, %c0_i32_0 : i32, i32
  }
  func.func @transform_2(%arg0: i32, %arg1: i32) -> (i32, i32) {
    %c0_i32 = arith.constant 0 : i32
    %c0_i32_0 = arith.constant 0 : i32
    %c0_i32_1 = arith.constant 0 : i32
    return %c0_i32, %c0_i32_0 : i32, i32
  }
  func.func @transform_3(%arg0: i32, %arg1: i32) -> (i32, i32, i32) {
    %c0_i32 = arith.constant 0 : i32
    %c0_i32_0 = arith.constant 0 : i32
    %c0_i32_1 = arith.constant 0 : i32
    %c0_i32_2 = arith.constant 0 : i32
    return %c0_i32, %c0_i32_0, %c0_i32_1 : i32, i32, i32
  }
  func.func @transform_4(%arg0: i32, %arg1: i32) -> (i32, i32) {
    %c0_i32 = arith.constant 0 : i32
    %c0_i32_0 = arith.constant 0 : i32
    %c0_i32_1 = arith.constant 0 : i32
    return %c0_i32, %c0_i32_0 : i32, i32
  }
  func.func @transform_5(%arg0: i32, %arg1: i32) -> (i32, i32) {
    %c0_i32 = arith.constant 0 : i32
    %c0_i32_0 = arith.constant 0 : i32
    %c0_i32_1 = arith.constant 0 : i32
    return %c0_i32, %c0_i32_0 : i32, i32
  }
  func.func @transform_6(%arg0: i32, %arg1: i32) -> (i32, i32) {
    %c0_i32 = arith.constant 0 : i32
    %c0_i32_0 = arith.constant 0 : i32
    %c0_i32_1 = arith.constant 0 : i32
    return %c0_i32, %c0_i32_0 : i32, i32
  }
  func.func @transform_7(%arg0: i32, %arg1: i32) -> (i32, i32, i32) {
    %c0_i32 = arith.constant 0 : i32
    %c0_i32_0 = arith.constant 0 : i32
    return %arg0, %arg1, %c0_i32 : i32, i32, i32
  }
}

</mosaic_0001>

<bundles_post_ra>
// kernel: _lambda_.3
= control target key start
LH: loop header
LB: loop body
LE: loop exit
PB: predicated region body
PF: predicated region fallthrough
CT: control target
= control target key end

     0   :  { %s1806_s24 = smov 0   ;;  %s1808_s25 = smov 0   ;;  %s2694_s0 = inlined_call_operand.vmem [shape: f32[2,256,8], index: 0, kind: input, shape index: {}]   ;;  %s2695_s1 = inlined_call_operand.vmem [shape: f32[8,48], index: 1, kind: input, shape index: {}]   ;;  %s2696_s2 = inlined_call_operand.vmem [shape: f32[1,48], index: 2, kind: input, shape index: {}]   ;;  %s2697_s3 = inlined_call_operand.vmem [shape: f32[3,3,48], index: 3, kind: input, shape index: {}]   ;;  %s2698_s4 = inlined_call_operand.vmem [shape: f32[1,48], index: 4, kind: input, shape index: {}]   ;;  %s2699_s5 = inlined_call_operand.vmem [shape: f32[48,8], index: 5, kind: input, shape index: {}]   ;;  %s2700_s6 = inlined_call_operand.vmem [shape: f32[1,8], index: 6, kind: input, shape index: {}]   ;;  %s2701_s7 = inlined_call_operand.vmem [shape: f32[2,256,8], index: 7, kind: output, shape index: {}]  }
   0x1   :  { %s1810_s26 = smov 0   ;;  %s1812_s27 = smov 0  }
   0x2   :  { %s1814_s28 = smov 0  }
   0x3 LB: > { %s26_s29 = sadd.s32 1, %s1755_s26  ;;  %s29_s30 = sadd.s32 1, %s1759_s27  ;;  %s1763_s28 = sphi %s1814_s28, %s17_s28   ;;  %s1759_s27 = sphi %s1812_s27, %s2763_s27   ;;  %s1755_s26 = sphi %s1810_s26, %s2762_s26   ;;  %s1751_s25 = sphi %s1808_s25, %s2761_s25   ;;  %s1747_s24 = sphi %s1806_s24, %s2760_s24  }
   0x4   : > { %p27_p0 = scmp.ge.s32.totalorder %s26_s29, 2  ;;  %p1484_p1 = scmp.ge.s32.totalorder %s1763_s28, 1 }
   0x5   : > { %p251_p2 = scmp.lt.s32.totalorder %s1763_s28, 5 }
   0x6   : > { %s2765_s29 = smov (%p27_p0, %s26_s29), 0  ;;  %s2767_s30 = smov (!%p27_p0, %s29_s30), %s1759_s27 }
   0x7   : > { %p252_p3 = pnand %p1484_p1, %p251_p2  ;;  %p31_p4 = scmp.ge.s32.totalorder %s2767_s30, 2 }
   0x9   : > { %s2769_s30 = smov (%p31_p4, %s2767_s30), 0  ;;  %255 = sbr.rel (%p252_p3) target bundleno = 454 (0x1c6), region = 48 }
   0xe   : > { %p287_p5 = scmp.lt.s32.totalorder %s1751_s25, 1  ;;  %s1487_s8 = sshll.u32 %s1747_s24, 4 }
   0xf   : > { %p295_p6 = scmp.lt.s32.totalorder %s1487_s8, 31  ;;  %p1490_p7 = scmp.ne.s32.totalorder %s1747_s24, 0 }
  0x10   : > { %s2771_s25 = smov (!%p287_p5, %s1751_s25), 1 }
  0x11   : > { %s2773_s8 = smov (!%p295_p6, %s1487_s8), 31  ;;  %s1650_s9 = sshll.u32 %s2771_s25, 8 }
  0x12   : > { %s1488_s10 = sshll.u32 %s2771_s25, 5  ;;  %s1842_s13 = scalar_lea.vmem %s2694_s0, %s1650_s9 }
  0x13   : > { %s298_s14 = sadd.s32 %s1488_s10, %s2773_s8  ;;  %305 = sbr.rel (%p1490_p7) target bundleno = 222 (0xde), region = 52 }
  0x14   : > { %s1489_s15 = sshll.u32 %s298_s14, 3 }
  0x15   : > { %s1847_s18 = scalar_lea.vmem %s2701_s7, %s1489_s15 }
  0x18   : > { %v384_v0 = vld [vmem:[%s2695_s1] sm:$0xff]  ;;  %vm389_vm0 = vcmask 64512   ;;  %vm309_vm1 = vcmask 386048   ;;  %v1765_v3 = vmov 0.0   ;;  %vm315_vm2 = vcmask 385024   ;;  %v369_v6 = vld [vmem:[%s1842_s13 + $0x88] sm:$0xff] }
  0x19   : > { %v368_v1 = vld [vmem:[%s1842_s13 + $0x80] sm:$0xff]  ;;  %1652 = vmatpush.msra.mxu2 %v384_v0  ;;  %1653 = vmatpush.msra.mxu3 %v384_v0  ;;  %310 = vst.msk [vmem:[#allocation2 + $0x10] sm:$0x3] %vm309_vm1, %v1765_v3  ;;  %v377_v7 = vld [vmem:[%s1842_s13 + $0xc8] sm:$0xff]  ;;  %v370_v10 = vld [vmem:[%s1842_s13 + $0x90] sm:$0xff]  ;;  %vm306_vm3 = vcmask 392192  }
  0x1a   : > { %v376_v2 = vld [vmem:[%s1842_s13 + $0xc0] sm:$0xff]  ;;  %1507 = vmatmul.msk.f32.vlgmr.msra.gmra.mxu2 %vm389_vm0, %v368_v1  ;;  %314 = vst.msk [vmem:[#allocation2 + $0x1a8] sm:$0x3] %vm309_vm1, %v1765_v3  ;;  %501 = vmatpush.msra.mxu0 %v384_v0  ;;  %v353_v8 = vld [vmem:[%s1842_s13 + $0x8] sm:$0xff]  ;;  %v378_v11 = vld [vmem:[%s1842_s13 + $0xd0] sm:$0xff] }
  0x1b   : > { %v352_v4 = vld [vmem:[%s1842_s13] sm:$0xff]  ;;  %1515 = vmatmul.msk.f32.vlgmr.msra.gmra.mxu3 %vm389_vm0, %v376_v2  ;;  %317 = vst.msk [vmem:[#allocation2 + $0x18] sm:$0x1] %vm315_vm2, %v1765_v3  ;;  %1651 = vmatpush.msra.mxu1 %v384_v0  ;;  %v361_v9 = vld [vmem:[%s1842_s13 + $0x48] sm:$0xff]  ;;  %v354_v12 = vld [vmem:[%s1842_s13 + $0x10] sm:$0xff] }
  0x1c   : > { %v360_v5 = vld [vmem:[%s1842_s13 + $0x40] sm:$0xff]  ;;  %318 = vst.msk [vmem:[#allocation2 + $0x30] sm:$0x1] %vm315_vm2, %v1765_v3  ;;  %1491 = vmatmul.msk.f32.vlgmr.msra.gmra.mxu0 %vm389_vm0, %v352_v4  ;;  %v362_v13 = vld [vmem:[%s1842_s13 + $0x50] sm:$0xff]  ;;  %v371_v14 = vld [vmem:[%s1842_s13 + $0x98] sm:$0xff] }
  0x1d   : > { %1499 = vmatmul.msk.f32.vlgmr.msra.gmra.mxu1 %vm389_vm0, %v360_v5  ;;  %319 = vst.msk [vmem:[#allocation2 + $0x48] sm:$0x1] %vm315_vm2, %v1765_v3  ;;  %v379_v15 = vld [vmem:[%s1842_s13 + $0xd8] sm:$0xff]  ;;  %v372_v18 = vld [vmem:[%s1842_s13 + $0xa0] sm:$0xff]  ;;  %v373_v22 = vld [vmem:[%s1842_s13 + $0xa8] sm:$0xff] }
  0x1e   : > { %320 = vst.msk [vmem:[#allocation2 + $0x60] sm:$0x1] %vm315_vm2, %v1765_v3  ;;  %v355_v16 = vld [vmem:[%s1842_s13 + $0x18] sm:$0xff]  ;;  %v380_v19 = vld [vmem:[%s1842_s13 + $0xe0] sm:$0xff]  ;;  %v381_v23 = vld [vmem:[%s1842_s13 + $0xe8] sm:$0xff] }
  0x1f   : > { %321 = vst.msk [vmem:[#allocation2 + $0x78] sm:$0x1] %vm315_vm2, %v1765_v3  ;;  %v363_v17 = vld [vmem:[%s1842_s13 + $0x58] sm:$0xff]  ;;  %v356_v20 = vld [vmem:[%s1842_s13 + $0x20] sm:$0xff]  ;;  %v357_v24 = vld [vmem:[%s1842_s13 + $0x28] sm:$0xff] }
  0x20   : > { %322 = vst.msk [vmem:[#allocation2 + $0x90] sm:$0x1] %vm315_vm2, %v1765_v3  ;;  %v364_v21 = vld [vmem:[%s1842_s13 + $0x60] sm:$0xff]  ;;  %v365_v25 = vld [vmem:[%s1842_s13 + $0x68] sm:$0xff]  ;;  %v374_v26 = vld [vmem:[%s1842_s13 + $0xb0] sm:$0xff] }
  0x21   : > { %323 = vst.msk [vmem:[#allocation2 + $0xa8] sm:$0x1] %vm315_vm2, %v1765_v3  ;;  %v382_v27 = vld [vmem:[%s1842_s13 + $0xf0] sm:$0xff]  ;;  %v375_v30 = vld [vmem:[%s1842_s13 + $0xb8] sm:$0xff]  ;;  %v2002_v34 = vld [vmem:[%s2696_s2] ss:$0 sm:$0xff] }
  0x22   : > { %324 = vst.msk [vmem:[#allocation2 + $0xc0] sm:$0x1] %vm315_vm2, %v1765_v3  ;;  %1508 = vmatmul.msk.f32.gmra.mxu2 %vm389_vm0, %v369_v6  ;;  %v358_v28 = vld [vmem:[%s1842_s13 + $0x30] sm:$0xff]  ;;  %v383_v31 = vld [vmem:[%s1842_s13 + $0xf8] sm:$0xff] }
  0x23   : > { %1516 = vmatmul.msk.f32.gmra.mxu3 %vm389_vm0, %v377_v7  ;;  %325 = vst.msk [vmem:[#allocation2 + $0xd8] sm:$0x1] %vm315_vm2, %v1765_v3  ;;  %v366_v29 = vld [vmem:[%s1842_s13 + $0x70] sm:$0xff]  ;;  %v359_v32 = vld [vmem:[%s1842_s13 + $0x38] sm:$0xff] }
  0x24   : > { %326 = vst.msk [vmem:[#allocation2 + $0xf0] sm:$0x1] %vm315_vm2, %v1765_v3  ;;  %1492 = vmatmul.msk.f32.gmra.mxu0 %vm389_vm0, %v353_v8  ;;  %v367_v33 = vld [vmem:[%s1842_s13 + $0x78] sm:$0xff] }
  0x25   : > { %1500 = vmatmul.msk.f32.gmra.mxu1 %vm389_vm0, %v361_v9  ;;  %327 = vst.msk [vmem:[#allocation2 + $0x108] sm:$0x1] %vm315_vm2, %v1765_v3 }
  0x26   : > { %328 = vst.msk [vmem:[#allocation2 + $0x120] sm:$0x1] %vm315_vm2, %v1765_v3 }
  0x27   : > { %329 = vst.msk [vmem:[#allocation2 + $0x138] sm:$0x1] %vm315_vm2, %v1765_v3 }
  0x28   : > { %330 = vst.msk [vmem:[#allocation2 + $0x150] sm:$0x1] %vm315_vm2, %v1765_v3 }
  0x29   : > { %331 = vst.msk [vmem:[#allocation2 + $0x168] sm:$0x1] %vm315_vm2, %v1765_v3 }
  0x2a   : > { %332 = vst.msk [vmem:[#allocation2 + $0x180] sm:$0x1] %vm315_vm2, %v1765_v3  ;;  %1509 = vmatmul.msk.f32.gmra.mxu2 %vm389_vm0, %v370_v10 }
  0x2b   : > { %1517 = vmatmul.msk.f32.gmra.mxu3 %vm389_vm0, %v378_v11  ;;  %334 = vst.msk [vmem:[#allocation2 + $0x11] sm:$0x1] %vm315_vm2, %v1765_v3 }
  0x2c   : > { %335 = vst.msk [vmem:[#allocation2 + $0x29] sm:$0x1] %vm315_vm2, %v1765_v3  ;;  %1493 = vmatmul.msk.f32.gmra.mxu0 %vm389_vm0, %v354_v12 }
  0x2d   : > { %1501 = vmatmul.msk.f32.gmra.mxu1 %vm389_vm0, %v362_v13  ;;  %336 = vst.msk [vmem:[#allocation2 + $0x41] sm:$0x1] %vm315_vm2, %v1765_v3 }
  0x2e   : > { %337 = vst.msk [vmem:[#allocation2 + $0x59] sm:$0x1] %vm315_vm2, %v1765_v3 }
  0x2f   : > { %338 = vst.msk [vmem:[#allocation2 + $0x71] sm:$0x1] %vm315_vm2, %v1765_v3 }
  0x30   : > { %339 = vst.msk [vmem:[#allocation2 + $0x89] sm:$0x1] %vm315_vm2, %v1765_v3 }
  0x31   : > { %340 = vst.msk [vmem:[#allocation2 + $0xa1] sm:$0x1] %vm315_vm2, %v1765_v3 }
  0x32   : > { %341 = vst.msk [vmem:[#allocation2 + $0xb9] sm:$0x1] %vm315_vm2, %v1765_v3  ;;  %1510 = vmatmul.msk.f32.gmra.mxu2 %vm389_vm0, %v371_v14 }
  0x33   : > { %1518 = vmatmul.msk.f32.gmra.mxu3 %vm389_vm0, %v379_v15  ;;  %342 = vst.msk [vmem:[#allocation2 + $0xd1] sm:$0x1] %vm315_vm2, %v1765_v3 }
  0x34   : > { %343 = vst.msk [vmem:[#allocation2 + $0xe9] sm:$0x1] %vm315_vm2, %v1765_v3  ;;  %1494 = vmatmul.msk.f32.gmra.mxu0 %vm389_vm0, %v355_v16 }
  0x35   : > { %1502 = vmatmul.msk.f32.gmra.mxu1 %vm389_vm0, %v363_v17  ;;  %344 = vst.msk [vmem:[#allocation2 + $0x101] sm:$0x1] %vm315_vm2, %v1765_v3 }
  0x36   : > { %345 = vst.msk [vmem:[#allocation2 + $0x119] sm:$0x1] %vm315_vm2, %v1765_v3 }
  0x37   : > { %346 = vst.msk [vmem:[#allocation2 + $0x131] sm:$0x1] %vm315_vm2, %v1765_v3 }
  0x38   : > { %347 = vst.msk [vmem:[#allocation2 + $0x149] sm:$0x1] %vm315_vm2, %v1765_v3 }
  0x39   : > { %348 = vst.msk [vmem:[#allocation2 + $0x161] sm:$0x1] %vm315_vm2, %v1765_v3 }
  0x3a   : > { %349 = vst.msk [vmem:[#allocation2 + $0x179] sm:$0x1] %vm315_vm2, %v1765_v3  ;;  %1511 = vmatmul.msk.f32.gmra.mxu2 %vm389_vm0, %v372_v18 }
  0x3b   : > { %1519 = vmatmul.msk.f32.gmra.mxu3 %vm389_vm0, %v380_v19  ;;  %350 = vst.msk [vmem:[#allocation2 + $0x191] sm:$0x1] %vm315_vm2, %v1765_v3 }
  0x3c   : > { %351 = vst.msk [vmem:[#allocation2 + $0x1a9] sm:$0x1] %vm315_vm2, %v1765_v3  ;;  %1495 = vmatmul.msk.f32.gmra.mxu0 %vm389_vm0, %v356_v20 }
  0x3d   : > { %1503 = vmatmul.msk.f32.gmra.mxu1 %vm389_vm0, %v364_v21  ;;  %307 = vst.msk [vmem:[#allocation2] sm:$0xff] %vm306_vm3, %v1765_v3 }
  0x3e   : > { %308 = vst.msk [vmem:[#allocation2 + $0x8] sm:$0xff] %vm306_vm3, %v1765_v3 }
  0x3f   : > { %312 = vst.msk [vmem:[#allocation2 + $0x198] sm:$0xff] %vm306_vm3, %v1765_v3 }
  0x40   : > { %313 = vst.msk [vmem:[#allocation2 + $0x1a0] sm:$0xff] %vm306_vm3, %v1765_v3 }
  0x41   : > { %316 = vst.msk [vmem:[#allocation2] sm:$0x1] %vm315_vm2, %v1765_v3 }
  0x42   : > { %1512 = vmatmul.msk.f32.gmra.mxu2 %vm389_vm0, %v373_v22  ;;  %333 = vst.msk [vmem:[#allocation2 + $0x198] sm:$0x1] %vm315_vm2, %v1765_v3 }
  0x43   : > { %1520 = vmatmul.msk.f32.gmra.mxu3 %vm389_vm0, %v381_v23 }
  0x44   : > { %1496 = vmatmul.msk.f32.gmra.mxu0 %vm389_vm0, %v357_v24 }
  0x45   : > { %1504 = vmatmul.msk.f32.gmra.mxu1 %vm389_vm0, %v365_v25 }
  0x4a   : > { %1513 = vmatmul.msk.f32.gmra.mxu2 %vm389_vm0, %v374_v26 }
  0x4b   : > { %1521 = vmatmul.msk.f32.gmra.mxu3 %vm389_vm0, %v382_v27 }
  0x4c   : > { %1497 = vmatmul.msk.f32.gmra.mxu0 %vm389_vm0, %v358_v28 }
  0x4d   : > { %1505 = vmatmul.msk.f32.gmra.mxu1 %vm389_vm0, %v366_v29 }
  0x52   : > { %1514 = vmatmul.msk.f32.gmra.mxu2 %vm389_vm0, %v375_v30 }
  0x53   : > { %1522 = vmatmul.msk.f32.gmra.mxu3 %vm389_vm0, %v383_v31 }
  0x54   : > { %1498 = vmatmul.msk.f32.gmra.mxu0 %vm389_vm0, %v359_v32 }
  0x55   : > { %1506 = vmatmul.msk.f32.gmra.mxu1 %vm389_vm0, %v367_v33 }
  0x99   : > { %v503_v35 = vpop.f32.mrf.mxu0 }
  0x9a   : > { %v527_v36 = vpop.f32.mrf.mxu1  ;;  %v504_v37 = vadd.f32 %v2002_v34, %v503_v35 }
  0x9b   : > { %v528_v38 = vadd.f32 %v2002_v34, %v527_v36 }
  0x9c   : > { %v599_v39 = vmax.f32 %v504_v37, 0.0 }
  0x9d   : > { %v607_v40 = vmax.f32 %v528_v38, 0.0  ;;  %v551_v41 = vpop.f32.mrf.mxu2 }
  0x9e   : > { %v575_v42 = vpop.f32.mrf.mxu3  ;;  %v631_v43 = vmin.f32 %v599_v39, 6.0  ;;  %v552_v45 = vadd.f32 %v2002_v34, %v551_v41 }
  0x9f   : > { %v639_v44 = vmin.f32 %v607_v40, 6.0  ;;  %v576_v46 = vadd.f32 %v2002_v34, %v575_v42 }
  0xa0   : > { %664 = vst.msk [vmem:[#allocation2 + $0x19] sm:$0xff] %vm306_vm3, %v631_v43  ;;  %v615_v47 = vmax.f32 %v552_v45, 0.0 }
  0xa1   : > { %v623_v48 = vmax.f32 %v576_v46, 0.0  ;;  %672 = vst.msk [vmem:[#allocation2 + $0x79] sm:$0xff] %vm306_vm3, %v639_v44  ;;  %v506_v49 = vpop.f32.mrf.mxu0 }
  0xa2   : > { %v530_v50 = vpop.f32.mrf.mxu1  ;;  %v647_v51 = vmin.f32 %v615_v47, 6.0  ;;  %v507_v53 = vadd.f32 %v2002_v34, %v506_v49 }
  0xa3   : > { %v655_v52 = vmin.f32 %v623_v48, 6.0  ;;  %v531_v54 = vadd.f32 %v2002_v34, %v530_v50 }
  0xa4   : > { %680 = vst.msk [vmem:[#allocation2 + $0xd9] sm:$0xff] %vm306_vm3, %v647_v51  ;;  %v600_v55 = vmax.f32 %v507_v53, 0.0 }
  0xa5   : > { %v608_v56 = vmax.f32 %v531_v54, 0.0  ;;  %688 = vst.msk [vmem:[#allocation2 + $0x139] sm:$0xff] %vm306_vm3, %v655_v52  ;;  %v554_v57 = vpop.f32.mrf.mxu2 }
  0xa6   : > { %v578_v58 = vpop.f32.mrf.mxu3  ;;  %v632_v59 = vmin.f32 %v600_v55, 6.0  ;;  %v555_v61 = vadd.f32 %v2002_v34, %v554_v57 }
  0xa7   : > { %v640_v60 = vmin.f32 %v608_v56, 6.0  ;;  %v579_v62 = vadd.f32 %v2002_v34, %v578_v58 }
  0xa8   : > { %665 = vst.msk [vmem:[#allocation2 + $0x21] sm:$0xff] %vm306_vm3, %v632_v59  ;;  %v616_v63 = vmax.f32 %v555_v61, 0.0 }
  0xa9   : > { %v624_v0 = vmax.f32 %v579_v62, 0.0  ;;  %673 = vst.msk [vmem:[#allocation2 + $0x81] sm:$0xff] %vm306_vm3, %v640_v60  ;;  %v509_v1 = vpop.f32.mrf.mxu0 }
  0xaa   : > { %v533_v2 = vpop.f32.mrf.mxu1  ;;  %v648_v3 = vmin.f32 %v616_v63, 6.0  ;;  %v510_v5 = vadd.f32 %v2002_v34, %v509_v1 }
  0xab   : > { %v656_v4 = vmin.f32 %v624_v0, 6.0  ;;  %v534_v6 = vadd.f32 %v2002_v34, %v533_v2 }
  0xac   : > { %681 = vst.msk [vmem:[#allocation2 + $0xe1] sm:$0xff] %vm306_vm3, %v648_v3  ;;  %v601_v7 = vmax.f32 %v510_v5, 0.0 }
  0xad   : > { %v609_v8 = vmax.f32 %v534_v6, 0.0  ;;  %689 = vst.msk [vmem:[#allocation2 + $0x141] sm:$0xff] %vm306_vm3, %v656_v4  ;;  %v557_v9 = vpop.f32.mrf.mxu2 }
  0xae   : > { %v581_v10 = vpop.f32.mrf.mxu3  ;;  %v633_v11 = vmin.f32 %v601_v7, 6.0  ;;  %v558_v13 = vadd.f32 %v2002_v34, %v557_v9 }
  0xaf   : > { %v641_v12 = vmin.f32 %v609_v8, 6.0  ;;  %v582_v14 = vadd.f32 %v2002_v34, %v581_v10 }
  0xb0   : > { %666 = vst.msk [vmem:[#allocation2 + $0x31] sm:$0xff] %vm306_vm3, %v633_v11  ;;  %v617_v15 = vmax.f32 %v558_v13, 0.0 }
  0xb1   : > { %v625_v16 = vmax.f32 %v582_v14, 0.0  ;;  %674 = vst.msk [vmem:[#allocation2 + $0x91] sm:$0xff] %vm306_vm3, %v641_v12  ;;  %v512_v17 = vpop.f32.mrf.mxu0 }
  0xb2   : > { %v536_v18 = vpop.f32.mrf.mxu1  ;;  %v649_v19 = vmin.f32 %v617_v15, 6.0  ;;  %v513_v21 = vadd.f32 %v2002_v34, %v512_v17 }
  0xb3   : > { %v657_v20 = vmin.f32 %v625_v16, 6.0  ;;  %v537_v22 = vadd.f32 %v2002_v34, %v536_v18 }
  0xb4   : > { %682 = vst.msk [vmem:[#allocation2 + $0xf1] sm:$0xff] %vm306_vm3, %v649_v19  ;;  %v602_v23 = vmax.f32 %v513_v21, 0.0 }
  0xb5   : > { %v610_v24 = vmax.f32 %v537_v22, 0.0  ;;  %690 = vst.msk [vmem:[#allocation2 + $0x151] sm:$0xff] %vm306_vm3, %v657_v20  ;;  %v560_v25 = vpop.f32.mrf.mxu2 }
  0xb6   : > { %v584_v26 = vpop.f32.mrf.mxu3  ;;  %v634_v27 = vmin.f32 %v602_v23, 6.0  ;;  %v561_v29 = vadd.f32 %v2002_v34, %v560_v25 }
  0xb7   : > { %v642_v28 = vmin.f32 %v610_v24, 6.0  ;;  %v585_v30 = vadd.f32 %v2002_v34, %v584_v26 }
  0xb8   : > { %667 = vst.msk [vmem:[#allocation2 + $0x39] sm:$0xff] %vm306_vm3, %v634_v27  ;;  %v618_v31 = vmax.f32 %v561_v29, 0.0 }
  0xb9   : > { %v626_v32 = vmax.f32 %v585_v30, 0.0  ;;  %675 = vst.msk [vmem:[#allocation2 + $0x99] sm:$0xff] %vm306_vm3, %v642_v28  ;;  %v515_v33 = vpop.f32.mrf.mxu0 }
  0xba   : > { %v539_v35 = vpop.f32.mrf.mxu1  ;;  %v650_v36 = vmin.f32 %v618_v31, 6.0  ;;  %v516_v38 = vadd.f32 %v2002_v34, %v515_v33 }
  0xbb   : > { %v658_v37 = vmin.f32 %v626_v32, 6.0  ;;  %v540_v39 = vadd.f32 %v2002_v34, %v539_v35 }
  0xbc   : > { %683 = vst.msk [vmem:[#allocation2 + $0xf9] sm:$0xff] %vm306_vm3, %v650_v36  ;;  %v603_v40 = vmax.f32 %v516_v38, 0.0 }
  0xbd   : > { %v611_v41 = vmax.f32 %v540_v39, 0.0  ;;  %691 = vst.msk [vmem:[#allocation2 + $0x159] sm:$0xff] %vm306_vm3, %v658_v37  ;;  %v563_v42 = vpop.f32.mrf.mxu2 }
  0xbe   : > { %v587_v43 = vpop.f32.mrf.mxu3  ;;  %v635_v44 = vmin.f32 %v603_v40, 6.0  ;;  %v564_v46 = vadd.f32 %v2002_v34, %v563_v42 }
  0xbf   : > { %v643_v45 = vmin.f32 %v611_v41, 6.0  ;;  %v588_v47 = vadd.f32 %v2002_v34, %v587_v43 }
  0xc0   : > { %668 = vst.msk [vmem:[#allocation2 + $0x49] sm:$0xff] %vm306_vm3, %v635_v44  ;;  %v619_v48 = vmax.f32 %v564_v46, 0.0 }
  0xc1   : > { %v627_v49 = vmax.f32 %v588_v47, 0.0  ;;  %676 = vst.msk [vmem:[#allocation2 + $0xa9] sm:$0xff] %vm306_vm3, %v643_v45  ;;  %v518_v50 = vpop.f32.mrf.mxu0 }
  0xc2   : > { %v542_v51 = vpop.f32.mrf.mxu1  ;;  %v651_v52 = vmin.f32 %v619_v48, 6.0  ;;  %v519_v54 = vadd.f32 %v2002_v34, %v518_v50 }
  0xc3   : > { %v659_v53 = vmin.f32 %v627_v49, 6.0  ;;  %v543_v55 = vadd.f32 %v2002_v34, %v542_v51 }
  0xc4   : > { %684 = vst.msk [vmem:[#allocation2 + $0x109] sm:$0xff] %vm306_vm3, %v651_v52  ;;  %v604_v56 = vmax.f32 %v519_v54, 0.0 }
  0xc5   : > { %v612_v57 = vmax.f32 %v543_v55, 0.0  ;;  %692 = vst.msk [vmem:[#allocation2 + $0x169] sm:$0xff] %vm306_vm3, %v659_v53  ;;  %v566_v58 = vpop.f32.mrf.mxu2 }
  0xc6   : > { %v590_v59 = vpop.f32.mrf.mxu3  ;;  %v636_v60 = vmin.f32 %v604_v56, 6.0  ;;  %v567_v62 = vadd.f32 %v2002_v34, %v566_v58 }
  0xc7   : > { %v644_v61 = vmin.f32 %v612_v57, 6.0  ;;  %v591_v63 = vadd.f32 %v2002_v34, %v590_v59 }
  0xc8   : > { %669 = vst.msk [vmem:[#allocation2 + $0x51] sm:$0xff] %vm306_vm3, %v636_v60  ;;  %v620_v0 = vmax.f32 %v567_v62, 0.0 }
  0xc9   : > { %v628_v1 = vmax.f32 %v591_v63, 0.0  ;;  %677 = vst.msk [vmem:[#allocation2 + $0xb1] sm:$0xff] %vm306_vm3, %v644_v61  ;;  %v521_v2 = vpop.f32.mrf.mxu0 }
  0xca   : > { %v545_v3 = vpop.f32.mrf.mxu1  ;;  %v652_v4 = vmin.f32 %v620_v0, 6.0  ;;  %v522_v6 = vadd.f32 %v2002_v34, %v521_v2 }
  0xcb   : > { %v660_v5 = vmin.f32 %v628_v1, 6.0  ;;  %v546_v7 = vadd.f32 %v2002_v34, %v545_v3 }
  0xcc   : > { %685 = vst.msk [vmem:[#allocation2 + $0x111] sm:$0xff] %vm306_vm3, %v652_v4  ;;  %v605_v8 = vmax.f32 %v522_v6, 0.0 }
  0xcd   : > { %v613_v9 = vmax.f32 %v546_v7, 0.0  ;;  %693 = vst.msk [vmem:[#allocation2 + $0x171] sm:$0xff] %vm306_vm3, %v660_v5  ;;  %v569_v10 = vpop.f32.mrf.mxu2 }
  0xce   : > { %v593_v11 = vpop.f32.mrf.mxu3  ;;  %v637_v12 = vmin.f32 %v605_v8, 6.0  ;;  %v570_v14 = vadd.f32 %v2002_v34, %v569_v10 }
  0xcf   : > { %v645_v13 = vmin.f32 %v613_v9, 6.0  ;;  %v594_v15 = vadd.f32 %v2002_v34, %v593_v11 }
  0xd0   : > { %670 = vst.msk [vmem:[#allocation2 + $0x61] sm:$0xff] %vm306_vm3, %v637_v12  ;;  %v621_v16 = vmax.f32 %v570_v14, 0.0 }
  0xd1   : > { %v629_v17 = vmax.f32 %v594_v15, 0.0  ;;  %678 = vst.msk [vmem:[#allocation2 + $0xc1] sm:$0xff] %vm306_vm3, %v645_v13  ;;  %v524_v18 = vpop.f32.mrf.mxu0 }
  0xd2   : > { %v548_v19 = vpop.f32.mrf.mxu1  ;;  %v653_v20 = vmin.f32 %v621_v16, 6.0  ;;  %v525_v22 = vadd.f32 %v2002_v34, %v524_v18 }
  0xd3   : > { %v661_v21 = vmin.f32 %v629_v17, 6.0  ;;  %v549_v23 = vadd.f32 %v2002_v34, %v548_v19 }
  0xd4   : > { %686 = vst.msk [vmem:[#allocation2 + $0x121] sm:$0xff] %vm306_vm3, %v653_v20  ;;  %v606_v24 = vmax.f32 %v525_v22, 0.0 }
  0xd5   : > { %v614_v25 = vmax.f32 %v549_v23, 0.0  ;;  %694 = vst.msk [vmem:[#allocation2 + $0x181] sm:$0xff] %vm306_vm3, %v661_v21  ;;  %v572_v26 = vpop.f32.mrf.mxu2 }
  0xd6   : > { %v596_v27 = vpop.f32.mrf.mxu3  ;;  %v638_v28 = vmin.f32 %v606_v24, 6.0  ;;  %v573_v30 = vadd.f32 %v2002_v34, %v572_v26 }
  0xd7   : > { %v646_v29 = vmin.f32 %v614_v25, 6.0  ;;  %v597_v31 = vadd.f32 %v2002_v34, %v596_v27 }
  0xd8   : > { %671 = vst.msk [vmem:[#allocation2 + $0x69] sm:$0xff] %vm306_vm3, %v638_v28  ;;  %v622_v32 = vmax.f32 %v573_v30, 0.0 }
  0xd9   : > { %v630_v33 = vmax.f32 %v597_v31, 0.0  ;;  %679 = vst.msk [vmem:[#allocation2 + $0xc9] sm:$0xff] %vm306_vm3, %v646_v29 }
  0xda   : > { %v654_v35 = vmin.f32 %v622_v32, 6.0 }
  0xdb   : > { %v662_v36 = vmin.f32 %v630_v33, 6.0 }
  0xdc   : > { %687 = vst.msk [vmem:[#allocation2 + $0x129] sm:$0xff] %vm306_vm3, %v654_v35 }
  0xdd   : > { %695 = vst.msk [vmem:[#allocation2 + $0x189] sm:$0xff] %vm306_vm3, %v662_v36 }
  0xde PF: > { %v1214_v37 = vld [vmem:[%s2699_s5 + $0x28] sm:$0xff]  ;;  %v1213_v34 = vld [vmem:[%s2699_s5 + $0x20] sm:$0xff]  ;;  %s1524_s10 = smul.u32 192, %s1747_s24  ;;  %v1212_v38 = vld [vmem:[%s2699_s5 + $0x18] sm:$0xff]  ;;  %vm1219_vm4 = vcmask 392192   ;;  %vm1367_vm5 = vcmask 64512  }
  0xdf   : > { %1655 = vmatpush.msra.mxu2 %v1214_v37  ;;  %1656 = vmatpush.msra.mxu3 %v1214_v37  ;;  %v1211_v39 = vld [vmem:[%s2699_s5 + $0x10] sm:$0xff]  ;;  %v2084_v40 = vld [vmem:[%s2697_s3] ss:$0 sm:$0xff]  ;;  %v1210_v43 = vld [vmem:[%s2699_s5 + $0x8] sm:$0xff] }
  0xe0   : > { %1278 = vmatpush.msra.mxu0 %v1214_v37  ;;  %1654 = vmatpush.msra.mxu1 %v1214_v37  ;;  %s2086_s19 = scalar_lea.vmem [#allocation2], %s1524_s10  ;;  %v2102_v45 = vld [vmem:[%s2697_s3 + $0x1] ss:$0 sm:$0xff]  ;;  %v2110_v47 = vld [vmem:[%s2697_s3 + $0x2] ss:$0 sm:$0xff] }
  0xe1   : > { %1658 = vmatpush.msra.mxu2 %v1213_v34  ;;  %1659 = vmatpush.msra.mxu3 %v1213_v34  ;;  %v1209_v49 = vld [vmem:[%s2699_s5] sm:$0xff]  ;;  %v2151_v60 = vld [vmem:[%s2697_s3 + $0x8] ss:$0 sm:$0xff]  ;;  %v2163_v1 = vld [vmem:[%s2697_s3 + $0x9] ss:$0 sm:$0xff] }
  0xe2   : > { %1279 = vmatpush.msra.mxu0 %v1213_v34  ;;  %1657 = vmatpush.msra.mxu1 %v1213_v34  ;;  %v2123_v51 = vld [vmem:[%s2697_s3 + $0x4] ss:$0 sm:$0xff]  ;;  %v2133_v54 = vld [vmem:[%s2697_s3 + $0x5] ss:$0 sm:$0xff]  ;;  %v2143_v58 = vld [vmem:[%s2697_s3 + $0x6] ss:$0 sm:$0xff] }
  0xe3   : > { %1661 = vmatpush.msra.mxu2 %v1212_v38  ;;  %1662 = vmatpush.msra.mxu3 %v1212_v38  ;;  %v2173_v4 = vld [vmem:[%s2697_s3 + $0xa] ss:$0 sm:$0xff] }
  0xe4   : > { %v2089_v41 = vld [vmem:[%s2086_s19 + $0x60] sm:$0xff]  ;;  %v2113_v48 = vld [vmem:[%s2086_s19 + $0x78] sm:$0xff]  ;;  %1280 = vmatpush.msra.mxu0 %v1212_v38  ;;  %1660 = vmatpush.msra.mxu1 %v1212_v38  ;;  %v2146_v59 = vld [vmem:[%s2086_s19 + $0x90] sm:$0xff] }
  0xe5   : > { %2726 = vst [vmem:[#allocation3_spill] sm:$0xff] %v2089_v41  ;;  %v2092_v42 = vld [vmem:[%s2086_s19 + $0x61] sm:$0xff]  ;;  %v725_v44 = vmul.f32 %v2084_v40, %v2089_v41  ;;  %v2126_v52 = vld [vmem:[%s2086_s19 + $0x79] sm:$0xff]  ;;  %1664 = vmatpush.msra.mxu2 %v1211_v39  ;;  %1665 = vmatpush.msra.mxu3 %v1211_v39  ;;  %v879_v57 = vmul.f32 %v2123_v51, %v2113_v48  ;;  %v2154_v61 = vld [vmem:[%s2086_s19 + $0x91] sm:$0xff] }
  0xe6   : > { %v2105_v46 = vld [vmem:[%s2086_s19 + $0x62] sm:$0xff]  ;;  %2727 = vst [vmem:[#allocation4_spill] sm:$0xff] %v2113_v48  ;;  %v775_v50 = vmul.f32 %v2102_v45, %v2092_v42  ;;  %v2136_v55 = vld [vmem:[%s2086_s19 + $0x7a] sm:$0xff]  ;;  %1281 = vmatpush.msra.mxu0 %v1211_v39  ;;  %1663 = vmatpush.msra.mxu1 %v1211_v39  ;;  %v729_v62 = vmul.f32 %v2084_v40, %v2146_v59  ;;  %v2166_v2 = vld [vmem:[%s2086_s19 + $0x92] sm:$0xff] }
  0xe7   : > { %v825_v53 = vmul.f32 %v2110_v47, %v2105_v46  ;;  %1667 = vmatpush.msra.mxu2 %v1210_v43  ;;  %1668 = vmatpush.msra.mxu3 %v1210_v43  ;;  %v929_v0 = vmul.f32 %v2133_v54, %v2126_v52  ;;  %v779_v3 = vmul.f32 %v2102_v45, %v2154_v61  ;;  %v2180_v9 = vld [vmem:[%s2086_s19 + $0xa8] sm:$0xff]  ;;  %v2195_v15 = vld [vmem:[%s2086_s19 + $0xc0] sm:$0xff]  ;;  %v2220_v30 = vld [vmem:[%s2086_s19 + $0x18] sm:$0xff] }
  0xe8   : > { %v791_v56 = vadd.f32 %v775_v50, %v725_v44  ;;  %1282 = vmatpush.msra.mxu0 %v1210_v43  ;;  %1666 = vmatpush.msra.mxu1 %v1210_v43  ;;  %v829_v5 = vmul.f32 %v2110_v47, %v2166_v2  ;;  %v979_v7 = vmul.f32 %v2143_v58, %v2136_v55  ;;  %v2183_v10 = vld [vmem:[%s2086_s19 + $0xa9] sm:$0xff]  ;;  %v2198_v16 = vld [vmem:[%s2086_s19 + $0xc1] sm:$0xff]  ;;  %v2223_v31 = vld [vmem:[%s2086_s19 + $0x19] sm:$0xff] }
  0xe9   : > { %1670 = vmatpush.msra.mxu2 %v1209_v49  ;;  %1671 = vmatpush.msra.mxu3 %v1209_v49  ;;  %v795_v8 = vadd.f32 %v779_v3, %v729_v62  ;;  %v2186_v11 = vld [vmem:[%s2086_s19 + $0xaa] sm:$0xff]  ;;  %v1033_v12 = vmul.f32 %v2151_v60, %v2146_v59  ;;  %v1083_v13 = vmul.f32 %v2163_v1, %v2154_v61  ;;  %v2201_v17 = vld [vmem:[%s2086_s19 + $0xc2] sm:$0xff]  ;;  %v2226_v32 = vld [vmem:[%s2086_s19 + $0x1a] sm:$0xff] }
  0xea   : > { %v841_v63 = vadd.f32 %v825_v53, %v791_v56  ;;  %1283 = vmatpush.msra.mxu0 %v1209_v49  ;;  %1669 = vmatpush.msra.mxu1 %v1209_v49  ;;  %v883_v14 = vmul.f32 %v2123_v51, %v2180_v9  ;;  %v2205_v18 = vmul.f32 %v2151_v60, %v2089_v41  ;;  %v699_v23 = vld [vmem:[%s2086_s19] sm:$0xff]  ;;  %v2233_v34 = vld [vmem:[%s2086_s19 + $0x30] sm:$0xff] }
  0xeb   : > { %v1133_v20 = vmul.f32 %v2173_v4, %v2166_v2  ;;  %v845_v21 = vadd.f32 %v829_v5, %v795_v8  ;;  %v933_v22 = vmul.f32 %v2133_v54, %v2183_v10  ;;  %v749_v24 = vld [vmem:[%s2086_s19 + $0x1] sm:$0xff]  ;;  %v983_v26 = vmul.f32 %v2143_v58, %v2186_v11  ;;  %v2236_v38 = vld [vmem:[%s2086_s19 + $0x31] sm:$0xff] }
  0xec   : > { %v895_v6 = vadd.f32 %v879_v57, %v841_v63  ;;  %v799_v25 = vld [vmem:[%s2086_s19 + $0x2] sm:$0xff]  ;;  %v717_v27 = vmul.f32 %v2084_v40, %v699_v23  ;;  %v767_v28 = vmul.f32 %v2102_v45, %v749_v24  ;;  %v1037_v36 = vmul.f32 %v2151_v60, %v2195_v15  ;;  %v2239_v39 = vld [vmem:[%s2086_s19 + $0x32] sm:$0xff]  ;;  %v2279_v24 = vld [vmem:[%s2086_s19 + $0x4a] sm:$0xff] }
  0xed   : > { %v817_v29 = vmul.f32 %v2110_v47, %v799_v25  ;;  %v899_v35 = vadd.f32 %v883_v14, %v845_v21  ;;  %v1087_v37 = vmul.f32 %v2163_v1, %v2198_v16  ;;  %v1137_v43 = vmul.f32 %v2173_v4, %v2201_v17  ;;  %v2252_v63 = vld [vmem:[%s2086_s19 + $0x48] sm:$0xff]  ;;  %2729 = vst [vmem:[#allocation6_spill] sm:$0xff] %v2279_v24 }
  0xee   : > { %v945_v19 = vadd.f32 %v929_v0, %v895_v6  ;;  %v783_v44 = vadd.f32 %v767_v28, %v717_v27  ;;  %v871_v49 = vmul.f32 %v2123_v51, %v2220_v30  ;;  %v921_v50 = vmul.f32 %v2133_v54, %v2223_v31  ;;  %v2255_v0 = vld [vmem:[%s2086_s19 + $0x49] sm:$0xff] }
  0xef   : > { %v949_v56 = vadd.f32 %v933_v22, %v899_v35  ;;  %v971_v57 = vmul.f32 %v2143_v58, %v2226_v32  ;;  %v721_v62 = vmul.f32 %v2084_v40, %v2233_v34  ;;  %2728 = vst [vmem:[#allocation5_spill] sm:$0xff] %v2255_v0  ;;  %v1025_v5 = vmul.f32 %v2151_v60, %v2233_v34  ;;  %v2264_v8 = vld [vmem:[%s2086_s19 + $0x68] sm:$0xff] }
  0xf0   : > { %v995_v33 = vadd.f32 %v979_v7, %v945_v19  ;;  %v833_v3 = vadd.f32 %v817_v29, %v783_v44  ;;  %v771_v6 = vmul.f32 %v2102_v45, %v2236_v38  ;;  %v821_v7 = vmul.f32 %v2110_v47, %v2239_v39  ;;  %v2272_v19 = vld [vmem:[%s2698_s4] ss:$0 sm:$0xff]  ;;  %v2282_v25 = vld [vmem:[%s2086_s19 + $0x6a] sm:$0xff]  ;;  %v2306_v41 = vld [vmem:[%s2086_s19 + $0x82] sm:$0xff] }
  0xf1   : > { %v999_v21 = vadd.f32 %v983_v26, %v949_v56  ;;  %v1075_v22 = vmul.f32 %v2163_v1, %v2236_v38  ;;  %v1125_v23 = vmul.f32 %v2173_v4, %v2239_v39  ;;  %v925_v26 = vmul.f32 %v2133_v54, %v2255_v0  ;;  %v2289_v29 = vld [vmem:[%s2086_s19 + $0x80] sm:$0xff]  ;;  %2731 = vst [vmem:[#allocation8_spill] sm:$0xff] %v2306_v41 }
  0xf2   : > { %v1049_v53 = vadd.f32 %v1033_v12, %v995_v33  ;;  %v2267_v12 = vld [vmem:[%s2086_s19 + $0x69] sm:$0xff]  ;;  %v887_v27 = vadd.f32 %v871_v49, %v833_v3  ;;  %v787_v28 = vadd.f32 %v771_v6, %v721_v62  ;;  %2730 = vst [vmem:[#allocation7_spill] sm:$0xff] %v2289_v29  ;;  %v726_v44 = vmul.f32 %v2084_v40, %v2264_v8  ;;  %v2300_v6 = vld [vmem:[%s2086_s19 + $0x81] sm:$0xff]  ;;  %v2316_v0 = vld [vmem:[%s2086_s19 + $0x99] sm:$0xff] }
  0xf3   : > { %v1053_v35 = vadd.f32 %v1037_v36, %v999_v21  ;;  %v975_v62 = vmul.f32 %v2143_v58, %v2279_v24  ;;  %v826_v3 = vmul.f32 %v2110_v47, %v2282_v25  ;;  %v880_v21 = vmul.f32 %v2123_v51, %v2289_v29  ;;  %2733 = vst [vmem:[#allocation10_spill] sm:$0xff] %v2316_v0 }
  0xf4   : > { %v1099_v14 = vadd.f32 %v1083_v13, %v1049_v53  ;;  %v875_v13 = vmul.f32 %v2123_v51, %v2252_v63  ;;  %v776_v53 = vmul.f32 %v2102_v45, %v2267_v12  ;;  %v937_v49 = vadd.f32 %v921_v50, %v887_v27  ;;  %v2309_v50 = vld [vmem:[%s2086_s19 + $0x98] sm:$0xff] }
  0xf5   : > { %v837_v56 = vadd.f32 %v821_v7, %v787_v28  ;;  %v1103_v36 = vadd.f32 %v1087_v37, %v1053_v35  ;;  %2732 = vst [vmem:[#allocation9_spill] sm:$0xff] %v2309_v50  ;;  %v1079_v28 = vmul.f32 %v2163_v1, %v2092_v42  ;;  %v1129_v24 = vmul.f32 %v2173_v4, %v2105_v46 }
  0xf6   : > { %v1149_v33 = vadd.f32 %v1133_v20, %v1099_v14  ;;  %v792_v14 = vadd.f32 %v776_v53, %v726_v44  ;;  %v987_v7 = vadd.f32 %v971_v57, %v937_v49  ;;  %v930_v44 = vmul.f32 %v2133_v54, %v2300_v6  ;;  %v2321_v53 = vld [vmem:[%s2086_s19 + $0x9a] sm:$0xff] }
  0xf7   : > { %v891_v27 = vadd.f32 %v875_v13, %v837_v56  ;;  %2734 = vst [vmem:[#allocation11_spill] sm:$0xff] %v2321_v53  ;;  %v980_v13 = vmul.f32 %v2143_v58, %v2306_v41  ;;  %v730_v49 = vmul.f32 %v2084_v40, %v2309_v50  ;;  %v2328_v56 = vld [vmem:[%s2086_s19 + $0xb0] sm:$0xff]  ;;  %v2357_v41 = vld [vmem:[%s2086_s19 + $0xc8] sm:$0xff] }
  0xf8   : > { %v1169_v20 = vadd.f32 %v2272_v19, %v1149_v33  ;;  %v1153_v33 = vadd.f32 %v1137_v43, %v1103_v36  ;;  %v842_v35 = vadd.f32 %v826_v3, %v792_v14  ;;  %v1041_v29 = vadd.f32 %v1025_v5, %v987_v7  ;;  %2735 = vst [vmem:[#allocation12_spill] sm:$0xff] %v2328_v56 }
  0xf9   : > { %v941_v57 = vadd.f32 %v925_v26, %v891_v27  ;;  %v780_v36 = vmul.f32 %v2102_v45, %v2316_v0  ;;  %v1034_v26 = vmul.f32 %v2151_v60, %v2309_v50  ;;  %v830_v7 = vmul.f32 %v2110_v47, %v2321_v53  ;;  %v2338_v27 = vld [vmem:[%s2086_s19 + $0xb1] sm:$0xff]  ;;  %2738 = vst [vmem:[#allocation15_spill] sm:$0xff] %v2357_v41 }
  0xfa   : > { %v1185_v37 = vmax.f32 %v1169_v20, 0.0  ;;  %v1173_v3 = vadd.f32 %v2272_v19, %v1153_v33  ;;  %v896_v20 = vadd.f32 %v880_v21, %v842_v35  ;;  %v1091_v14 = vadd.f32 %v1075_v22, %v1041_v29  ;;  %2736 = vst [vmem:[#allocation13_spill] sm:$0xff] %v2338_v27  ;;  %v2344_v29 = vld [vmem:[%s2086_s19 + $0xb2] sm:$0xff] }
  0xfb   : > { %v991_v5 = vadd.f32 %v975_v62, %v941_v57  ;;  %v796_v33 = vadd.f32 %v780_v36, %v730_v49  ;;  %v884_v22 = vmul.f32 %v2123_v51, %v2328_v56  ;;  %2737 = vst [vmem:[#allocation14_spill] sm:$0xff] %v2344_v29  ;;  %v700_v62 = vld [vmem:[%s2086_s19 + $0x8] sm:$0xff]  ;;  %v1084_v50 = vmul.f32 %v2163_v1, %v2316_v0 }
  0xfc   : > { %v1201_v43 = vmin.f32 %v1185_v37, 6.0  ;;  %v1189_v37 = vmax.f32 %v1173_v3, 0.0  ;;  %v946_v21 = vadd.f32 %v930_v44, %v896_v20  ;;  %v1141_v35 = vadd.f32 %v1125_v23, %v1091_v14  ;;  %v750_v3 = vld [vmem:[%s2086_s19 + $0x9] sm:$0xff] }
  0xfd   : > { %v1045_v57 = vadd.f32 %v2205_v18, %v991_v5  ;;  %v800_v44 = vld [vmem:[%s2086_s19 + $0xa] sm:$0xff]  ;;  %v846_v36 = vadd.f32 %v830_v7, %v796_v33  ;;  %v934_v56 = vmul.f32 %v2133_v54, %v2338_v27  ;;  %v984_v14 = vmul.f32 %v2143_v58, %v2344_v29  ;;  %v2385_v29 = vld [vmem:[%s2086_s19 + $0x38] sm:$0xff] }
  0xfe   : > { %1639 = vmatmul.msk.f32.vlgmr.msra.gmra.mxu2 %vm1219_vm4, %v1201_v43  ;;  %v1134_v43 = vmul.f32 %v2173_v4, %v2321_v53  ;;  %v1205_v49 = vmin.f32 %v1189_v37, 6.0  ;;  %v996_v20 = vadd.f32 %v980_v13, %v946_v21  ;;  %v1161_v18 = vadd.f32 %v2272_v19, %v1141_v35  ;;  %v2364_v53 = vld [vmem:[%s2086_s19 + $0x20] sm:$0xff]  ;;  %v2368_v37 = vld [vmem:[%s2086_s19 + $0xc9] sm:$0xff] }
  0xff   : > { %v1095_v23 = vadd.f32 %v1079_v28, %v1045_v57  ;;  %v718_v5 = vmul.f32 %v2084_v40, %v700_v62  ;;  %2739 = vst [vmem:[#allocation16_spill] sm:$0xff] %v2364_v53  ;;  %v900_v7 = vadd.f32 %v884_v22, %v846_v36  ;;  %v2371_v21 = vld [vmem:[%s2086_s19 + $0xca] sm:$0xff]  ;;  %v768_v28 = vmul.f32 %v2102_v45, %v750_v3 }
 0x100   : > { %1643 = vmatmul.msk.f32.vlgmr.msra.gmra.mxu3 %vm1219_vm4, %v1205_v49  ;;  %v1050_v13 = vadd.f32 %v1034_v26, %v996_v20  ;;  %2740 = vst [vmem:[#allocation17_spill] sm:$0xff] %v2368_v37  ;;  %v818_v33 = vmul.f32 %v2110_v47, %v800_v44  ;;  %v1177_v35 = vmax.f32 %v1161_v18, 0.0  ;;  %v1038_v57 = vmul.f32 %v2151_v60, %v2357_v41  ;;  %v2378_v49 = vld [vmem:[%s2086_s19 + $0x21] sm:$0xff]  ;;  %v2388_v44 = vld [vmem:[%s2086_s19 + $0x39] sm:$0xff] }
 0x101   : > { %2741 = vst [vmem:[#allocation18_spill] sm:$0xff] %v2371_v21  ;;  %v1145_v62 = vadd.f32 %v1129_v24, %v1095_v23  ;;  %v727_v26 = vmul.f32 %v2084_v40, %v2113_v48  ;;  %v950_v20 = vadd.f32 %v934_v56, %v900_v7  ;;  %v784_v36 = vadd.f32 %v768_v28, %v718_v5  ;;  %v2391_v24 = vld [vmem:[%s2086_s19 + $0x3a] sm:$0xff]  ;;  %v2399_v56 = vld [vmem:[%s2086_s19 + $0x22] sm:$0xff] }
 0x102   : > { %2742 = vst [vmem:[#allocation19_spill] sm:$0xff] %v2378_v49  ;;  %v1100_v22 = vadd.f32 %v1084_v50, %v1050_v13  ;;  %v872_v3 = vmul.f32 %v2123_v51, %v2364_v53  ;;  %v1193_v18 = vmin.f32 %v1177_v35, 6.0  ;;  %v1088_v41 = vmul.f32 %v2163_v1, %v2368_v37  ;;  %v2404_v53 = vld [vmem:[%s2086_s19 + $0x50] sm:$0xff] }
 0x103   : > { %v1165_v23 = vadd.f32 %v2272_v19, %v1145_v62  ;;  %v1138_v50 = vmul.f32 %v2173_v4, %v2371_v21  ;;  %v1000_v13 = vadd.f32 %v984_v14, %v950_v20  ;;  %v834_v7 = vadd.f32 %v818_v33, %v784_v36  ;;  %v2417_v36 = vld [vmem:[%s2086_s19 + $0x51] sm:$0xff] }
 0x104   : > { %v1150_v5 = vadd.f32 %v1134_v43, %v1100_v22  ;;  %v922_v28 = vmul.f32 %v2133_v54, %v2378_v49  ;;  %1631 = vmatmul.msk.f32.vlgmr.msra.gmra.mxu0 %vm1219_vm4, %v1193_v18  ;;  %v722_v62 = vmul.f32 %v2084_v40, %v2385_v29  ;;  %v772_v21 = vmul.f32 %v2102_v45, %v2388_v44 }
 0x105   : > { %v1181_v35 = vmax.f32 %v1165_v23, 0.0  ;;  %v822_v43 = vmul.f32 %v2110_v47, %v2391_v24  ;;  %v1054_v33 = vadd.f32 %v1038_v57, %v1000_v13  ;;  %v888_v22 = vadd.f32 %v872_v3, %v834_v7  ;;  %v2426_v3 = vld [vmem:[%s2086_s19 + $0x52] sm:$0xff] }
 0x106   : > { %v1170_v14 = vadd.f32 %v2272_v19, %v1150_v5  ;;  %v972_v20 = vmul.f32 %v2143_v58, %v2399_v56  ;;  %v1026_v23 = vmul.f32 %v2151_v60, %v2385_v29  ;;  %v788_v49 = vadd.f32 %v772_v21, %v722_v62 }
 0x107   : > { %v1197_v18 = vmin.f32 %v1181_v35, 6.0  ;;  %v876_v37 = vmul.f32 %v2123_v51, %v2404_v53  ;;  %v1104_v0 = vadd.f32 %v1088_v41, %v1054_v33  ;;  %v938_v48 = vadd.f32 %v922_v28, %v888_v22 }
 0x108   : > { %v1186_v27 = vmax.f32 %v1170_v14, 0.0  ;;  %v1076_v57 = vmul.f32 %v2163_v1, %v2388_v44  ;;  %v1126_v5 = vmul.f32 %v2173_v4, %v2391_v24  ;;  %v838_v13 = vadd.f32 %v822_v43, %v788_v49 }
 0x109   : > { %1635 = vmatmul.msk.f32.vlgmr.msra.gmra.mxu1 %vm1219_vm4, %v1197_v18  ;;  %v926_v21 = vmul.f32 %v2133_v54, %v2417_v36  ;;  %v777_v7 = vmul.f32 %v2102_v45, %v2126_v52  ;;  %v1154_v41 = vadd.f32 %v1138_v50, %v1104_v0  ;;  %v988_v28 = vadd.f32 %v972_v20, %v938_v48 }
 0x10a   : > { %v1202_v35 = vmin.f32 %v1186_v27, 6.0  ;;  %v827_v62 = vmul.f32 %v2110_v47, %v2136_v55  ;;  %v892_v14 = vadd.f32 %v876_v37, %v838_v13  ;;  %v976_v33 = vmul.f32 %v2143_v58, %v2426_v3 }
 0x10b   : > { %v793_v22 = vadd.f32 %v777_v7, %v727_v26  ;;  %v881_v49 = vmul.f32 %v2123_v51, %v2146_v59  ;;  %v1174_v43 = vadd.f32 %v2272_v19, %v1154_v41  ;;  %v1042_v18 = vadd.f32 %v1026_v23, %v988_v28 }
 0x10c   : > { %1640 = vmatmul.msk.f32.gmra.mxu2 %vm1219_vm4, %v1202_v35  ;;  %v1030_v0 = vmul.f32 %v2151_v60, %v2264_v8  ;;  %v1080_v48 = vmul.f32 %v2163_v1, %v2267_v12  ;;  %v942_v27 = vadd.f32 %v926_v21, %v892_v14  ;;  %v1130_v37 = vmul.f32 %v2173_v4, %v2282_v25 }
 0x10d   : > { %v843_v50 = vadd.f32 %v827_v62, %v793_v22  ;;  %v931_v26 = vmul.f32 %v2133_v54, %v2154_v61  ;;  %v1190_v59 = vmax.f32 %v1174_v43, 0.0  ;;  %v1092_v20 = vadd.f32 %v1076_v57, %v1042_v18 }
 0x10e   : > { %v731_v13 = vmul.f32 %v2084_v40, %v2180_v9  ;;  %v781_v23 = vmul.f32 %v2102_v45, %v2183_v10  ;;  %v992_v7 = vadd.f32 %v976_v33, %v942_v27  ;;  %v981_v21 = vmul.f32 %v2143_v58, %v2166_v2  ;;  %v1594_v27 = vld [vmem:[%s2086_s19 + $0xd8] sm:$0xff] }
 0x10f   : > { %v897_v35 = vadd.f32 %v881_v49, %v843_v50  ;;  %v831_v41 = vmul.f32 %v2110_v47, %v2186_v11  ;;  %v1206_v28 = vmin.f32 %v1190_v59, 6.0  ;;  %v1142_v61 = vadd.f32 %v1126_v5, %v1092_v20  ;;  %v1611_v50 = vld [vmem:[%s2086_s19 + $0xd9] sm:$0xff] }
 0x110   : > { %v797_v62 = vadd.f32 %v781_v23, %v731_v13  ;;  %v885_v57 = vmul.f32 %v2123_v51, %v2195_v15  ;;  %v1046_v14 = vadd.f32 %v1030_v0, %v992_v7  ;;  %v1035_v33 = vmul.f32 %v2151_v60, %v2180_v9 }
 0x111   : > { %v947_v22 = vadd.f32 %v931_v26, %v897_v35  ;;  %v1085_v49 = vmul.f32 %v2163_v1, %v2183_v10  ;;  %1644 = vmatmul.msk.f32.gmra.mxu3 %vm1219_vm4, %v1206_v28  ;;  %v1162_v2 = vadd.f32 %v2272_v19, %v1142_v61  ;;  %v1135_v43 = vmul.f32 %v2173_v4, %v2186_v11  ;;  %v1628_v28 = vld [vmem:[%s2086_s19 + $0xda] sm:$0xff] }
 0x112   : > { %v847_v5 = vadd.f32 %v831_v41, %v797_v62  ;;  %v935_v18 = vmul.f32 %v2133_v54, %v2198_v16  ;;  %v1096_v15 = vadd.f32 %v1080_v48, %v1046_v14  ;;  %v719_v9 = vmul.f32 %v2084_v40, %v2220_v30  ;;  %v2743_v62 = vld [vmem:[#allocation5_spill] sm:$0xff] }
 0x113   : > { %v997_v0 = vadd.f32 %v981_v21, %v947_v22  ;;  %v769_v10 = vmul.f32 %v2102_v45, %v2223_v31  ;;  %v1178_v26 = vmax.f32 %v1162_v2, 0.0  ;;  %v985_v11 = vmul.f32 %v2143_v58, %v2201_v17 }
 0x114   : > { %v901_v59 = vadd.f32 %v885_v57, %v847_v5  ;;  %v819_v20 = vmul.f32 %v2110_v47, %v2226_v32  ;;  %v1146_v16 = vadd.f32 %v1130_v37, %v1096_v15  ;;  %v873_v23 = vmul.f32 %v2123_v51, %v2233_v34  ;;  %v2745_v15 = vld [vmem:[#allocation3_spill] sm:$0xff] }
 0x115   : > { %v1051_v48 = vadd.f32 %v1035_v33, %v997_v0  ;;  %v785_v13 = vadd.f32 %v769_v10, %v719_v9  ;;  %v1194_v7 = vmin.f32 %v1178_v26, 6.0  ;;  %v1039_v35 = vmul.f32 %v2151_v60, %v1594_v27 }
 0x116   : > { %v951_v30 = vadd.f32 %v935_v18, %v901_v59  ;;  %v1089_v31 = vmul.f32 %v2163_v1, %v1611_v50  ;;  %v1166_v21 = vadd.f32 %v2272_v19, %v1146_v16  ;;  %v923_v32 = vmul.f32 %v2133_v54, %v2236_v38 }
 0x117   : > { %v1101_v41 = vadd.f32 %v1085_v49, %v1051_v48  ;;  %v835_v17 = vadd.f32 %v819_v20, %v785_v13  ;;  %1632 = vmatmul.msk.f32.gmra.mxu0 %vm1219_vm4, %v1194_v7  ;;  %v973_v34 = vmul.f32 %v2143_v58, %v2239_v39  ;;  %v723_v61 = vmul.f32 %v2084_v40, %v2252_v63  ;;  %v2744_v49 = vld [vmem:[#allocation6_spill] sm:$0xff]  ;;  %v2746_v48 = vld [vmem:[#allocation7_spill] sm:$0xff] }
 0x118   : > { %v1001_v37 = vadd.f32 %v985_v11, %v951_v30  ;;  %v773_v57 = vmul.f32 %v2102_v45, %v2743_v62  ;;  %v1182_v14 = vmax.f32 %v1166_v21, 0.0  ;;  %v823_v2 = vmul.f32 %v2110_v47, %v2744_v49  ;;  %v2747_v30 = vld [vmem:[#allocation8_spill] sm:$0xff] }
 0x119   : > { %v1151_v22 = vadd.f32 %v1135_v43, %v1101_v41  ;;  %v889_v33 = vadd.f32 %v873_v23, %v835_v17  ;;  %v1139_v38 = vmul.f32 %v2173_v4, %v1628_v28  ;;  %v877_v0 = vmul.f32 %v2123_v51, %v2745_v15  ;;  %v2748_v41 = vld [vmem:[#allocation4_spill] sm:$0xff]  ;;  %v2752_v15 = vld [vmem:[#allocation13_spill] sm:$0xff] }
 0x11a   : > { %v1055_v5 = vadd.f32 %v1039_v35, %v1001_v37  ;;  %v789_v18 = vadd.f32 %v773_v57, %v723_v61  ;;  %v1198_v39 = vmin.f32 %v1182_v14, 6.0  ;;  %v1027_v9 = vmul.f32 %v2151_v60, %v2252_v63  ;;  %v2749_v37 = vld [vmem:[#allocation9_spill] sm:$0xff]  ;;  %v2750_v57 = vld [vmem:[#allocation10_spill] sm:$0xff] }
 0x11b   : > { %v1171_v27 = vadd.f32 %v2272_v19, %v1151_v22  ;;  %v939_v50 = vadd.f32 %v923_v32, %v889_v33  ;;  %v1077_v43 = vmul.f32 %v2163_v1, %v2743_v62  ;;  %v927_v59 = vmul.f32 %v2133_v54, %v2092_v42 }
 0x11c   : > { %v1105_v10 = vadd.f32 %v1089_v31, %v1055_v5  ;;  %v839_v26 = vadd.f32 %v823_v2, %v789_v18  ;;  %1636 = vmatmul.msk.f32.gmra.mxu1 %vm1219_vm4, %v1198_v39  ;;  %v977_v16 = vmul.f32 %v2143_v58, %v2105_v46  ;;  %v728_v13 = vmul.f32 %v2084_v40, %v2746_v48  ;;  %v2751_v2 = vld [vmem:[#allocation12_spill] sm:$0xff]  ;;  %v2753_v39 = vld [vmem:[#allocation14_spill] sm:$0xff] }
 0x11d   : > { %v1187_v11 = vmax.f32 %v1171_v27, 0.0  ;;  %v989_v20 = vadd.f32 %v973_v34, %v939_v50  ;;  %v778_v7 = vmul.f32 %v2102_v45, %v2300_v6  ;;  %v828_v35 = vmul.f32 %v2110_v47, %v2747_v30 }
 0x11e   : > { %v1155_v23 = vadd.f32 %v1139_v38, %v1105_v10  ;;  %v893_v63 = vadd.f32 %v877_v0, %v839_v26  ;;  %v1127_v21 = vmul.f32 %v2173_v4, %v2744_v49  ;;  %v1031_v28 = vmul.f32 %v2151_v60, %v2748_v41  ;;  %v2754_v10 = vld [vmem:[#allocation11_spill] sm:$0xff] }
 0x11f   : > { %v1203_v31 = vmin.f32 %v1187_v11, 6.0  ;;  %v1043_v42 = vadd.f32 %v1027_v9, %v989_v20  ;;  %v794_v32 = vadd.f32 %v778_v7, %v728_v13  ;;  %v882_v34 = vmul.f32 %v2123_v51, %v2749_v37  ;;  %v2755_v11 = vld [vmem:[#allocation15_spill] sm:$0xff]  ;;  %v2759_v37 = vld [vmem:[#allocation18_spill] sm:$0xff] }
 0x120   : > { %v1175_v46 = vadd.f32 %v2272_v19, %v1155_v23  ;;  %v943_v17 = vadd.f32 %v927_v59, %v893_v63  ;;  %v1081_v62 = vmul.f32 %v2163_v1, %v2126_v52  ;;  %v932_v14 = vmul.f32 %v2133_v54, %v2750_v57  ;;  %v2756_v63 = vld [vmem:[#allocation17_spill] sm:$0xff] }
 0x121   : > { %1641 = vmatmul.msk.f32.gmra.mxu2 %vm1219_vm4, %v1203_v31  ;;  %v1093_v61 = vadd.f32 %v1077_v43, %v1043_v42  ;;  %v844_v49 = vadd.f32 %v828_v35, %v794_v32  ;;  %v732_v5 = vmul.f32 %v2084_v40, %v2751_v2  ;;  %v1131_v18 = vmul.f32 %v2173_v4, %v2136_v55  ;;  %v1595_v42 = vld [vmem:[%s2086_s19 + $0xe0] sm:$0xff] }
 0x122   : > { %v1191_v22 = vmax.f32 %v1175_v46, 0.0  ;;  %v993_v33 = vadd.f32 %v977_v16, %v943_v17  ;;  %v782_v0 = vmul.f32 %v2102_v45, %v2752_v15  ;;  %v832_v27 = vmul.f32 %v2110_v47, %v2753_v39 }
 0x123   : > { %v1143_v38 = vadd.f32 %v1127_v21, %v1093_v61  ;;  %v898_v9 = vadd.f32 %v882_v34, %v844_v49  ;;  %v982_v43 = vmul.f32 %v2143_v58, %v2754_v10  ;;  %v1036_v59 = vmul.f32 %v2151_v60, %v2751_v2  ;;  %v2757_v21 = vld [vmem:[#allocation16_spill] sm:$0xff]  ;;  %v1612_v61 = vld [vmem:[%s2086_s19 + $0xe1] sm:$0xff] }
 0x124   : > { %v1207_v52 = vmin.f32 %v1191_v22, 6.0  ;;  %v1047_v50 = vadd.f32 %v1031_v28, %v993_v33  ;;  %v798_v55 = vadd.f32 %v782_v0, %v732_v5  ;;  %v886_v20 = vmul.f32 %v2123_v51, %v2755_v11  ;;  %v2758_v28 = vld [vmem:[#allocation19_spill] sm:$0xff] }
 0x125   : > { %v1163_v26 = vadd.f32 %v2272_v19, %v1143_v38  ;;  %v948_v13 = vadd.f32 %v932_v14, %v898_v9  ;;  %v1086_v23 = vmul.f32 %v2163_v1, %v2752_v15  ;;  %v936_v7 = vmul.f32 %v2133_v54, %v2756_v63 }
 0x126   : > { %1645 = vmatmul.msk.f32.gmra.mxu3 %vm1219_vm4, %v1207_v52  ;;  %v1097_v16 = vadd.f32 %v1081_v62, %v1047_v50  ;;  %v848_v31 = vadd.f32 %v832_v27, %v798_v55  ;;  %v720_v41 = vmul.f32 %v2084_v40, %v2757_v21  ;;  %v770_v46 = vmul.f32 %v2102_v45, %v2758_v28 }
 0x127   : > { %v1179_v35 = vmax.f32 %v1163_v26, 0.0  ;;  %v998_v32 = vadd.f32 %v982_v43, %v948_v13  ;;  %v986_v34 = vmul.f32 %v2143_v58, %v2759_v37  ;;  %v820_v62 = vmul.f32 %v2110_v47, %v2399_v56 }
 0x128   : > { %v1147_v17 = vadd.f32 %v1131_v18, %v1097_v16  ;;  %v902_v14 = vadd.f32 %v886_v20, %v848_v31  ;;  %v786_v22 = vadd.f32 %v770_v46, %v720_v41  ;;  %v874_v33 = vmul.f32 %v2123_v51, %v2385_v29  ;;  %v1629_v29 = vld [vmem:[%s2086_s19 + $0xe2] sm:$0xff]  ;;  %s1647_s19 = sshll.u32 %s1747_s24, 7 }
 0x129   : > { %v1195_v57 = vmin.f32 %v1179_v35, 6.0  ;;  %v1052_v2 = vadd.f32 %v1036_v59, %v998_v32  ;;  %v1136_v5 = vmul.f32 %v2173_v4, %v2753_v39  ;;  %v1040_v38 = vmul.f32 %v2151_v60, %v1595_v42  ;;  %s2613_s14 = scalar_lea.vmem %s1842_s13, %s1647_s19 }
 0x12a   : > { %v1167_v49 = vadd.f32 %v2272_v19, %v1147_v17  ;;  %v952_v18 = vadd.f32 %v936_v7, %v902_v14  ;;  %v1090_v56 = vmul.f32 %v2163_v1, %v1612_v61  ;;  %v836_v15 = vadd.f32 %v820_v62, %v786_v22  ;;  %v1335_v22 = vld [vmem:[%s2613_s14] sm:$0xff] }
 0x12b   : > { %1633 = vmatmul.msk.f32.gmra.mxu0 %vm1219_vm4, %v1195_v57  ;;  %v924_v0 = vmul.f32 %v2133_v54, %v2388_v44  ;;  %v1102_v52 = vadd.f32 %v1086_v23, %v1052_v2  ;;  %v724_v50 = vmul.f32 %v2084_v40, %v2404_v53  ;;  %v774_v39 = vmul.f32 %v2102_v45, %v2417_v36 }
 0x12c   : > { %v1183_v27 = vmax.f32 %v1167_v49, 0.0  ;;  %v1002_v9 = vadd.f32 %v986_v34, %v952_v18  ;;  %v890_v10 = vadd.f32 %v874_v33, %v836_v15  ;;  %v974_v43 = vmul.f32 %v2143_v58, %v2391_v24  ;;  %v1339_v15 = vld [vmem:[%s2613_s14 + $0x20] sm:$0xff] }
 0x12d   : > { %v824_v26 = vmul.f32 %v2110_v47, %v2426_v3  ;;  %v1152_v55 = vadd.f32 %v1136_v5, %v1102_v52  ;;  %v790_v44 = vadd.f32 %v774_v39, %v724_v50  ;;  %v878_v11 = vmul.f32 %v2123_v51, %v2264_v8  ;;  %v1347_v5 = vld [vmem:[%s2613_s14 + $0x60] sm:$0xff]  ;;  %v1344_v50 = vld [vmem:[%s2613_s14 + $0x48] sm:$0xff] }
 0x12e   : > { %v1199_v59 = vmin.f32 %v1183_v27, 6.0  ;;  %v1056_v20 = vadd.f32 %v1040_v38, %v1002_v9  ;;  %v1140_v40 = vmul.f32 %v2173_v4, %v1629_v29  ;;  %v940_v16 = vadd.f32 %v924_v0, %v890_v10 }
 0x12f   : > { %v1028_v45 = vmul.f32 %v2151_v60, %v2404_v53  ;;  %v1172_v24 = vadd.f32 %v2272_v19, %v1152_v55  ;;  %v840_v13 = vadd.f32 %v824_v26, %v790_v44  ;;  %v928_v47 = vmul.f32 %v2133_v54, %v2267_v12 }
 0x130   : > { %1637 = vmatmul.msk.f32.gmra.mxu1 %vm1219_vm4, %v1199_v59  ;;  %v1106_v23 = vadd.f32 %v1090_v56, %v1056_v20  ;;  %v990_v63 = vadd.f32 %v974_v43, %v940_v16  ;;  %v1078_v51 = vmul.f32 %v2163_v1, %v2417_v36  ;;  %v978_v35 = vmul.f32 %v2143_v58, %v2282_v25  ;;  %v1336_v43 = vld [vmem:[%s2613_s14 + $0x8] sm:$0xff] }
 0x131   : > { %v1188_v8 = vmax.f32 %v1172_v24, 0.0  ;;  %v894_v7 = vadd.f32 %v878_v11, %v840_v13  ;;  %v1128_v42 = vmul.f32 %v2173_v4, %v2426_v3  ;;  %v1032_v54 = vmul.f32 %v2151_v60, %v2746_v48  ;;  %v1348_v59 = vld [vmem:[%s2613_s14 + $0x68] sm:$0xff] }
 0x132   : > { %v1156_v31 = vadd.f32 %v1140_v40, %v1106_v23  ;;  %v1044_v53 = vadd.f32 %v1028_v45, %v990_v63  ;;  %v1082_v46 = vmul.f32 %v2163_v1, %v2300_v6  ;;  %v1132_v3 = vmul.f32 %v2173_v4, %v2747_v30  ;;  %v2610_v4 = vld [vmem:[%s2700_s6] ss:$0 sm:$0xff]  ;;  %v1340_v16 = vld [vmem:[%s2613_s14 + $0x28] sm:$0xff] }
 0x133   : > { %v1204_v21 = vmin.f32 %v1188_v8, 6.0  ;;  %v944_v41 = vadd.f32 %v928_v47, %v894_v7  ;;  %v1343_v30 = vld [vmem:[%s2613_s14 + $0x40] sm:$0xff]  ;;  %v1345_v47 = vld [vmem:[%s2613_s14 + $0x50] sm:$0xff] }
 0x134   : > { %v1176_v12 = vadd.f32 %v2272_v19, %v1156_v31  ;;  %v1094_v28 = vadd.f32 %v1078_v51, %v1044_v53  ;;  %v1337_v8 = vld [vmem:[%s2613_s14 + $0x10] sm:$0xff] }
 0x135   : > { %1642 = vmatmul.msk.f32.gmra.mxu2 %vm1219_vm4, %v1204_v21  ;;  %v994_v36 = vadd.f32 %v978_v35, %v944_v41  ;;  %v1349_v31 = vld [vmem:[%s2613_s14 + $0x70] sm:$0xff] }
 0x136   : > { %v1192_v58 = vmax.f32 %v1176_v12, 0.0  ;;  %v1144_v25 = vadd.f32 %v1128_v42, %v1094_v28 }
 0x137   : > { %v1048_v17 = vadd.f32 %v1032_v54, %v994_v36  ;;  %v1341_v54 = vld [vmem:[%s2613_s14 + $0x30] sm:$0xff] }
 0x138   : > { %v1208_v32 = vmin.f32 %v1192_v58, 6.0  ;;  %v1164_v60 = vadd.f32 %v2272_v19, %v1144_v25 }
 0x139   : > { %v1098_v48 = vadd.f32 %v1082_v46, %v1048_v17  ;;  %v1346_v46 = vld [vmem:[%s2613_s14 + $0x58] sm:$0xff] }
 0x13a   : > { %1646 = vmatmul.msk.f32.gmra.mxu3 %vm1219_vm4, %v1208_v32  ;;  %v1180_v37 = vmax.f32 %v1164_v60, 0.0  ;;  %v1338_v17 = vld [vmem:[%s2613_s14 + $0x18] sm:$0xff] }
 0x13b   : > { %v1148_v34 = vadd.f32 %v1132_v3, %v1098_v48  ;;  %v1350_v48 = vld [vmem:[%s2613_s14 + $0x78] sm:$0xff] }
 0x13c   : > { %v1196_v61 = vmin.f32 %v1180_v37, 6.0 }
 0x13d   : > { %v1168_v62 = vadd.f32 %v2272_v19, %v1148_v34 }
 0x13e   : > { %1634 = vmatmul.msk.f32.gmra.mxu0 %vm1219_vm4, %v1196_v61 }
 0x13f   : > { %v1184_v1 = vmax.f32 %v1168_v62, 0.0  ;;  %v1342_v62 = vld [vmem:[%s2613_s14 + $0x38] sm:$0xff] }
 0x141   : > { %v1200_v6 = vmin.f32 %v1184_v1, 6.0 }
 0x143   : > { %1638 = vmatmul.msk.f32.gmra.mxu1 %vm1219_vm4, %v1200_v6 }
 0x181   : > { %v1309_v19 = vpop.f32.mrf.mxu2  ;;  %v1285_v14 = vpop.f32.mrf.mxu0 }
 0x182   : > { %v1310_v57 = vadd.f32 %v2610_v4, %v1309_v19  ;;  %v1286_v49 = vadd.f32 %v2610_v4, %v1285_v14 }
 0x183   : > { %v1321_v2 = vpop.f32.mrf.mxu3 }
 0x184   : > { %v1359_v33 = vadd.f32 %v1343_v30, %v1310_v57  ;;  %v1322_v38 = vadd.f32 %v2610_v4, %v1321_v2  ;;  %v1351_v18 = vadd.f32 %v1335_v22, %v1286_v49 }
 0x186   : > { %1376 = vst.msk [vmem:[%s1847_s18 + $0x40] sm:$0xff] %vm1367_vm5, %v1359_v33  ;;  %v1297_v56 = vpop.f32.mrf.mxu1  ;;  %v1363_v0 = vadd.f32 %v1347_v5, %v1322_v38 }
 0x187   : > { %1368 = vst.msk [vmem:[%s1847_s18] sm:$0xff] %vm1367_vm5, %v1351_v18  ;;  %v1298_v27 = vadd.f32 %v2610_v4, %v1297_v56 }
 0x188   : > { %1380 = vst.msk [vmem:[%s1847_s18 + $0x60] sm:$0xff] %vm1367_vm5, %v1363_v0 }
 0x189   : > { %v1355_v52 = vadd.f32 %v1339_v15, %v1298_v27 }
 0x18b   : > { %1372 = vst.msk [vmem:[%s1847_s18 + $0x20] sm:$0xff] %vm1367_vm5, %v1355_v52 }
 0x18f   : > { %v1312_v29 = vpop.f32.mrf.mxu2 }
 0x190   : > { %v1313_v39 = vadd.f32 %v2610_v4, %v1312_v29 }
 0x192   : > { %v1360_v9 = vadd.f32 %v1344_v50, %v1313_v39 }
 0x194   : > { %1377 = vst.msk [vmem:[%s1847_s18 + $0x48] sm:$0xff] %vm1367_vm5, %v1360_v9  ;;  %v1288_v10 = vpop.f32.mrf.mxu0  ;;  %v1324_v26 = vpop.f32.mrf.mxu3 }
 0x195   : > { %v1289_v55 = vadd.f32 %v2610_v4, %v1288_v10  ;;  %v1325_v44 = vadd.f32 %v2610_v4, %v1324_v26 }
 0x197   : > { %v1352_v11 = vadd.f32 %v1336_v43, %v1289_v55  ;;  %v1364_v20 = vadd.f32 %v1348_v59, %v1325_v44 }
 0x199   : > { %1369 = vst.msk [vmem:[%s1847_s18 + $0x8] sm:$0xff] %vm1367_vm5, %v1352_v11  ;;  %v1300_v40 = vpop.f32.mrf.mxu1 }
 0x19a   : > { %v1301_v45 = vadd.f32 %v2610_v4, %v1300_v40  ;;  %1381 = vst.msk [vmem:[%s1847_s18 + $0x68] sm:$0xff] %vm1367_vm5, %v1364_v20 }
 0x19c   : > { %v1356_v24 = vadd.f32 %v1340_v16, %v1301_v45 }
 0x19e   : > { %1373 = vst.msk [vmem:[%s1847_s18 + $0x28] sm:$0xff] %vm1367_vm5, %v1356_v24 }
 0x1a4   : > { %v1315_v13 = vpop.f32.mrf.mxu2 }
 0x1a5   : > { %v1316_v23 = vadd.f32 %v2610_v4, %v1315_v13 }
 0x1a7   : > { %v1361_v63 = vadd.f32 %v1345_v47, %v1316_v23 }
 0x1a8   : > { %v1291_v51 = vpop.f32.mrf.mxu0 }
 0x1a9   : > { %v1292_v7 = vadd.f32 %v2610_v4, %v1291_v51  ;;  %1378 = vst.msk [vmem:[%s1847_s18 + $0x50] sm:$0xff] %vm1367_vm5, %v1361_v63  ;;  %v1327_v35 = vpop.f32.mrf.mxu3 }
 0x1aa   : > { %v1328_v53 = vadd.f32 %v2610_v4, %v1327_v35 }
 0x1ab   : > { %v1353_v42 = vadd.f32 %v1337_v8, %v1292_v7 }
 0x1ac   : > { %v1365_v21 = vadd.f32 %v1349_v31, %v1328_v53 }
 0x1ad   : > { %1370 = vst.msk [vmem:[%s1847_s18 + $0x10] sm:$0xff] %vm1367_vm5, %v1353_v42  ;;  %v1303_v41 = vpop.f32.mrf.mxu1 }
 0x1ae   : > { %v1304_v12 = vadd.f32 %v2610_v4, %v1303_v41  ;;  %1382 = vst.msk [vmem:[%s1847_s18 + $0x70] sm:$0xff] %vm1367_vm5, %v1365_v21 }
 0x1b0   : > { %v1357_v28 = vadd.f32 %v1341_v54, %v1304_v12 }
 0x1b2   : > { %1374 = vst.msk [vmem:[%s1847_s18 + $0x30] sm:$0xff] %vm1367_vm5, %v1357_v28 }
 0x1b8   : > { %v1318_v36 = vpop.f32.mrf.mxu2 }
 0x1b9   : > { %v1319_v58 = vadd.f32 %v2610_v4, %v1318_v36 }
 0x1bb   : > { %v1294_v25 = vpop.f32.mrf.mxu0  ;;  %v1362_v3 = vadd.f32 %v1346_v46, %v1319_v58 }
 0x1bc   : > { %v1295_v32 = vadd.f32 %v2610_v4, %v1294_v25 }
 0x1bd   : > { %1379 = vst.msk [vmem:[%s1847_s18 + $0x58] sm:$0xff] %vm1367_vm5, %v1362_v3  ;;  %v1330_v60 = vpop.f32.mrf.mxu3 }
 0x1be   : > { %v1354_v37 = vadd.f32 %v1338_v17, %v1295_v32  ;;  %v1331_v34 = vadd.f32 %v2610_v4, %v1330_v60 }
 0x1c0   : > { %1371 = vst.msk [vmem:[%s1847_s18 + $0x18] sm:$0xff] %vm1367_vm5, %v1354_v37  ;;  %v1306_v61 = vpop.f32.mrf.mxu1  ;;  %v1366_v1 = vadd.f32 %v1350_v48, %v1331_v34 }
 0x1c1   : > { %v1307_v6 = vadd.f32 %v2610_v4, %v1306_v61 }
 0x1c2   : > { %1383 = vst.msk [vmem:[%s1847_s18 + $0x78] sm:$0xff] %vm1367_vm5, %v1366_v1 }
 0x1c3   : > { %v1358_v19 = vadd.f32 %v1342_v62, %v1307_v6 }
 0x1c5   : > { %1375 = vst.msk [vmem:[%s1847_s18 + $0x38] sm:$0xff] %vm1367_vm5, %v1358_v19 }
 0x1c6 PF: > { %s17_s28 = sadd.s32 1, %s1763_s28   ;;  %s2760_s24 = smov %s1755_s26 }
 0x1c7   : > { %p14_p8 = scmp.ge.s32.totalorder %s17_s28, 6   ;;  %s2761_s25 = smov %s1759_s27 }
 0x1c8   : > { %s2762_s26 = smov %s2765_s29  ;;  %s2763_s27 = smov %s2769_s30 }
 0x1c9   :  { %16 = sbr.rel (!%p14_p8) target bundleno = 3 (0x3), region = 90 }

// kernel: _lambda_.2
= control target key start
LH: loop header
LB: loop body
LE: loop exit
PB: predicated region body
PF: predicated region fallthrough
CT: control target
= control target key end

     0   :  { %s1762_s24 = smov 0   ;;  %s1764_s25 = smov 0   ;;  %s2613_s0 = inlined_call_operand.vmem [shape: f32[2,256,4], index: 0, kind: input, shape index: {}]   ;;  %s2614_s1 = inlined_call_operand.vmem [shape: f32[4,24], index: 1, kind: input, shape index: {}]   ;;  %s2615_s2 = inlined_call_operand.vmem [shape: f32[1,24], index: 2, kind: input, shape index: {}]   ;;  %s2616_s3 = inlined_call_operand.vmem [shape: f32[3,3,24], index: 3, kind: input, shape index: {}]   ;;  %s2617_s4 = inlined_call_operand.vmem [shape: f32[1,24], index: 4, kind: input, shape index: {}]   ;;  %s2618_s5 = inlined_call_operand.vmem [shape: f32[24,8], index: 5, kind: input, shape index: {}]   ;;  %s2619_s6 = inlined_call_operand.vmem [shape: f32[1,8], index: 6, kind: input, shape index: {}]   ;;  %s2620_s7 = inlined_call_operand.vmem [shape: f32[2,256,8], index: 7, kind: output, shape index: {}]  }
   0x1   :  { %s1766_s26 = smov 0   ;;  %s1768_s27 = smov 0  }
   0x2   :  { %s1770_s28 = smov 0  }
   0x3 LB: > { %s26_s29 = sadd.s32 1, %s1711_s26  ;;  %s29_s30 = sadd.s32 1, %s1715_s27  ;;  %s1719_s28 = sphi %s1770_s28, %s17_s28   ;;  %s1715_s27 = sphi %s1768_s27, %s2679_s27   ;;  %s1711_s26 = sphi %s1766_s26, %s2678_s26   ;;  %s1707_s25 = sphi %s1764_s25, %s2677_s25   ;;  %s1703_s24 = sphi %s1762_s24, %s2676_s24  }
   0x4   : > { %p27_p0 = scmp.ge.s32.totalorder %s26_s29, 2  ;;  %p1449_p1 = scmp.ge.s32.totalorder %s1719_s28, 1 }
   0x5   : > { %p251_p2 = scmp.lt.s32.totalorder %s1719_s28, 5 }
   0x6   : > { %s2681_s29 = smov (%p27_p0, %s26_s29), 0  ;;  %s2683_s30 = smov (!%p27_p0, %s29_s30), %s1715_s27 }
   0x7   : > { %p252_p3 = pnand %p1449_p1, %p251_p2  ;;  %p31_p4 = scmp.ge.s32.totalorder %s2683_s30, 2 }
   0x9   : > { %s2685_s30 = smov (%p31_p4, %s2683_s30), 0  ;;  %255 = sbr.rel (%p252_p3) target bundleno = 453 (0x1c5), region = 48 }
   0xe   : > { %p287_p5 = scmp.lt.s32.totalorder %s1707_s25, 1  ;;  %s1452_s8 = sshll.u32 %s1703_s24, 4 }
   0xf   : > { %p295_p6 = scmp.lt.s32.totalorder %s1452_s8, 31  ;;  %p1455_p7 = scmp.ne.s32.totalorder %s1703_s24, 0 }
  0x10   : > { %s2687_s25 = smov (!%p287_p5, %s1707_s25), 1 }
  0x11   : > { %s2689_s8 = smov (!%p295_p6, %s1452_s8), 31  ;;  %s1615_s9 = sshll.u32 %s2687_s25, 8 }
  0x12   : > { %s1453_s10 = sshll.u32 %s2687_s25, 5  ;;  %s1798_s13 = scalar_lea.vmem %s2613_s0, %s1615_s9 }
  0x13   : > { %s298_s14 = sadd.s32 %s1453_s10, %s2689_s8  ;;  %305 = sbr.rel (%p1455_p7) target bundleno = 222 (0xde), region = 52 }
  0x14   : > { %s1454_s15 = sshll.u32 %s298_s14, 3 }
  0x15   : > { %s1803_s18 = scalar_lea.vmem %s2620_s7, %s1454_s15 }
  0x18   : > { %v384_v0 = vld [vmem:[%s2614_s1] sm:$0xf]  ;;  %vm486_vm0 = vcmask 1043456   ;;  %vm389_vm1 = vcmask 31744   ;;  %vm309_vm2 = vcmask 189440   ;;  %vm315_vm3 = vcmask 188416  }
  0x19   : > { %v368_v1 = vld [vmem:[%s1798_s13 + $0x80] sm:$0xff]  ;;  %1617 = vmatpush.msk.msra.mxu2 %vm486_vm0, %v384_v0  ;;  %1618 = vmatpush.msk.msra.mxu3 %vm486_vm0, %v384_v0  ;;  %v1721_v5 = vmov 0.0   ;;  %v369_v6 = vld [vmem:[%s1798_s13 + $0x88] sm:$0xff]  ;;  %v370_v10 = vld [vmem:[%s1798_s13 + $0x90] sm:$0xff]  ;;  %vm306_vm4 = vcmask 195584  }
  0x1a   : > { %v376_v2 = vld [vmem:[%s1798_s13 + $0xc0] sm:$0xff]  ;;  %1473 = vmatmul.msk.f32.vlgmr.msra.gmra.mxu2 %vm389_vm1, %v368_v1  ;;  %310 = vst.msk [vmem:[#allocation2 + $0x10] sm:$0x3] %vm309_vm2, %v1721_v5  ;;  %1456 = vmatpush.msk.msra.mxu0 %vm486_vm0, %v384_v0  ;;  %v377_v7 = vld [vmem:[%s1798_s13 + $0xc8] sm:$0xff]  ;;  %v378_v11 = vld [vmem:[%s1798_s13 + $0xd0] sm:$0xff] }
  0x1b   : > { %v352_v3 = vld [vmem:[%s1798_s13] sm:$0xff]  ;;  %1481 = vmatmul.msk.f32.vlgmr.msra.gmra.mxu3 %vm389_vm1, %v376_v2  ;;  %314 = vst.msk [vmem:[#allocation2 + $0x1a8] sm:$0x3] %vm309_vm2, %v1721_v5  ;;  %1616 = vmatpush.msk.msra.mxu1 %vm486_vm0, %v384_v0  ;;  %v353_v8 = vld [vmem:[%s1798_s13 + $0x8] sm:$0xff]  ;;  %v354_v12 = vld [vmem:[%s1798_s13 + $0x10] sm:$0xff] }
  0x1c   : > { %v360_v4 = vld [vmem:[%s1798_s13 + $0x40] sm:$0xff]  ;;  %317 = vst.msk [vmem:[#allocation2 + $0x18] sm:$0x1] %vm315_vm3, %v1721_v5  ;;  %1457 = vmatmul.msk.f32.vlgmr.msra.gmra.mxu0 %vm389_vm1, %v352_v3  ;;  %v361_v9 = vld [vmem:[%s1798_s13 + $0x48] sm:$0xff]  ;;  %v362_v13 = vld [vmem:[%s1798_s13 + $0x50] sm:$0xff] }
  0x1d   : > { %1465 = vmatmul.msk.f32.vlgmr.msra.gmra.mxu1 %vm389_vm1, %v360_v4  ;;  %318 = vst.msk [vmem:[#allocation2 + $0x30] sm:$0x1] %vm315_vm3, %v1721_v5  ;;  %v371_v14 = vld [vmem:[%s1798_s13 + $0x98] sm:$0xff]  ;;  %v372_v18 = vld [vmem:[%s1798_s13 + $0xa0] sm:$0xff]  ;;  %v373_v22 = vld [vmem:[%s1798_s13 + $0xa8] sm:$0xff] }
  0x1e   : > { %319 = vst.msk [vmem:[#allocation2 + $0x48] sm:$0x1] %vm315_vm3, %v1721_v5  ;;  %v379_v15 = vld [vmem:[%s1798_s13 + $0xd8] sm:$0xff]  ;;  %v380_v19 = vld [vmem:[%s1798_s13 + $0xe0] sm:$0xff]  ;;  %v381_v23 = vld [vmem:[%s1798_s13 + $0xe8] sm:$0xff] }
  0x1f   : > { %320 = vst.msk [vmem:[#allocation2 + $0x60] sm:$0x1] %vm315_vm3, %v1721_v5  ;;  %v355_v16 = vld [vmem:[%s1798_s13 + $0x18] sm:$0xff]  ;;  %v356_v20 = vld [vmem:[%s1798_s13 + $0x20] sm:$0xff]  ;;  %v357_v24 = vld [vmem:[%s1798_s13 + $0x28] sm:$0xff] }
  0x20   : > { %321 = vst.msk [vmem:[#allocation2 + $0x78] sm:$0x1] %vm315_vm3, %v1721_v5  ;;  %v363_v17 = vld [vmem:[%s1798_s13 + $0x58] sm:$0xff]  ;;  %v364_v21 = vld [vmem:[%s1798_s13 + $0x60] sm:$0xff]  ;;  %v365_v25 = vld [vmem:[%s1798_s13 + $0x68] sm:$0xff] }
  0x21   : > { %322 = vst.msk [vmem:[#allocation2 + $0x90] sm:$0x1] %vm315_vm3, %v1721_v5  ;;  %v374_v26 = vld [vmem:[%s1798_s13 + $0xb0] sm:$0xff]  ;;  %v375_v30 = vld [vmem:[%s1798_s13 + $0xb8] sm:$0xff]  ;;  %v1962_v34 = vld [vmem:[%s2615_s2] ss:$0 sm:$0xff] }
  0x22   : > { %323 = vst.msk [vmem:[#allocation2 + $0xa8] sm:$0x1] %vm315_vm3, %v1721_v5  ;;  %1474 = vmatmul.msk.f32.gmra.mxu2 %vm389_vm1, %v369_v6  ;;  %v382_v27 = vld [vmem:[%s1798_s13 + $0xf0] sm:$0xff]  ;;  %v383_v31 = vld [vmem:[%s1798_s13 + $0xf8] sm:$0xff] }
  0x23   : > { %1482 = vmatmul.msk.f32.gmra.mxu3 %vm389_vm1, %v377_v7  ;;  %324 = vst.msk [vmem:[#allocation2 + $0xc0] sm:$0x1] %vm315_vm3, %v1721_v5  ;;  %v358_v28 = vld [vmem:[%s1798_s13 + $0x30] sm:$0xff]  ;;  %v359_v32 = vld [vmem:[%s1798_s13 + $0x38] sm:$0xff] }
  0x24   : > { %325 = vst.msk [vmem:[#allocation2 + $0xd8] sm:$0x1] %vm315_vm3, %v1721_v5  ;;  %1458 = vmatmul.msk.f32.gmra.mxu0 %vm389_vm1, %v353_v8  ;;  %v366_v29 = vld [vmem:[%s1798_s13 + $0x70] sm:$0xff]  ;;  %v367_v33 = vld [vmem:[%s1798_s13 + $0x78] sm:$0xff] }
  0x25   : > { %1466 = vmatmul.msk.f32.gmra.mxu1 %vm389_vm1, %v361_v9  ;;  %326 = vst.msk [vmem:[#allocation2 + $0xf0] sm:$0x1] %vm315_vm3, %v1721_v5 }
  0x26   : > { %327 = vst.msk [vmem:[#allocation2 + $0x108] sm:$0x1] %vm315_vm3, %v1721_v5 }
  0x27   : > { %328 = vst.msk [vmem:[#allocation2 + $0x120] sm:$0x1] %vm315_vm3, %v1721_v5 }
  0x28   : > { %329 = vst.msk [vmem:[#allocation2 + $0x138] sm:$0x1] %vm315_vm3, %v1721_v5 }
  0x29   : > { %330 = vst.msk [vmem:[#allocation2 + $0x150] sm:$0x1] %vm315_vm3, %v1721_v5 }
  0x2a   : > { %331 = vst.msk [vmem:[#allocation2 + $0x168] sm:$0x1] %vm315_vm3, %v1721_v5  ;;  %1475 = vmatmul.msk.f32.gmra.mxu2 %vm389_vm1, %v370_v10 }
  0x2b   : > { %1483 = vmatmul.msk.f32.gmra.mxu3 %vm389_vm1, %v378_v11  ;;  %332 = vst.msk [vmem:[#allocation2 + $0x180] sm:$0x1] %vm315_vm3, %v1721_v5 }
  0x2c   : > { %334 = vst.msk [vmem:[#allocation2 + $0x11] sm:$0x1] %vm315_vm3, %v1721_v5  ;;  %1459 = vmatmul.msk.f32.gmra.mxu0 %vm389_vm1, %v354_v12 }
  0x2d   : > { %1467 = vmatmul.msk.f32.gmra.mxu1 %vm389_vm1, %v362_v13  ;;  %335 = vst.msk [vmem:[#allocation2 + $0x29] sm:$0x1] %vm315_vm3, %v1721_v5 }
  0x2e   : > { %336 = vst.msk [vmem:[#allocation2 + $0x41] sm:$0x1] %vm315_vm3, %v1721_v5 }
  0x2f   : > { %337 = vst.msk [vmem:[#allocation2 + $0x59] sm:$0x1] %vm315_vm3, %v1721_v5 }
  0x30   : > { %338 = vst.msk [vmem:[#allocation2 + $0x71] sm:$0x1] %vm315_vm3, %v1721_v5 }
  0x31   : > { %339 = vst.msk [vmem:[#allocation2 + $0x89] sm:$0x1] %vm315_vm3, %v1721_v5 }
  0x32   : > { %340 = vst.msk [vmem:[#allocation2 + $0xa1] sm:$0x1] %vm315_vm3, %v1721_v5  ;;  %1476 = vmatmul.msk.f32.gmra.mxu2 %vm389_vm1, %v371_v14 }
  0x33   : > { %1484 = vmatmul.msk.f32.gmra.mxu3 %vm389_vm1, %v379_v15  ;;  %341 = vst.msk [vmem:[#allocation2 + $0xb9] sm:$0x1] %vm315_vm3, %v1721_v5 }
  0x34   : > { %342 = vst.msk [vmem:[#allocation2 + $0xd1] sm:$0x1] %vm315_vm3, %v1721_v5  ;;  %1460 = vmatmul.msk.f32.gmra.mxu0 %vm389_vm1, %v355_v16 }
  0x35   : > { %1468 = vmatmul.msk.f32.gmra.mxu1 %vm389_vm1, %v363_v17  ;;  %343 = vst.msk [vmem:[#allocation2 + $0xe9] sm:$0x1] %vm315_vm3, %v1721_v5 }
  0x36   : > { %344 = vst.msk [vmem:[#allocation2 + $0x101] sm:$0x1] %vm315_vm3, %v1721_v5 }
  0x37   : > { %345 = vst.msk [vmem:[#allocation2 + $0x119] sm:$0x1] %vm315_vm3, %v1721_v5 }
  0x38   : > { %346 = vst.msk [vmem:[#allocation2 + $0x131] sm:$0x1] %vm315_vm3, %v1721_v5 }
  0x39   : > { %347 = vst.msk [vmem:[#allocation2 + $0x149] sm:$0x1] %vm315_vm3, %v1721_v5 }
  0x3a   : > { %348 = vst.msk [vmem:[#allocation2 + $0x161] sm:$0x1] %vm315_vm3, %v1721_v5  ;;  %1477 = vmatmul.msk.f32.gmra.mxu2 %vm389_vm1, %v372_v18 }
  0x3b   : > { %1485 = vmatmul.msk.f32.gmra.mxu3 %vm389_vm1, %v380_v19  ;;  %349 = vst.msk [vmem:[#allocation2 + $0x179] sm:$0x1] %vm315_vm3, %v1721_v5 }
  0x3c   : > { %350 = vst.msk [vmem:[#allocation2 + $0x191] sm:$0x1] %vm315_vm3, %v1721_v5  ;;  %1461 = vmatmul.msk.f32.gmra.mxu0 %vm389_vm1, %v356_v20 }
  0x3d   : > { %1469 = vmatmul.msk.f32.gmra.mxu1 %vm389_vm1, %v364_v21  ;;  %351 = vst.msk [vmem:[#allocation2 + $0x1a9] sm:$0x1] %vm315_vm3, %v1721_v5 }
  0x3e   : > { %307 = vst.msk [vmem:[#allocation2] sm:$0xff] %vm306_vm4, %v1721_v5 }
  0x3f   : > { %308 = vst.msk [vmem:[#allocation2 + $0x8] sm:$0xff] %vm306_vm4, %v1721_v5 }
  0x40   : > { %312 = vst.msk [vmem:[#allocation2 + $0x198] sm:$0xff] %vm306_vm4, %v1721_v5 }
  0x41   : > { %313 = vst.msk [vmem:[#allocation2 + $0x1a0] sm:$0xff] %vm306_vm4, %v1721_v5 }
  0x42   : > { %1478 = vmatmul.msk.f32.gmra.mxu2 %vm389_vm1, %v373_v22  ;;  %316 = vst.msk [vmem:[#allocation2] sm:$0x1] %vm315_vm3, %v1721_v5 }
  0x43   : > { %1486 = vmatmul.msk.f32.gmra.mxu3 %vm389_vm1, %v381_v23  ;;  %333 = vst.msk [vmem:[#allocation2 + $0x198] sm:$0x1] %vm315_vm3, %v1721_v5 }
  0x44   : > { %1462 = vmatmul.msk.f32.gmra.mxu0 %vm389_vm1, %v357_v24 }
  0x45   : > { %1470 = vmatmul.msk.f32.gmra.mxu1 %vm389_vm1, %v365_v25 }
  0x4a   : > { %1479 = vmatmul.msk.f32.gmra.mxu2 %vm389_vm1, %v374_v26 }
  0x4b   : > { %1487 = vmatmul.msk.f32.gmra.mxu3 %vm389_vm1, %v382_v27 }
  0x4c   : > { %1463 = vmatmul.msk.f32.gmra.mxu0 %vm389_vm1, %v358_v28 }
  0x4d   : > { %1471 = vmatmul.msk.f32.gmra.mxu1 %vm389_vm1, %v366_v29 }
  0x52   : > { %1480 = vmatmul.msk.f32.gmra.mxu2 %vm389_vm1, %v375_v30 }
  0x53   : > { %1488 = vmatmul.msk.f32.gmra.mxu3 %vm389_vm1, %v383_v31 }
  0x54   : > { %1464 = vmatmul.msk.f32.gmra.mxu0 %vm389_vm1, %v359_v32 }
  0x55   : > { %1472 = vmatmul.msk.f32.gmra.mxu1 %vm389_vm1, %v367_v33 }
  0x99   : > { %v507_v35 = vpop.f32.mrf.mxu0 }
  0x9a   : > { %v531_v36 = vpop.f32.mrf.mxu1  ;;  %v508_v37 = vadd.f32 %v1962_v34, %v507_v35 }
  0x9b   : > { %v532_v38 = vadd.f32 %v1962_v34, %v531_v36 }
  0x9c   : > { %v603_v39 = vmax.f32 %v508_v37, 0.0 }
  0x9d   : > { %v611_v40 = vmax.f32 %v532_v38, 0.0  ;;  %v555_v41 = vpop.f32.mrf.mxu2 }
  0x9e   : > { %v579_v42 = vpop.f32.mrf.mxu3  ;;  %v635_v43 = vmin.f32 %v603_v39, 6.0  ;;  %v556_v45 = vadd.f32 %v1962_v34, %v555_v41 }
  0x9f   : > { %v643_v44 = vmin.f32 %v611_v40, 6.0  ;;  %v580_v46 = vadd.f32 %v1962_v34, %v579_v42 }
  0xa0   : > { %668 = vst.msk [vmem:[#allocation2 + $0x19] sm:$0xff] %vm306_vm4, %v635_v43  ;;  %v619_v47 = vmax.f32 %v556_v45, 0.0 }
  0xa1   : > { %v627_v48 = vmax.f32 %v580_v46, 0.0  ;;  %676 = vst.msk [vmem:[#allocation2 + $0x79] sm:$0xff] %vm306_vm4, %v643_v44  ;;  %v510_v49 = vpop.f32.mrf.mxu0 }
  0xa2   : > { %v534_v50 = vpop.f32.mrf.mxu1  ;;  %v651_v51 = vmin.f32 %v619_v47, 6.0  ;;  %v511_v53 = vadd.f32 %v1962_v34, %v510_v49 }
  0xa3   : > { %v659_v52 = vmin.f32 %v627_v48, 6.0  ;;  %v535_v54 = vadd.f32 %v1962_v34, %v534_v50 }
  0xa4   : > { %684 = vst.msk [vmem:[#allocation2 + $0xd9] sm:$0xff] %vm306_vm4, %v651_v51  ;;  %v604_v55 = vmax.f32 %v511_v53, 0.0 }
  0xa5   : > { %v612_v56 = vmax.f32 %v535_v54, 0.0  ;;  %692 = vst.msk [vmem:[#allocation2 + $0x139] sm:$0xff] %vm306_vm4, %v659_v52  ;;  %v558_v57 = vpop.f32.mrf.mxu2 }
  0xa6   : > { %v582_v58 = vpop.f32.mrf.mxu3  ;;  %v636_v59 = vmin.f32 %v604_v55, 6.0  ;;  %v559_v61 = vadd.f32 %v1962_v34, %v558_v57 }
  0xa7   : > { %v644_v60 = vmin.f32 %v612_v56, 6.0  ;;  %v583_v62 = vadd.f32 %v1962_v34, %v582_v58 }
  0xa8   : > { %669 = vst.msk [vmem:[#allocation2 + $0x21] sm:$0xff] %vm306_vm4, %v636_v59  ;;  %v620_v63 = vmax.f32 %v559_v61, 0.0 }
  0xa9   : > { %v628_v0 = vmax.f32 %v583_v62, 0.0  ;;  %677 = vst.msk [vmem:[#allocation2 + $0x81] sm:$0xff] %vm306_vm4, %v644_v60  ;;  %v513_v1 = vpop.f32.mrf.mxu0 }
  0xaa   : > { %v537_v2 = vpop.f32.mrf.mxu1  ;;  %v652_v3 = vmin.f32 %v620_v63, 6.0  ;;  %v514_v5 = vadd.f32 %v1962_v34, %v513_v1 }
  0xab   : > { %v660_v4 = vmin.f32 %v628_v0, 6.0  ;;  %v538_v6 = vadd.f32 %v1962_v34, %v537_v2 }
  0xac   : > { %685 = vst.msk [vmem:[#allocation2 + $0xe1] sm:$0xff] %vm306_vm4, %v652_v3  ;;  %v605_v7 = vmax.f32 %v514_v5, 0.0 }
  0xad   : > { %v613_v8 = vmax.f32 %v538_v6, 0.0  ;;  %693 = vst.msk [vmem:[#allocation2 + $0x141] sm:$0xff] %vm306_vm4, %v660_v4  ;;  %v561_v9 = vpop.f32.mrf.mxu2 }
  0xae   : > { %v585_v10 = vpop.f32.mrf.mxu3  ;;  %v637_v11 = vmin.f32 %v605_v7, 6.0  ;;  %v562_v13 = vadd.f32 %v1962_v34, %v561_v9 }
  0xaf   : > { %v645_v12 = vmin.f32 %v613_v8, 6.0  ;;  %v586_v14 = vadd.f32 %v1962_v34, %v585_v10 }
  0xb0   : > { %670 = vst.msk [vmem:[#allocation2 + $0x31] sm:$0xff] %vm306_vm4, %v637_v11  ;;  %v621_v15 = vmax.f32 %v562_v13, 0.0 }
  0xb1   : > { %v629_v16 = vmax.f32 %v586_v14, 0.0  ;;  %678 = vst.msk [vmem:[#allocation2 + $0x91] sm:$0xff] %vm306_vm4, %v645_v12  ;;  %v516_v17 = vpop.f32.mrf.mxu0 }
  0xb2   : > { %v540_v18 = vpop.f32.mrf.mxu1  ;;  %v653_v19 = vmin.f32 %v621_v15, 6.0  ;;  %v517_v21 = vadd.f32 %v1962_v34, %v516_v17 }
  0xb3   : > { %v661_v20 = vmin.f32 %v629_v16, 6.0  ;;  %v541_v22 = vadd.f32 %v1962_v34, %v540_v18 }
  0xb4   : > { %686 = vst.msk [vmem:[#allocation2 + $0xf1] sm:$0xff] %vm306_vm4, %v653_v19  ;;  %v606_v23 = vmax.f32 %v517_v21, 0.0 }
  0xb5   : > { %v614_v24 = vmax.f32 %v541_v22, 0.0  ;;  %694 = vst.msk [vmem:[#allocation2 + $0x151] sm:$0xff] %vm306_vm4, %v661_v20  ;;  %v564_v25 = vpop.f32.mrf.mxu2 }
  0xb6   : > { %v588_v26 = vpop.f32.mrf.mxu3  ;;  %v638_v27 = vmin.f32 %v606_v23, 6.0  ;;  %v565_v29 = vadd.f32 %v1962_v34, %v564_v25 }
  0xb7   : > { %v646_v28 = vmin.f32 %v614_v24, 6.0  ;;  %v589_v30 = vadd.f32 %v1962_v34, %v588_v26 }
  0xb8   : > { %671 = vst.msk [vmem:[#allocation2 + $0x39] sm:$0xff] %vm306_vm4, %v638_v27  ;;  %v622_v31 = vmax.f32 %v565_v29, 0.0 }
  0xb9   : > { %v630_v32 = vmax.f32 %v589_v30, 0.0  ;;  %679 = vst.msk [vmem:[#allocation2 + $0x99] sm:$0xff] %vm306_vm4, %v646_v28  ;;  %v519_v33 = vpop.f32.mrf.mxu0 }
  0xba   : > { %v543_v35 = vpop.f32.mrf.mxu1  ;;  %v654_v36 = vmin.f32 %v622_v31, 6.0  ;;  %v520_v38 = vadd.f32 %v1962_v34, %v519_v33 }
  0xbb   : > { %v662_v37 = vmin.f32 %v630_v32, 6.0  ;;  %v544_v39 = vadd.f32 %v1962_v34, %v543_v35 }
  0xbc   : > { %687 = vst.msk [vmem:[#allocation2 + $0xf9] sm:$0xff] %vm306_vm4, %v654_v36  ;;  %v607_v40 = vmax.f32 %v520_v38, 0.0 }
  0xbd   : > { %v615_v41 = vmax.f32 %v544_v39, 0.0  ;;  %695 = vst.msk [vmem:[#allocation2 + $0x159] sm:$0xff] %vm306_vm4, %v662_v37  ;;  %v567_v42 = vpop.f32.mrf.mxu2 }
  0xbe   : > { %v591_v43 = vpop.f32.mrf.mxu3  ;;  %v639_v44 = vmin.f32 %v607_v40, 6.0  ;;  %v568_v46 = vadd.f32 %v1962_v34, %v567_v42 }
  0xbf   : > { %v647_v45 = vmin.f32 %v615_v41, 6.0  ;;  %v592_v47 = vadd.f32 %v1962_v34, %v591_v43 }
  0xc0   : > { %672 = vst.msk [vmem:[#allocation2 + $0x49] sm:$0xff] %vm306_vm4, %v639_v44  ;;  %v623_v48 = vmax.f32 %v568_v46, 0.0 }
  0xc1   : > { %v631_v49 = vmax.f32 %v592_v47, 0.0  ;;  %680 = vst.msk [vmem:[#allocation2 + $0xa9] sm:$0xff] %vm306_vm4, %v647_v45  ;;  %v522_v50 = vpop.f32.mrf.mxu0 }
  0xc2   : > { %v546_v51 = vpop.f32.mrf.mxu1  ;;  %v655_v52 = vmin.f32 %v623_v48, 6.0  ;;  %v523_v54 = vadd.f32 %v1962_v34, %v522_v50 }
  0xc3   : > { %v663_v53 = vmin.f32 %v631_v49, 6.0  ;;  %v547_v55 = vadd.f32 %v1962_v34, %v546_v51 }
  0xc4   : > { %688 = vst.msk [vmem:[#allocation2 + $0x109] sm:$0xff] %vm306_vm4, %v655_v52  ;;  %v608_v56 = vmax.f32 %v523_v54, 0.0 }
  0xc5   : > { %v616_v57 = vmax.f32 %v547_v55, 0.0  ;;  %696 = vst.msk [vmem:[#allocation2 + $0x169] sm:$0xff] %vm306_vm4, %v663_v53  ;;  %v570_v58 = vpop.f32.mrf.mxu2 }
  0xc6   : > { %v594_v59 = vpop.f32.mrf.mxu3  ;;  %v640_v60 = vmin.f32 %v608_v56, 6.0  ;;  %v571_v62 = vadd.f32 %v1962_v34, %v570_v58 }
  0xc7   : > { %v648_v61 = vmin.f32 %v616_v57, 6.0  ;;  %v595_v63 = vadd.f32 %v1962_v34, %v594_v59 }
  0xc8   : > { %673 = vst.msk [vmem:[#allocation2 + $0x51] sm:$0xff] %vm306_vm4, %v640_v60  ;;  %v624_v0 = vmax.f32 %v571_v62, 0.0 }
  0xc9   : > { %v632_v1 = vmax.f32 %v595_v63, 0.0  ;;  %681 = vst.msk [vmem:[#allocation2 + $0xb1] sm:$0xff] %vm306_vm4, %v648_v61  ;;  %v525_v2 = vpop.f32.mrf.mxu0 }
  0xca   : > { %v549_v3 = vpop.f32.mrf.mxu1  ;;  %v656_v4 = vmin.f32 %v624_v0, 6.0  ;;  %v526_v6 = vadd.f32 %v1962_v34, %v525_v2 }
  0xcb   : > { %v664_v5 = vmin.f32 %v632_v1, 6.0  ;;  %v550_v7 = vadd.f32 %v1962_v34, %v549_v3 }
  0xcc   : > { %689 = vst.msk [vmem:[#allocation2 + $0x111] sm:$0xff] %vm306_vm4, %v656_v4  ;;  %v609_v8 = vmax.f32 %v526_v6, 0.0 }
  0xcd   : > { %v617_v9 = vmax.f32 %v550_v7, 0.0  ;;  %697 = vst.msk [vmem:[#allocation2 + $0x171] sm:$0xff] %vm306_vm4, %v664_v5  ;;  %v573_v10 = vpop.f32.mrf.mxu2 }
  0xce   : > { %v597_v11 = vpop.f32.mrf.mxu3  ;;  %v641_v12 = vmin.f32 %v609_v8, 6.0  ;;  %v574_v14 = vadd.f32 %v1962_v34, %v573_v10 }
  0xcf   : > { %v649_v13 = vmin.f32 %v617_v9, 6.0  ;;  %v598_v15 = vadd.f32 %v1962_v34, %v597_v11 }
  0xd0   : > { %674 = vst.msk [vmem:[#allocation2 + $0x61] sm:$0xff] %vm306_vm4, %v641_v12  ;;  %v625_v16 = vmax.f32 %v574_v14, 0.0 }
  0xd1   : > { %v633_v17 = vmax.f32 %v598_v15, 0.0  ;;  %682 = vst.msk [vmem:[#allocation2 + $0xc1] sm:$0xff] %vm306_vm4, %v649_v13  ;;  %v528_v18 = vpop.f32.mrf.mxu0 }
  0xd2   : > { %v552_v19 = vpop.f32.mrf.mxu1  ;;  %v657_v20 = vmin.f32 %v625_v16, 6.0  ;;  %v529_v22 = vadd.f32 %v1962_v34, %v528_v18 }
  0xd3   : > { %v665_v21 = vmin.f32 %v633_v17, 6.0  ;;  %v553_v23 = vadd.f32 %v1962_v34, %v552_v19 }
  0xd4   : > { %690 = vst.msk [vmem:[#allocation2 + $0x121] sm:$0xff] %vm306_vm4, %v657_v20  ;;  %v610_v24 = vmax.f32 %v529_v22, 0.0 }
  0xd5   : > { %v618_v25 = vmax.f32 %v553_v23, 0.0  ;;  %698 = vst.msk [vmem:[#allocation2 + $0x181] sm:$0xff] %vm306_vm4, %v665_v21  ;;  %v576_v26 = vpop.f32.mrf.mxu2 }
  0xd6   : > { %v600_v27 = vpop.f32.mrf.mxu3  ;;  %v642_v28 = vmin.f32 %v610_v24, 6.0  ;;  %v577_v30 = vadd.f32 %v1962_v34, %v576_v26 }
  0xd7   : > { %v650_v29 = vmin.f32 %v618_v25, 6.0  ;;  %v601_v31 = vadd.f32 %v1962_v34, %v600_v27 }
  0xd8   : > { %675 = vst.msk [vmem:[#allocation2 + $0x69] sm:$0xff] %vm306_vm4, %v642_v28  ;;  %v626_v32 = vmax.f32 %v577_v30, 0.0 }
  0xd9   : > { %v634_v33 = vmax.f32 %v601_v31, 0.0  ;;  %683 = vst.msk [vmem:[#allocation2 + $0xc9] sm:$0xff] %vm306_vm4, %v650_v29 }
  0xda   : > { %v658_v35 = vmin.f32 %v626_v32, 6.0 }
  0xdb   : > { %v666_v36 = vmin.f32 %v634_v33, 6.0 }
  0xdc   : > { %691 = vst.msk [vmem:[#allocation2 + $0x129] sm:$0xff] %vm306_vm4, %v658_v35 }
  0xdd   : > { %699 = vst.msk [vmem:[#allocation2 + $0x189] sm:$0xff] %vm306_vm4, %v666_v36 }
  0xde PF: > { %v1215_v37 = vld [vmem:[%s2618_s5 + $0x10] sm:$0xff]  ;;  %v1214_v34 = vld [vmem:[%s2618_s5 + $0x8] sm:$0xff]  ;;  %s1490_s10 = smul.u32 192, %s1703_s24  ;;  %v2038_v38 = vld [vmem:[%s2616_s3] ss:$0 sm:$0xff]  ;;  %vm1220_vm5 = vcmask 195584  }
  0xdf   : > { %1620 = vmatpush.msra.mxu2 %v1215_v37  ;;  %1621 = vmatpush.msra.mxu3 %v1215_v37  ;;  %v1213_v39 = vld [vmem:[%s2618_s5] sm:$0xff]  ;;  %v2104_v59 = vld [vmem:[%s2616_s3 + $0x8] ss:$0 sm:$0xff]  ;;  %v2114_v62 = vld [vmem:[%s2616_s3 + $0x9] ss:$0 sm:$0xff]  ;;  %vm1334_vm6 = vcmask 64512  }
  0xe0   : > { %v2046_v40 = vld [vmem:[%s2616_s3 + $0x1] ss:$0 sm:$0xff]  ;;  %1282 = vmatpush.msra.mxu0 %v1215_v37  ;;  %1619 = vmatpush.msra.mxu1 %v1215_v37  ;;  %s2048_s24 = scalar_lea.vmem [#allocation2], %s1490_s10  ;;  %v2066_v46 = vld [vmem:[%s2616_s3 + $0x2] ss:$0 sm:$0xff] }
  0xe1   : > { %1623 = vmatpush.msra.mxu2 %v1214_v34  ;;  %1624 = vmatpush.msra.mxu3 %v1214_v34  ;;  %v2074_v48 = vld [vmem:[%s2616_s3 + $0x4] ss:$0 sm:$0xff]  ;;  %v2084_v52 = vld [vmem:[%s2616_s3 + $0x5] ss:$0 sm:$0xff]  ;;  %v2094_v55 = vld [vmem:[%s2616_s3 + $0x6] ss:$0 sm:$0xff] }
  0xe2   : > { %1283 = vmatpush.msra.mxu0 %v1214_v34  ;;  %1622 = vmatpush.msra.mxu1 %v1214_v34  ;;  %v2130_v5 = vld [vmem:[%s2616_s3 + $0xa] ss:$0 sm:$0xff] }
  0xe3   : > { %1626 = vmatpush.msra.mxu2 %v1213_v39  ;;  %1627 = vmatpush.msra.mxu3 %v1213_v39 }
  0xe4   : > { %v2051_v41 = vld [vmem:[%s2048_s24 + $0x60] sm:$0xff]  ;;  %v2069_v47 = vld [vmem:[%s2048_s24 + $0x78] sm:$0xff]  ;;  %1284 = vmatpush.msra.mxu0 %v1213_v39  ;;  %1625 = vmatpush.msra.mxu1 %v1213_v39  ;;  %v2097_v56 = vld [vmem:[%s2048_s24 + $0x90] sm:$0xff] }
  0xe5   : > { %2642 = vst [vmem:[#allocation3_spill] sm:$0xff] %v2051_v41  ;;  %v2054_v42 = vld [vmem:[%s2048_s24 + $0x61] sm:$0xff]  ;;  %v729_v44 = vmul.f32 %v2038_v38, %v2051_v41  ;;  %v2077_v49 = vld [vmem:[%s2048_s24 + $0x79] sm:$0xff]  ;;  %v883_v54 = vmul.f32 %v2074_v48, %v2069_v47  ;;  %v2107_v60 = vld [vmem:[%s2048_s24 + $0x91] sm:$0xff]  ;;  %v733_v61 = vmul.f32 %v2038_v38, %v2097_v56  ;;  %v731_v1 = vmul.f32 %v2038_v38, %v2069_v47 }
  0xe6   : > { %2643 = vst [vmem:[#allocation4_spill] sm:$0xff] %v2054_v42  ;;  %v2057_v43 = vld [vmem:[%s2048_s24 + $0x62] sm:$0xff]  ;;  %v779_v45 = vmul.f32 %v2046_v40, %v2054_v42  ;;  %v2087_v53 = vld [vmem:[%s2048_s24 + $0x7a] sm:$0xff]  ;;  %v933_v58 = vmul.f32 %v2084_v52, %v2077_v49  ;;  %v2117_v63 = vld [vmem:[%s2048_s24 + $0x92] sm:$0xff]  ;;  %v783_v0 = vmul.f32 %v2046_v40, %v2107_v60  ;;  %v781_v2 = vmul.f32 %v2046_v40, %v2077_v49 }
  0xe7   : > { %2644 = vst [vmem:[#allocation5_spill] sm:$0xff] %v2057_v43  ;;  %v829_v51 = vmul.f32 %v2066_v46, %v2057_v43  ;;  %v983_v4 = vmul.f32 %v2094_v55, %v2087_v53  ;;  %v833_v6 = vmul.f32 %v2066_v46, %v2117_v63  ;;  %v1037_v7 = vmul.f32 %v2104_v59, %v2097_v56  ;;  %v2137_v9 = vld [vmem:[%s2048_s24 + $0xa8] sm:$0xff]  ;;  %v2150_v15 = vld [vmem:[%s2048_s24 + $0xc0] sm:$0xff]  ;;  %v2178_v30 = vld [vmem:[%s2048_s24 + $0x18] sm:$0xff] }
  0xe8   : > { %2645 = vst [vmem:[#allocation6_spill] sm:$0xff] %v2069_v47  ;;  %v795_v50 = vadd.f32 %v779_v45, %v729_v44  ;;  %v799_v8 = vadd.f32 %v783_v0, %v733_v61  ;;  %v2140_v10 = vld [vmem:[%s2048_s24 + $0xa9] sm:$0xff]  ;;  %v1087_v12 = vmul.f32 %v2114_v62, %v2107_v60  ;;  %v887_v13 = vmul.f32 %v2074_v48, %v2137_v9  ;;  %v2153_v16 = vld [vmem:[%s2048_s24 + $0xc1] sm:$0xff]  ;;  %v2181_v31 = vld [vmem:[%s2048_s24 + $0x19] sm:$0xff] }
  0xe9   : > { %2646 = vst [vmem:[#allocation7_spill] sm:$0xff] %v2077_v49  ;;  %v2147_v14 = vld [vmem:[%s2048_s24 + $0xaa] sm:$0xff]  ;;  %v2157_v17 = vmul.f32 %v2104_v59, %v2051_v41  ;;  %v937_v19 = vmul.f32 %v2084_v52, %v2140_v10  ;;  %v703_v20 = vld [vmem:[%s2048_s24] sm:$0xff]  ;;  %v2166_v23 = vmul.f32 %v2114_v62, %v2054_v42  ;;  %v2168_v24 = vadd.f32 %v781_v2, %v731_v1  ;;  %v2195_v39 = vld [vmem:[%s2048_s24 + $0x32] sm:$0xff] }
  0xea   : > { %v845_v57 = vadd.f32 %v829_v51, %v795_v50  ;;  %v849_v18 = vadd.f32 %v833_v6, %v799_v8  ;;  %v753_v21 = vld [vmem:[%s2048_s24 + $0x1] sm:$0xff]  ;;  %v1137_v26 = vmul.f32 %v2130_v5, %v2117_v63  ;;  %v721_v28 = vmul.f32 %v2038_v38, %v703_v20  ;;  %v2189_v37 = vld [vmem:[%s2048_s24 + $0x30] sm:$0xff]  ;;  %v2273_v42 = vld [vmem:[%s2048_s24 + $0x99] sm:$0xff] }
  0xeb   : > { %v803_v22 = vld [vmem:[%s2048_s24 + $0x2] sm:$0xff]  ;;  %v771_v29 = vmul.f32 %v2046_v40, %v753_v21  ;;  %v987_v33 = vmul.f32 %v2094_v55, %v2147_v14  ;;  %v1041_v35 = vmul.f32 %v2104_v59, %v2150_v15  ;;  %v2192_v34 = vld [vmem:[%s2048_s24 + $0x31] sm:$0xff]  ;;  %v1091_v45 = vmul.f32 %v2114_v62, %v2153_v16  ;;  %v2276_v41 = vld [vmem:[%s2048_s24 + $0x9a] sm:$0xff] }
  0xec   : > { %v899_v3 = vadd.f32 %v883_v54, %v845_v57  ;;  %v2173_v27 = vld [vmem:[%s2048_s24 + $0xc2] sm:$0xff]  ;;  %v903_v32 = vadd.f32 %v887_v13, %v849_v18  ;;  %v821_v36 = vmul.f32 %v2066_v46, %v803_v22  ;;  %v875_v51 = vmul.f32 %v2074_v48, %v2178_v30  ;;  %v2202_v54 = vld [vmem:[%s2048_s24 + $0x1a] sm:$0xff]  ;;  %v2229_v13 = vld [vmem:[%s2048_s24 + $0x6a] sm:$0xff]  ;;  %2649 = vst [vmem:[#allocation10_spill] sm:$0xff] %v2276_v41 }
  0xed   : > { %v787_v50 = vadd.f32 %v771_v29, %v721_v28  ;;  %v2207_v57 = vld [vmem:[%s2617_s4] ss:$0 sm:$0xff]  ;;  %v1141_v61 = vmul.f32 %v2130_v5, %v2173_v27  ;;  %v925_v0 = vmul.f32 %v2084_v52, %v2181_v31  ;;  %v725_v1 = vmul.f32 %v2038_v38, %v2189_v37  ;;  %v2216_v2 = vld [vmem:[%s2048_s24 + $0x48] sm:$0xff] }
  0xee   : > { %v949_v11 = vadd.f32 %v933_v58, %v899_v3  ;;  %v953_v58 = vadd.f32 %v937_v19, %v903_v32  ;;  %v775_v6 = vmul.f32 %v2046_v40, %v2192_v34  ;;  %v2223_v8 = vld [vmem:[%s2048_s24 + $0x68] sm:$0xff]  ;;  %v975_v19 = vmul.f32 %v2094_v55, %v2202_v54  ;;  %v2243_v32 = vld [vmem:[%s2048_s24 + $0x80] sm:$0xff] }
  0xef   : > { %v1079_v20 = vmul.f32 %v2114_v62, %v2192_v34  ;;  %v2238_v21 = vld [vmem:[%s2048_s24 + $0x49] sm:$0xff]  ;;  %v879_v29 = vmul.f32 %v2074_v48, %v2216_v2  ;;  %2647 = vst [vmem:[#allocation8_spill] sm:$0xff] %v2243_v32  ;;  %v884_v47 = vmul.f32 %v2074_v48, %v2243_v32 }
  0xf0   : > { %v999_v25 = vadd.f32 %v983_v4, %v949_v11  ;;  %v837_v4 = vadd.f32 %v821_v36, %v787_v50  ;;  %v2226_v11 = vld [vmem:[%s2048_s24 + $0x69] sm:$0xff]  ;;  %v1003_v18 = vadd.f32 %v987_v33, %v953_v58  ;;  %v791_v28 = vadd.f32 %v775_v6, %v725_v1 }
  0xf1   : > { %v2246_v36 = vld [vmem:[%s2048_s24 + $0x4a] sm:$0xff]  ;;  %v780_v50 = vmul.f32 %v2046_v40, %v2226_v11 }
  0xf2   : > { %v1053_v44 = vadd.f32 %v1037_v7, %v999_v25  ;;  %v825_v7 = vmul.f32 %v2066_v46, %v2195_v39  ;;  %v891_v25 = vadd.f32 %v875_v51, %v837_v4  ;;  %v1057_v33 = vadd.f32 %v1041_v35, %v1003_v18  ;;  %v2261_v4 = vld [vmem:[%s2048_s24 + $0x82] sm:$0xff] }
  0xf3   : > { %v929_v35 = vmul.f32 %v2084_v52, %v2238_v21  ;;  %v1129_v18 = vmul.f32 %v2130_v5, %v2195_v39 }
  0xf4   : > { %v1103_v3 = vadd.f32 %v1087_v12, %v1053_v44  ;;  %v1029_v12 = vmul.f32 %v2104_v59, %v2189_v37  ;;  %v730_v44 = vmul.f32 %v2038_v38, %v2223_v8  ;;  %v941_v58 = vadd.f32 %v925_v0, %v891_v25 }
  0xf5   : > { %v841_v1 = vadd.f32 %v825_v7, %v791_v28  ;;  %v1107_v6 = vadd.f32 %v1091_v45, %v1057_v33  ;;  %v979_v28 = vmul.f32 %v2094_v55, %v2246_v36 }
  0xf6   : > { %v1153_v22 = vadd.f32 %v1137_v26, %v1103_v3  ;;  %v830_v26 = vmul.f32 %v2066_v46, %v2229_v13  ;;  %v2258_v3 = vld [vmem:[%s2048_s24 + $0x81] sm:$0xff]  ;;  %v796_v49 = vadd.f32 %v780_v50, %v730_v44  ;;  %v991_v7 = vadd.f32 %v975_v19, %v941_v58  ;;  %v2285_v58 = vld [vmem:[%s2048_s24 + $0xb0] sm:$0xff] }
  0xf7   : > { %v895_v25 = vadd.f32 %v879_v29, %v841_v1  ;;  %v1157_v45 = vadd.f32 %v1141_v61, %v1107_v6  ;;  %v934_v44 = vmul.f32 %v2084_v52, %v2258_v3  ;;  %v984_v50 = vmul.f32 %v2094_v55, %v2261_v4  ;;  %2650 = vst [vmem:[#allocation11_spill] sm:$0xff] %v2285_v58 }
  0xf8   : > { %v1173_v51 = vadd.f32 %v2207_v57, %v1153_v22  ;;  %v2268_v22 = vld [vmem:[%s2048_s24 + $0x98] sm:$0xff]  ;;  %v846_v33 = vadd.f32 %v830_v26, %v796_v49  ;;  %v784_v26 = vmul.f32 %v2046_v40, %v2273_v42  ;;  %v834_v1 = vmul.f32 %v2066_v46, %v2276_v41 }
  0xf9   : > { %2648 = vst [vmem:[#allocation9_spill] sm:$0xff] %v2268_v22  ;;  %v945_v19 = vadd.f32 %v929_v35, %v895_v25  ;;  %v734_v29 = vmul.f32 %v2038_v38, %v2268_v22  ;;  %v1177_v61 = vadd.f32 %v2207_v57, %v1157_v45  ;;  %v1133_v6 = vmul.f32 %v2130_v5, %v2057_v43  ;;  %v2316_v43 = vld [vmem:[%s2048_s24 + $0x20] sm:$0xff] }
  0xfa   : > { %v1189_v0 = vmax.f32 %v1173_v51, 0.0  ;;  %v1045_v51 = vadd.f32 %v1029_v12, %v991_v7  ;;  %v900_v49 = vadd.f32 %v884_v47, %v846_v33  ;;  %v2298_v7 = vld [vmem:[%s2048_s24 + $0xb1] sm:$0xff]  ;;  %v888_v33 = vmul.f32 %v2074_v48, %v2285_v58  ;;  %2653 = vst [vmem:[#allocation14_spill] sm:$0xff] %v2316_v43 }
  0xfb   : > { %v995_v35 = vadd.f32 %v979_v28, %v945_v19  ;;  %2651 = vst [vmem:[#allocation12_spill] sm:$0xff] %v2298_v7  ;;  %v1193_v47 = vmax.f32 %v1177_v61, 0.0  ;;  %v800_v45 = vadd.f32 %v784_v26, %v734_v29  ;;  %v1088_v19 = vmul.f32 %v2114_v62, %v2273_v42  ;;  %v2310_v61 = vld [vmem:[%s2048_s24 + $0xb2] sm:$0xff] }
  0xfc   : > { %v1205_v32 = vmin.f32 %v1189_v0, 6.0  ;;  %v1095_v12 = vadd.f32 %v1079_v20, %v1045_v51  ;;  %v1038_v0 = vmul.f32 %v2104_v59, %v2268_v22  ;;  %v950_v25 = vadd.f32 %v934_v44, %v900_v49  ;;  %v754_v20 = vld [vmem:[%s2048_s24 + $0x9] sm:$0xff]  ;;  %2652 = vst [vmem:[#allocation13_spill] sm:$0xff] %v2310_v61 }
  0xfd   : > { %v1049_v51 = vadd.f32 %v2157_v17, %v995_v35  ;;  %v1138_v22 = vmul.f32 %v2130_v5, %v2276_v41  ;;  %v804_v44 = vld [vmem:[%s2048_s24 + $0xa] sm:$0xff]  ;;  %v1209_v29 = vmin.f32 %v1193_v47, 6.0  ;;  %v850_v26 = vadd.f32 %v834_v1, %v800_v45 }
  0xfe   : > { %1605 = vmatmul.msk.f32.vlgmr.msra.gmra.mxu2 %vm1220_vm5, %v1205_v32  ;;  %v704_v32 = vld [vmem:[%s2048_s24 + $0x8] sm:$0xff]  ;;  %v1145_v28 = vadd.f32 %v1129_v18, %v1095_v12  ;;  %v1000_v49 = vadd.f32 %v984_v50, %v950_v25  ;;  %v938_v58 = vmul.f32 %v2084_v52, %v2298_v7  ;;  %v772_v50 = vmul.f32 %v2046_v40, %v754_v20 }
  0xff   : > { %v1099_v18 = vadd.f32 %v2166_v23, %v1049_v51  ;;  %v2321_v12 = vld [vmem:[%s2048_s24 + $0xc8] sm:$0xff]  ;;  %v722_v47 = vmul.f32 %v2038_v38, %v704_v32  ;;  %1609 = vmatmul.msk.f32.vlgmr.msra.gmra.mxu3 %vm1220_vm5, %v1209_v29  ;;  %v904_v25 = vadd.f32 %v888_v33, %v850_v26  ;;  %v988_v45 = vmul.f32 %v2094_v55, %v2310_v61  ;;  %v2341_v29 = vld [vmem:[%s2048_s24 + $0x38] sm:$0xff] }
 0x100   : > { %v1165_v17 = vadd.f32 %v2207_v57, %v1145_v28  ;;  %2654 = vst [vmem:[#allocation15_spill] sm:$0xff] %v2321_v12  ;;  %v2324_v35 = vld [vmem:[%s2048_s24 + $0xc9] sm:$0xff]  ;;  %v1054_v1 = vadd.f32 %v1038_v0, %v1000_v49  ;;  %v822_v23 = vmul.f32 %v2066_v46, %v804_v44  ;;  %v2333_v28 = vld [vmem:[%s2048_s24 + $0x21] sm:$0xff]  ;;  %v876_v32 = vmul.f32 %v2074_v48, %v2316_v43  ;;  %v2348_v26 = vld [vmem:[%s2048_s24 + $0x39] sm:$0xff] }
 0x101   : > { %2655 = vst [vmem:[#allocation16_spill] sm:$0xff] %v2324_v35  ;;  %v1149_v41 = vadd.f32 %v1133_v6, %v1099_v18  ;;  %v788_v7 = vadd.f32 %v772_v50, %v722_v47  ;;  %v2338_v20 = vld [vmem:[%s2048_s24 + $0x22] sm:$0xff]  ;;  %v954_v33 = vadd.f32 %v938_v58, %v904_v25  ;;  %v1042_v49 = vmul.f32 %v2104_v59, %v2321_v12  ;;  %v2351_v6 = vld [vmem:[%s2048_s24 + $0x3a] sm:$0xff]  ;;  %v2355_v47 = vld [vmem:[%s2048_s24 + $0xca] sm:$0xff] }
 0x102   : > { %2656 = vst [vmem:[#allocation17_spill] sm:$0xff] %v2333_v28  ;;  %v1181_v51 = vmax.f32 %v1165_v17, 0.0  ;;  %v1104_v0 = vadd.f32 %v1088_v19, %v1054_v1  ;;  %v1092_v44 = vmul.f32 %v2114_v62, %v2324_v35  ;;  %v926_v58 = vmul.f32 %v2084_v52, %v2333_v28  ;;  %v2364_v35 = vld [vmem:[%s2048_s24 + $0x50] sm:$0xff] }
 0x103   : > { %2657 = vst [vmem:[#allocation18_spill] sm:$0xff] %v2338_v20  ;;  %v1169_v18 = vadd.f32 %v2207_v57, %v1149_v41  ;;  %v838_v50 = vadd.f32 %v822_v23, %v788_v7  ;;  %v1004_v1 = vadd.f32 %v988_v45, %v954_v33  ;;  %v976_v25 = vmul.f32 %v2094_v55, %v2338_v20  ;;  %v2377_v20 = vld [vmem:[%s2048_s24 + $0x51] sm:$0xff] }
 0x104   : > { %2658 = vst [vmem:[#allocation19_spill] sm:$0xff] %v2341_v29  ;;  %v1197_v17 = vmin.f32 %v1181_v51, 6.0  ;;  %v1154_v19 = vadd.f32 %v1138_v22, %v1104_v0  ;;  %v726_v43 = vmul.f32 %v2038_v38, %v2341_v29  ;;  %v776_v7 = vmul.f32 %v2046_v40, %v2348_v26  ;;  %v2382_v28 = vld [vmem:[%s2048_s24 + $0x52] sm:$0xff] }
 0x105   : > { %v1185_v41 = vmax.f32 %v1169_v18, 0.0  ;;  %v892_v51 = vadd.f32 %v876_v32, %v838_v50  ;;  %v826_v22 = vmul.f32 %v2066_v46, %v2351_v6  ;;  %v1058_v23 = vadd.f32 %v1042_v49, %v1004_v1 }
 0x106   : > { %1597 = vmatmul.msk.f32.vlgmr.msra.gmra.mxu0 %vm1220_vm5, %v1197_v17  ;;  %v1174_v45 = vadd.f32 %v2207_v57, %v1154_v19  ;;  %v1142_v0 = vmul.f32 %v2130_v5, %v2355_v47  ;;  %v1030_v33 = vmul.f32 %v2104_v59, %v2341_v29  ;;  %v792_v32 = vadd.f32 %v776_v7, %v726_v43 }
 0x107   : > { %v1201_v17 = vmin.f32 %v1185_v41, 6.0  ;;  %v942_v18 = vadd.f32 %v926_v58, %v892_v51  ;;  %v880_v50 = vmul.f32 %v2074_v48, %v2364_v35  ;;  %v1108_v61 = vadd.f32 %v1092_v44, %v1058_v23 }
 0x108   : > { %v1190_v12 = vmax.f32 %v1174_v45, 0.0  ;;  %v1080_v49 = vmul.f32 %v2114_v62, %v2348_v26  ;;  %v1130_v19 = vmul.f32 %v2130_v5, %v2351_v6  ;;  %v842_v29 = vadd.f32 %v826_v22, %v792_v32 }
 0x109   : > { %1601 = vmatmul.msk.f32.vlgmr.msra.gmra.mxu1 %vm1220_vm5, %v1201_v17  ;;  %v992_v1 = vadd.f32 %v976_v25, %v942_v18  ;;  %v930_v43 = vmul.f32 %v2084_v52, %v2377_v20  ;;  %v831_v58 = vmul.f32 %v2066_v46, %v2087_v53  ;;  %v1158_v51 = vadd.f32 %v1142_v0, %v1108_v61 }
 0x10a   : > { %v1206_v41 = vmin.f32 %v1190_v12, 6.0  ;;  %v980_v44 = vmul.f32 %v2094_v55, %v2382_v28  ;;  %v885_v7 = vmul.f32 %v2074_v48, %v2097_v56  ;;  %v896_v23 = vadd.f32 %v880_v50, %v842_v29 }
 0x10b   : > { %v1046_v45 = vadd.f32 %v1030_v33, %v992_v1  ;;  %v847_v17 = vadd.f32 %v831_v58, %v2168_v24  ;;  %v935_v25 = vmul.f32 %v2084_v52, %v2107_v60  ;;  %v1178_v22 = vadd.f32 %v2207_v57, %v1158_v51 }
 0x10c   : > { %1606 = vmatmul.msk.f32.gmra.mxu2 %vm1220_vm5, %v1206_v41  ;;  %v1034_v61 = vmul.f32 %v2104_v59, %v2223_v8  ;;  %v1084_v12 = vmul.f32 %v2114_v62, %v2226_v11  ;;  %v985_v56 = vmul.f32 %v2094_v55, %v2117_v63  ;;  %v946_v29 = vadd.f32 %v930_v43, %v896_v23 }
 0x10d   : > { %v1096_v0 = vadd.f32 %v1080_v49, %v1046_v45  ;;  %v901_v33 = vadd.f32 %v885_v7, %v847_v17  ;;  %v735_v24 = vmul.f32 %v2038_v38, %v2137_v9  ;;  %v1194_v60 = vmax.f32 %v1178_v22, 0.0 }
 0x10e   : > { %v1134_v18 = vmul.f32 %v2130_v5, %v2229_v13  ;;  %v785_v32 = vmul.f32 %v2046_v40, %v2140_v10  ;;  %v835_v50 = vmul.f32 %v2066_v46, %v2147_v14  ;;  %v996_v58 = vadd.f32 %v980_v44, %v946_v29 }
 0x10f   : > { %v1146_v1 = vadd.f32 %v1130_v19, %v1096_v0  ;;  %v951_v63 = vadd.f32 %v935_v25, %v901_v33  ;;  %v1039_v49 = vmul.f32 %v2104_v59, %v2137_v9  ;;  %v1210_v43 = vmin.f32 %v1194_v60, 6.0  ;;  %v1560_v25 = vld [vmem:[%s2048_s24 + $0xd8] sm:$0xff] }
 0x110   : > { %v1089_v41 = vmul.f32 %v2114_v62, %v2140_v10  ;;  %v801_v51 = vadd.f32 %v785_v32, %v735_v24  ;;  %v889_v7 = vmul.f32 %v2074_v48, %v2150_v15  ;;  %v1050_v23 = vadd.f32 %v1034_v61, %v996_v58  ;;  %v1577_v0 = vld [vmem:[%s2048_s24 + $0xd9] sm:$0xff] }
 0x111   : > { %v1166_v45 = vadd.f32 %v2207_v57, %v1146_v1  ;;  %v1001_v17 = vadd.f32 %v985_v56, %v951_v63  ;;  %v1139_v19 = vmul.f32 %v2130_v5, %v2147_v14  ;;  %1610 = vmatmul.msk.f32.gmra.mxu3 %vm1220_vm5, %v1210_v43  ;;  %v939_v9 = vmul.f32 %v2084_v52, %v2153_v16  ;;  %v1594_v1 = vld [vmem:[%s2048_s24 + $0xda] sm:$0xff] }
 0x112   : > { %v851_v44 = vadd.f32 %v835_v50, %v801_v51  ;;  %v723_v10 = vmul.f32 %v2038_v38, %v2178_v30  ;;  %v773_v15 = vmul.f32 %v2046_v40, %v2181_v31  ;;  %v1100_v61 = vadd.f32 %v1084_v12, %v1050_v23 }
 0x113   : > { %v1182_v22 = vmax.f32 %v1166_v45, 0.0  ;;  %v1055_v56 = vadd.f32 %v1039_v49, %v1001_v17  ;;  %v823_v14 = vmul.f32 %v2066_v46, %v2202_v54  ;;  %v989_v33 = vmul.f32 %v2094_v55, %v2173_v27 }
 0x114   : > { %v905_v29 = vadd.f32 %v889_v7, %v851_v44  ;;  %v789_v16 = vadd.f32 %v773_v15, %v723_v10  ;;  %v877_v24 = vmul.f32 %v2074_v48, %v2189_v37  ;;  %v1150_v60 = vadd.f32 %v1134_v18, %v1100_v61  ;;  %v2659_v44 = vld [vmem:[#allocation3_spill] sm:$0xff] }
 0x115   : > { %v1198_v30 = vmin.f32 %v1182_v22, 6.0  ;;  %v1105_v32 = vadd.f32 %v1089_v41, %v1055_v56  ;;  %v1043_v31 = vmul.f32 %v2104_v59, %v1560_v25  ;;  %v1093_v12 = vmul.f32 %v2114_v62, %v1577_v0 }
 0x116   : > { %v955_v50 = vadd.f32 %v939_v9, %v905_v29  ;;  %v839_v58 = vadd.f32 %v823_v14, %v789_v16  ;;  %v927_v54 = vmul.f32 %v2084_v52, %v2192_v34  ;;  %v1170_v27 = vadd.f32 %v2207_v57, %v1150_v60  ;;  %v2660_v14 = vld [vmem:[#allocation4_spill] sm:$0xff] }
 0x117   : > { %1598 = vmatmul.msk.f32.gmra.mxu0 %vm1220_vm5, %v1198_v30  ;;  %v1155_v63 = vadd.f32 %v1139_v19, %v1105_v32  ;;  %v977_v37 = vmul.f32 %v2094_v55, %v2195_v39  ;;  %v727_v18 = vmul.f32 %v2038_v38, %v2216_v2  ;;  %v777_v41 = vmul.f32 %v2046_v40, %v2238_v21  ;;  %v2662_v32 = vld [vmem:[#allocation5_spill] sm:$0xff] }
 0x118   : > { %v1005_v49 = vadd.f32 %v989_v33, %v955_v50  ;;  %v893_v43 = vadd.f32 %v877_v24, %v839_v58  ;;  %v827_v51 = vmul.f32 %v2066_v46, %v2246_v36  ;;  %v1186_v34 = vmax.f32 %v1170_v27, 0.0  ;;  %v2661_v33 = vld [vmem:[#allocation8_spill] sm:$0xff]  ;;  %v2663_v50 = vld [vmem:[#allocation6_spill] sm:$0xff]  ;;  %v2665_v27 = vld [vmem:[#allocation9_spill] sm:$0xff] }
 0x119   : > { %v1175_v7 = vadd.f32 %v2207_v57, %v1155_v63  ;;  %v1143_v45 = vmul.f32 %v2130_v5, %v1594_v1  ;;  %v1031_v23 = vmul.f32 %v2104_v59, %v2216_v2  ;;  %v793_v19 = vadd.f32 %v777_v41, %v727_v18  ;;  %v2664_v1 = vld [vmem:[#allocation7_spill] sm:$0xff] }
 0x11a   : > { %v1059_v39 = vadd.f32 %v1043_v31, %v1005_v49  ;;  %v943_v17 = vadd.f32 %v927_v54, %v893_v43  ;;  %v881_v9 = vmul.f32 %v2074_v48, %v2659_v44  ;;  %v1202_v25 = vmin.f32 %v1186_v34, 6.0  ;;  %v2666_v34 = vld [vmem:[#allocation11_spill] sm:$0xff]  ;;  %v2668_v44 = vld [vmem:[#allocation13_spill] sm:$0xff] }
 0x11b   : > { %v1191_v10 = vmax.f32 %v1175_v7, 0.0  ;;  %v1081_v15 = vmul.f32 %v2114_v62, %v2238_v21  ;;  %v1131_v22 = vmul.f32 %v2130_v5, %v2246_v36  ;;  %v843_v0 = vadd.f32 %v827_v51, %v793_v19 }
 0x11c   : > { %v1109_v61 = vadd.f32 %v1093_v12, %v1059_v39  ;;  %v993_v56 = vadd.f32 %v977_v37, %v943_v17  ;;  %v931_v2 = vmul.f32 %v2084_v52, %v2660_v14  ;;  %1602 = vmatmul.msk.f32.gmra.mxu1 %vm1220_vm5, %v1202_v25  ;;  %v732_v16 = vmul.f32 %v2038_v38, %v2661_v33 }
 0x11d   : > { %v1207_v29 = vmin.f32 %v1191_v10, 6.0  ;;  %v782_v24 = vmul.f32 %v2046_v40, %v2258_v3  ;;  %v832_v21 = vmul.f32 %v2066_v46, %v2261_v4  ;;  %v897_v60 = vadd.f32 %v881_v9, %v843_v0  ;;  %v2669_v10 = vld [vmem:[#allocation10_spill] sm:$0xff] }
 0x11e   : > { %v1159_v30 = vadd.f32 %v1143_v45, %v1109_v61  ;;  %v1047_v36 = vadd.f32 %v1031_v23, %v993_v56  ;;  %v981_v31 = vmul.f32 %v2094_v55, %v2662_v32  ;;  %v1035_v12 = vmul.f32 %v2104_v59, %v2663_v50  ;;  %v2667_v45 = vld [vmem:[#allocation12_spill] sm:$0xff]  ;;  %v2670_v61 = vld [vmem:[#allocation15_spill] sm:$0xff] }
 0x11f   : > { %1607 = vmatmul.msk.f32.gmra.mxu2 %vm1220_vm5, %v1207_v29  ;;  %v1085_v58 = vmul.f32 %v2114_v62, %v2664_v1  ;;  %v798_v54 = vadd.f32 %v782_v24, %v732_v16  ;;  %v886_v63 = vmul.f32 %v2074_v48, %v2665_v27  ;;  %v947_v49 = vadd.f32 %v931_v2, %v897_v60  ;;  %v2671_v24 = vld [vmem:[#allocation16_spill] sm:$0xff]  ;;  %v2673_v27 = vld [vmem:[#allocation17_spill] sm:$0xff] }
 0x120   : > { %v1179_v37 = vadd.f32 %v2207_v57, %v1159_v30  ;;  %v1097_v18 = vadd.f32 %v1081_v15, %v1047_v36  ;;  %v1135_v43 = vmul.f32 %v2130_v5, %v2087_v53  ;;  %v936_v51 = vmul.f32 %v2084_v52, %v2273_v42  ;;  %v1561_v30 = vld [vmem:[%s2048_s24 + $0xe0] sm:$0xff] }
 0x121   : > { %v848_v41 = vadd.f32 %v832_v21, %v798_v54  ;;  %v736_v7 = vmul.f32 %v2038_v38, %v2666_v34  ;;  %v786_v23 = vmul.f32 %v2046_v40, %v2667_v45  ;;  %v997_v19 = vadd.f32 %v981_v31, %v947_v49  ;;  %v2672_v31 = vld [vmem:[#allocation14_spill] sm:$0xff] }
 0x122   : > { %v1195_v39 = vmax.f32 %v1179_v37, 0.0  ;;  %v1147_v17 = vadd.f32 %v1131_v22, %v1097_v18  ;;  %v836_v9 = vmul.f32 %v2066_v46, %v2668_v44  ;;  %v986_v53 = vmul.f32 %v2094_v55, %v2669_v10  ;;  %v1578_v54 = vld [vmem:[%s2048_s24 + $0xe1] sm:$0xff] }
 0x123   : > { %v902_v25 = vadd.f32 %v886_v63, %v848_v41  ;;  %v802_v15 = vadd.f32 %v786_v23, %v736_v7  ;;  %v890_v42 = vmul.f32 %v2074_v48, %v2670_v61  ;;  %v1051_v14 = vadd.f32 %v1035_v12, %v997_v19  ;;  %v2674_v37 = vld [vmem:[#allocation18_spill] sm:$0xff]  ;;  %v2675_v23 = vld [vmem:[#allocation19_spill] sm:$0xff] }
 0x124   : > { %v1211_v56 = vmin.f32 %v1195_v39, 6.0  ;;  %v1167_v0 = vadd.f32 %v2207_v57, %v1147_v17  ;;  %v1040_v22 = vmul.f32 %v2104_v59, %v2666_v34  ;;  %v1090_v29 = vmul.f32 %v2114_v62, %v2667_v45  ;;  %v1595_v7 = vld [vmem:[%s2048_s24 + $0xe2] sm:$0xff] }
 0x125   : > { %v952_v2 = vadd.f32 %v936_v51, %v902_v25  ;;  %v852_v16 = vadd.f32 %v836_v9, %v802_v15  ;;  %v940_v21 = vmul.f32 %v2084_v52, %v2671_v24  ;;  %v1101_v60 = vadd.f32 %v1085_v58, %v1051_v14 }
 0x126   : > { %1611 = vmatmul.msk.f32.gmra.mxu3 %vm1220_vm5, %v1211_v56  ;;  %v1183_v36 = vmax.f32 %v1167_v0, 0.0  ;;  %v990_v32 = vmul.f32 %v2094_v55, %v2355_v47  ;;  %v724_v50 = vmul.f32 %v2038_v38, %v2672_v31  ;;  %v774_v63 = vmul.f32 %v2046_v40, %v2673_v27 }
 0x127   : > { %v1002_v12 = vadd.f32 %v986_v53, %v952_v2  ;;  %v906_v1 = vadd.f32 %v890_v42, %v852_v16  ;;  %v824_v18 = vmul.f32 %v2066_v46, %v2674_v37  ;;  %v1151_v41 = vadd.f32 %v1135_v43, %v1101_v60 }
 0x128   : > { %v1199_v49 = vmin.f32 %v1183_v36, 6.0  ;;  %v1140_v58 = vmul.f32 %v2130_v5, %v2668_v44  ;;  %v1044_v51 = vmul.f32 %v2104_v59, %v1561_v30  ;;  %v790_v45 = vadd.f32 %v774_v63, %v724_v50 }
 0x129   : > { %v1056_v47 = vadd.f32 %v1040_v22, %v1002_v12  ;;  %v956_v34 = vadd.f32 %v940_v21, %v906_v1  ;;  %v878_v39 = vmul.f32 %v2074_v48, %v2675_v23  ;;  %v1171_v17 = vadd.f32 %v2207_v57, %v1151_v41 }
 0x12a   : > { %1599 = vmatmul.msk.f32.gmra.mxu0 %vm1220_vm5, %v1199_v49  ;;  %v1094_v19 = vmul.f32 %v2114_v62, %v1578_v54  ;;  %v928_v43 = vmul.f32 %v2084_v52, %v2348_v26  ;;  %v840_v25 = vadd.f32 %v824_v18, %v790_v45  ;;  %v728_v10 = vmul.f32 %v2038_v38, %v2364_v35 }
 0x12b   : > { %v1106_v9 = vadd.f32 %v1090_v29, %v1056_v47  ;;  %v1006_v44 = vadd.f32 %v990_v32, %v956_v34  ;;  %v1187_v53 = vmax.f32 %v1171_v17, 0.0  ;;  %v1144_v15 = vmul.f32 %v2130_v5, %v1595_v7 }
 0x12c   : > { %v778_v61 = vmul.f32 %v2046_v40, %v2377_v20  ;;  %v828_v42 = vmul.f32 %v2066_v46, %v2382_v28  ;;  %v894_v14 = vadd.f32 %v878_v39, %v840_v25  ;;  %v978_v26 = vmul.f32 %v2094_v55, %v2351_v6 }
 0x12d   : > { %v1156_v56 = vadd.f32 %v1140_v58, %v1106_v9  ;;  %v1060_v0 = vadd.f32 %v1044_v51, %v1006_v44  ;;  %v1203_v22 = vmin.f32 %v1187_v53, 6.0  ;;  %v882_v38 = vmul.f32 %v2074_v48, %v2223_v8 }
 0x12e   : > { %v794_v2 = vadd.f32 %v778_v61, %v728_v10  ;;  %v944_v24 = vadd.f32 %v928_v43, %v894_v14  ;;  %v1032_v40 = vmul.f32 %v2104_v59, %v2364_v35  ;;  %v932_v21 = vmul.f32 %v2084_v52, %v2226_v11 }
 0x12f   : > { %v1176_v29 = vadd.f32 %v2207_v57, %v1156_v56  ;;  %v1110_v16 = vadd.f32 %v1094_v19, %v1060_v0  ;;  %1603 = vmatmul.msk.f32.gmra.mxu1 %vm1220_vm5, %v1203_v22  ;;  %v1082_v60 = vmul.f32 %v2114_v62, %v2377_v20  ;;  %v982_v8 = vmul.f32 %v2094_v55, %v2229_v13 }
 0x130   : > { %v844_v46 = vadd.f32 %v828_v42, %v794_v2  ;;  %v994_v36 = vadd.f32 %v978_v26, %v944_v24  ;;  %v1132_v50 = vmul.f32 %v2130_v5, %v2382_v28  ;;  %v1036_v52 = vmul.f32 %v2104_v59, %v2661_v33 }
 0x131   : > { %v1192_v30 = vmax.f32 %v1176_v29, 0.0  ;;  %v1160_v6 = vadd.f32 %v1144_v15, %v1110_v16  ;;  %v1086_v54 = vmul.f32 %v2114_v62, %v2258_v3  ;;  %v1136_v63 = vmul.f32 %v2130_v5, %v2261_v4  ;;  %v1680_v5 = vld [vmem:[%s2619_s6] ss:$0 sm:$0xff] }
 0x132   : > { %v898_v48 = vadd.f32 %v882_v38, %v844_v46  ;;  %v1048_v35 = vadd.f32 %v1032_v40, %v994_v36 }
 0x133   : > { %v1208_v32 = vmin.f32 %v1192_v30, 6.0  ;;  %v1180_v31 = vadd.f32 %v2207_v57, %v1160_v6 }
 0x134   : > { %v948_v12 = vadd.f32 %v932_v21, %v898_v48  ;;  %v1098_v1 = vadd.f32 %v1082_v60, %v1048_v35 }
 0x135   : > { %1608 = vmatmul.msk.f32.gmra.mxu2 %vm1220_vm5, %v1208_v32  ;;  %v1196_v11 = vmax.f32 %v1180_v31, 0.0 }
 0x136   : > { %v998_v20 = vadd.f32 %v982_v8, %v948_v12  ;;  %v1148_v13 = vadd.f32 %v1132_v50, %v1098_v1 }
 0x137   : > { %v1212_v55 = vmin.f32 %v1196_v11, 6.0 }
 0x138   : > { %v1052_v27 = vadd.f32 %v1036_v52, %v998_v20  ;;  %v1168_v28 = vadd.f32 %v2207_v57, %v1148_v13 }
 0x139   : > { %1612 = vmatmul.msk.f32.gmra.mxu3 %vm1220_vm5, %v1212_v55 }
 0x13a   : > { %v1102_v59 = vadd.f32 %v1086_v54, %v1052_v27  ;;  %v1184_v33 = vmax.f32 %v1168_v28, 0.0 }
 0x13c   : > { %v1152_v37 = vadd.f32 %v1136_v63, %v1102_v59  ;;  %v1200_v18 = vmin.f32 %v1184_v33, 6.0 }
 0x13e   : > { %v1172_v49 = vadd.f32 %v2207_v57, %v1152_v37  ;;  %1600 = vmatmul.msk.f32.gmra.mxu0 %vm1220_vm5, %v1200_v18 }
 0x140   : > { %v1188_v62 = vmax.f32 %v1172_v49, 0.0 }
 0x142   : > { %v1204_v3 = vmin.f32 %v1188_v62, 6.0 }
 0x144   : > { %1604 = vmatmul.msk.f32.gmra.mxu1 %vm1220_vm5, %v1204_v3 }
 0x181   : > { %v1310_v4 = vpop.f32.mrf.mxu2 }
 0x182   : > { %v1311_v41 = vadd.f32 %v1680_v5, %v1310_v4  ;;  %v1322_v51 = vpop.f32.mrf.mxu3 }
 0x183   : > { %v1286_v58 = vpop.f32.mrf.mxu0  ;;  %v1323_v47 = vadd.f32 %v1680_v5, %v1322_v51 }
 0x184   : > { %1343 = vst.msk [vmem:[%s1803_s18 + $0x40] sm:$0xff] %vm1334_vm6, %v1311_v41  ;;  %v1287_v57 = vadd.f32 %v1680_v5, %v1286_v58 }
 0x185   : > { %1347 = vst.msk [vmem:[%s1803_s18 + $0x60] sm:$0xff] %vm1334_vm6, %v1323_v47 }
 0x186   : > { %1335 = vst.msk [vmem:[%s1803_s18] sm:$0xff] %vm1334_vm6, %v1287_v57  ;;  %v1298_v34 = vpop.f32.mrf.mxu1 }
 0x187   : > { %v1299_v7 = vadd.f32 %v1680_v5, %v1298_v34 }
 0x189   : > { %1339 = vst.msk [vmem:[%s1803_s18 + $0x20] sm:$0xff] %vm1334_vm6, %v1299_v7 }
 0x18f   : > { %v1313_v45 = vpop.f32.mrf.mxu2 }
 0x190   : > { %v1314_v23 = vadd.f32 %v1680_v5, %v1313_v45 }
 0x192   : > { %1344 = vst.msk [vmem:[%s1803_s18 + $0x48] sm:$0xff] %vm1334_vm6, %v1314_v23 }
 0x194   : > { %v1289_v39 = vpop.f32.mrf.mxu0  ;;  %v1325_v19 = vpop.f32.mrf.mxu3 }
 0x195   : > { %v1290_v17 = vadd.f32 %v1680_v5, %v1289_v39  ;;  %v1326_v43 = vadd.f32 %v1680_v5, %v1325_v19 }
 0x197   : > { %1336 = vst.msk [vmem:[%s1803_s18 + $0x8] sm:$0xff] %vm1334_vm6, %v1290_v17 }
 0x198   : > { %1348 = vst.msk [vmem:[%s1803_s18 + $0x68] sm:$0xff] %vm1334_vm6, %v1326_v43 }
 0x199   : > { %v1301_v9 = vpop.f32.mrf.mxu1 }
 0x19a   : > { %v1302_v44 = vadd.f32 %v1680_v5, %v1301_v9 }
 0x19c   : > { %1340 = vst.msk [vmem:[%s1803_s18 + $0x28] sm:$0xff] %vm1334_vm6, %v1302_v44 }
 0x1a2   : > { %v1316_v25 = vpop.f32.mrf.mxu2 }
 0x1a3   : > { %v1317_v10 = vadd.f32 %v1680_v5, %v1316_v25 }
 0x1a5   : > { %1345 = vst.msk [vmem:[%s1803_s18 + $0x50] sm:$0xff] %vm1334_vm6, %v1317_v10 }
 0x1a7   : > { %v1292_v53 = vpop.f32.mrf.mxu0 }
 0x1a8   : > { %v1293_v15 = vadd.f32 %v1680_v5, %v1292_v53 }
 0x1a9   : > { %v1328_v61 = vpop.f32.mrf.mxu3 }
 0x1aa   : > { %1337 = vst.msk [vmem:[%s1803_s18 + $0x10] sm:$0xff] %vm1334_vm6, %v1293_v15  ;;  %v1329_v42 = vadd.f32 %v1680_v5, %v1328_v61 }
 0x1ac   : > { %1349 = vst.msk [vmem:[%s1803_s18 + $0x70] sm:$0xff] %vm1334_vm6, %v1329_v42  ;;  %v1304_v56 = vpop.f32.mrf.mxu1 }
 0x1ad   : > { %v1305_v0 = vadd.f32 %v1680_v5, %v1304_v56 }
 0x1af   : > { %1341 = vst.msk [vmem:[%s1803_s18 + $0x30] sm:$0xff] %vm1334_vm6, %v1305_v0 }
 0x1b8   : > { %v1319_v14 = vpop.f32.mrf.mxu2 }
 0x1b9   : > { %v1320_v26 = vadd.f32 %v1680_v5, %v1319_v14 }
 0x1bb   : > { %1346 = vst.msk [vmem:[%s1803_s18 + $0x58] sm:$0xff] %vm1334_vm6, %v1320_v26  ;;  %v1295_v22 = vpop.f32.mrf.mxu0 }
 0x1bc   : > { %v1331_v2 = vpop.f32.mrf.mxu3  ;;  %v1296_v38 = vadd.f32 %v1680_v5, %v1295_v22 }
 0x1bd   : > { %v1332_v29 = vadd.f32 %v1680_v5, %v1331_v2 }
 0x1be   : > { %1338 = vst.msk [vmem:[%s1803_s18 + $0x18] sm:$0xff] %vm1334_vm6, %v1296_v38 }
 0x1bf   : > { %1350 = vst.msk [vmem:[%s1803_s18 + $0x78] sm:$0xff] %vm1334_vm6, %v1332_v29 }
 0x1c1   : > { %v1307_v16 = vpop.f32.mrf.mxu1 }
 0x1c2   : > { %v1308_v24 = vadd.f32 %v1680_v5, %v1307_v16 }
 0x1c4   : > { %1342 = vst.msk [vmem:[%s1803_s18 + $0x38] sm:$0xff] %vm1334_vm6, %v1308_v24 }
 0x1c5 PF: > { %s17_s28 = sadd.s32 1, %s1719_s28   ;;  %s2676_s24 = smov %s1711_s26 }
 0x1c6   : > { %p14_p8 = scmp.ge.s32.totalorder %s17_s28, 6   ;;  %s2677_s25 = smov %s1715_s27 }
 0x1c7   : > { %s2678_s26 = smov %s2681_s29  ;;  %s2679_s27 = smov %s2685_s30 }
 0x1c8   :  { %16 = sbr.rel (!%p14_p8) target bundleno = 3 (0x3), region = 89 }

</bundles_post_ra>
